<compile_context>
chip_gen: v6e
topology: v6e:2x2x1
jax: 0.10.0
libtpu: 0.0.40
codegen_flags: <defaults>
</compile_context>

<pallas_src>
import functools
import math

import jax
import jax.numpy as jnp
from jax import lax
from jax.experimental import pallas as pl
from jax.experimental.pallas import tpu as pltpu

EPS = 1e-5


# ---------------------------------------------------------------------------
# In-kernel helpers
# ---------------------------------------------------------------------------
def _bn_silu_lane_dense(y, gamma, beta, inv_m, fold):
    """Batch-stat BatchNorm (eps=1e-5) + SiLU on a lane-dense (rows, W*C) tile.

    Channel c of spatial column w lives at lane w*fold + c.  Per-channel stats:
    reduce over rows (sublane reduce), then fold the W lane copies with log2(W)
    roll-adds, leaving the stat replicated across all its lane copies so the
    scale/shift apply with no broadcast.  gamma/beta arrive pre-tiled (1, W*C).
    """
    s = jnp.sum(y, axis=0, keepdims=True)
    ss = jnp.sum(y * y, axis=0, keepdims=True)
    step = y.shape[1] // 2
    while step >= fold:                          # static Python loop (W static)
        s = s + pltpu.roll(s, step, axis=1)
        ss = ss + pltpu.roll(ss, step, axis=1)
        step //= 2
    mean = s * inv_m
    var = jnp.maximum(ss * inv_m - mean * mean, 0.0)   # clamp: no rsqrt(<0)
    scale = gamma * lax.rsqrt(var + EPS)
    shift = beta - mean * scale
    z = y * scale + shift
    return z * jax.nn.sigmoid(z)


# ---------------------------------------------------------------------------
# Fused kernel
# ---------------------------------------------------------------------------
def bottleneck_resnext_kernel(x_ref, w1_ref, g1_ref, b1_ref,
                              w2_ref, g2_ref, b2_ref,
                              w3_ref, g3_ref, b3_ref,
                              o_ref, *, h, w, cm):
    """Fused cv1 -> cv2(depthwise 3x3) -> cv3 -> +residual, all lane-dense.

    x_ref : (N*H, W*C1) f32      w1 : (W*C1, W*Cm) bf16 block-diagonal
    w2    : (9, W*Cm)   f32      (row kh*3+kw, lane-tiled, halo zeros folded in)
    w3    : (W*Cm, W*C2) bf16 block-diagonal
    g*/b* : (1, W*C)    f32      (lane-tiled)
    o_ref : (N*H, W*C2) f32
    """
    nh = x_ref.shape[0]
    wc = w * cm                               # lane width of the intermediate
    c2 = o_ref.shape[1] // w
    inv_m = 1.0 / (nh * w)                    # 1 / (N*H*W)

    # ---- cv1: 1x1 conv as lane-dense block-diagonal bf16 MXU matmul --------
    x = x_ref[...]                            # loaded once, reused for residual
    y1 = jnp.dot(x.astype(jnp.bfloat16), w1_ref[...],
                 preferred_element_type=jnp.float32)           # (NH, W*Cm)
    y1 = _bn_silu_lane_dense(y1, g1_ref[...], b1_ref[...], inv_m, cm)

    # ---- cv2: 3x3 depthwise conv (stride 1, pad 1) via rolls + masks -------
    # Horizontal neighbours: lane rolls by +-Cm (XLU slot).  The column-halo
    # zeros (w-1 < 0, w+1 >= W) are folded into w2_ref, so wrapped lanes
    # contribute nothing.
    left = pltpu.roll(y1, cm, axis=1)         # [., w] <- y1[., w-1]
    right = pltpu.roll(y1, wc - cm, axis=1)   # [., w] <- y1[., w+1]

    def hmix(kh):                             # 3-tap horizontal combine, row kh
        return (left * w2_ref[pl.ds(3 * kh + 0, 1), :]
                + y1 * w2_ref[pl.ds(3 * kh + 1, 1), :]
                + right * w2_ref[pl.ds(3 * kh + 2, 1), :])

    q_top, q_mid, q_bot = hmix(0), hmix(1), hmix(2)

    # Vertical neighbours: sublane rolls by +-1, masked at image-row edges
    # (the same mask kills rows the roll wraps across image boundaries).
    row_id = lax.broadcasted_iota(jnp.int32, (nh, wc), 0)
    if h & (h - 1) == 0:
        h_id = jnp.bitwise_and(row_id, h - 1)
    else:
        h_id = row_id % h
    from_above = jnp.where(h_id > 0, pltpu.roll(q_top, 1, axis=0), 0.0)
    from_below = jnp.where(h_id < h - 1, pltpu.roll(q_bot, nh - 1, axis=0), 0.0)
    acc = q_mid + from_above + from_below     # seeded with centre tap
    y2 = _bn_silu_lane_dense(acc, g2_ref[...], b2_ref[...], inv_m, cm)

    # ---- cv3: 1x1 conv + BN + SiLU + residual add (dense store) ------------
    y3 = jnp.dot(y2.astype(jnp.bfloat16), w3_ref[...],
                 preferred_element_type=jnp.float32)           # (NH, W*C2)
    y3 = _bn_silu_lane_dense(y3, g3_ref[...], b3_ref[...], inv_m, c2)
    o_ref[...] = x + y3


# ---------------------------------------------------------------------------
# Wrapper (single grid-less pallas_call; whole problem fits in VMEM)
# ---------------------------------------------------------------------------
def bottleneck_resnext_forward(x_nchw, params):
    n, c1, h, w = x_nchw.shape
    cm = params["w2"].shape[1] // w
    c2 = params["w3"].shape[1] // w
    assert c1 == c2, "shortcut add requires c1 == c2"
    assert (w * cm) % 128 == 0 and (w * c1) % 128 == 0, "W*C must be lane-dense"
    assert (n * h) % 8 == 0, "N*H must be a sublane multiple"
    assert w & (w - 1) == 0, "lane-fold BN reduction assumes W is a power of two"

    # NCHW -> lane-dense (N*H, W*C1); the transpose+reshape fuse into one XLA
    # copy.  TODO(synk): accept/return NHWC (or fold the layout swap into a
    # gridded kernel) to remove these two HBM passes outside the fused kernel.
    x_dense = jnp.transpose(x_nchw, (0, 2, 3, 1)).reshape(n * h, w * c1)

    kernel = functools.partial(bottleneck_resnext_kernel, h=h, w=w, cm=cm)
    vmem = pl.BlockSpec(memory_space=pltpu.MemorySpace.VMEM)
    out = pl.pallas_call(
        kernel,
        out_shape=jax.ShapeDtypeStruct((n * h, w * c2), jnp.float32),
        in_specs=[vmem] * 10,
        out_specs=vmem,
        # Residual input and output share one HBM buffer (same shape/dtype).
        input_output_aliases={0: 0},
    )(x_dense,
      params["w1"], params["g1"], params["b1"],
      params["w2"], params["g2"], params["b2"],
      params["w3"], params["g3"], params["b3"])

    return jnp.transpose(out.reshape(n, h, w, c2), (0, 3, 1, 2))


def pack_params(w1_oihw, w2_oihw, w3_oihw, g1, b1, g2, b2, g3, b3, *, width):
    """Repack PyTorch-layout (OIHW) weights into the lane-dense kernel layout.

    `width` is the spatial W of the feature map (the lane-fold factor).
    """
    cm, c1 = w1_oihw.shape[0], w1_oihw.shape[1]
    c2 = w3_oihw.shape[0]
    assert w2_oihw.shape[1] == 1, "3x3 grouped conv must be depthwise (c_/g == 1)"

    eye = jnp.eye(width, dtype=jnp.float32)
    # 1x1 convs as block-diagonal matmuls so outputs are already lane-dense.
    w1_bd = jnp.kron(eye, w1_oihw[:, :, 0, 0].T).astype(jnp.bfloat16)  # (W*c1, W*cm)
    w3_bd = jnp.kron(eye, w3_oihw[:, :, 0, 0].T).astype(jnp.bfloat16)  # (W*cm, W*c2)

    # Depthwise taps: row kh*3+kw, lane-tiled across W, with the horizontal
    # halo (w-1 < 0 / w+1 >= W) zeroed directly in the weights.
    taps = jnp.transpose(w2_oihw[:, 0], (1, 2, 0)).reshape(9, cm)       # (9, cm)
    taps = jnp.tile(taps, (1, width)).astype(jnp.float32)               # (9, W*cm)
    wcol = jnp.arange(width * cm) // cm
    taps = taps.at[0::3, :].multiply((wcol >= 1).astype(jnp.float32))       # kw=0
    taps = taps.at[2::3, :].multiply((wcol <= width - 2).astype(jnp.float32))  # kw=2

    def tile_lane(v, c):
        return jnp.tile(jnp.asarray(v, jnp.float32).reshape(1, c), (1, width))

    return {
        "w1": w1_bd, "w2": taps, "w3": w3_bd,
        "g1": tile_lane(g1, cm), "b1": tile_lane(b1, cm),
        "g2": tile_lane(g2, cm), "b2": tile_lane(b2, cm),
        "g3": tile_lane(g3, c2), "b3": tile_lane(b3, c2),
    }


# ---------------------------------------------------------------------------
# References
# ---------------------------------------------------------------------------
def reference_matched(x_nchw, w1_oihw, w2_oihw, w3_oihw, g1, b1, g2, b2, g3, b3):
    """Pure-JAX mirror of the module math at the kernel's operand precision
    (bf16 matmul inputs, f32 everywhere else).  Tight-tolerance check."""
    n, c1, h, w = x_nchw.shape
    cm = w1_oihw.shape[0]
    xf = jnp.transpose(x_nchw, (0, 2, 3, 1))                    # NHWC

    def bn_silu(y, g, b):
        mu = jnp.mean(y, axis=(0, 1, 2), keepdims=True)
        var = jnp.mean(jnp.square(y - mu), axis=(0, 1, 2), keepdims=True)
        z = ((y - mu) * lax.rsqrt(var + EPS) * g.reshape(1, 1, 1, -1)
             + b.reshape(1, 1, 1, -1))
        return z * jax.nn.sigmoid(z)

    w1 = w1_oihw[:, :, 0, 0].T.astype(jnp.bfloat16)
    w3 = w3_oihw[:, :, 0, 0].T.astype(jnp.bfloat16)
    y1 = jnp.dot(xf.reshape(-1, c1).astype(jnp.bfloat16), w1,
                 preferred_element_type=jnp.float32).reshape(n, h, w, cm)
    y1 = bn_silu(y1, g1, b1)
    taps = jnp.transpose(w2_oihw[:, 0], (1, 2, 0))              # (3, 3, cm)
    y1p = jnp.pad(y1, ((0, 0), (1, 1), (1, 1), (0, 0)))
    acc = jnp.zeros_like(y1)
    for kh in range(3):
        for kw in range(3):
            acc = acc + y1p[:, kh:kh + h, kw:kw + w, :] * taps[kh, kw]
    y2 = bn_silu(acc, g2, b2)
    y3 = jnp.dot(y2.reshape(-1, cm).astype(jnp.bfloat16), w3,
                 preferred_element_type=jnp.float32).reshape(n, h, w, -1)
    y3 = bn_silu(y3, g3, b3)
    return jnp.transpose(xf + y3, (0, 3, 1, 2))


def conv_bn_silu_f32(x, w_oihw, gamma, beta, stride, pad, groups):
    """Strict-f32 lax.conv mirror of ConvResNext (PyTorch NCHW semantics)."""
    y = lax.conv_general_dilated(
        x, w_oihw, (stride, stride), [(pad, pad), (pad, pad)],
        dimension_numbers=("NCHW", "OIHW", "NCHW"),
        feature_group_count=groups, precision=lax.Precision.HIGHEST)
    mean = jnp.mean(y, axis=(0, 2, 3), keepdims=True)
    var = jnp.mean((y - mean) ** 2, axis=(0, 2, 3), keepdims=True)
    z = (y - mean) / jnp.sqrt(var + EPS)
    z = z * gamma.reshape(1, -1, 1, 1) + beta.reshape(1, -1, 1, 1)
    return z * jax.nn.sigmoid(z)


# ---------------------------------------------------------------------------
if __name__ == "__main__":
    # Module config (defaults): k=3, s=1, p=1, shortcut=True, g=32, e=0.5
    N, H, W = 2, 16, 16
    c1 = c2 = 64
    g, e = 32, 0.5
    c_ = int(c2 * e)                 # 32 -> the 3x3 grouped conv is depthwise
    assert c_ % g == 0 and c_ // g == 1, "kernel assumes a depthwise 3x3 conv"

    key = jax.random.PRNGKey(0)
    kx, k1, k2, k3 = jax.random.split(key, 4)

    x = jax.random.normal(kx, (N, c1, H, W), dtype=jnp.float32)

    # Deterministic conv weights (OIHW, no bias); BN gamma=1, beta=0 (init).
    w1_oihw = jax.random.normal(k1, (c_, c1, 1, 1), jnp.float32) / math.sqrt(c1)
    w2_oihw = jax.random.normal(k2, (c_, c_ // g, 3, 3), jnp.float32) / math.sqrt(9 * (c_ // g))
    w3_oihw = jax.random.normal(k3, (c2, c_, 1, 1), jnp.float32) / math.sqrt(c_)
    g1v, b1v = jnp.ones((c_,)), jnp.zeros((c_,))
    g2v, b2v = jnp.ones((c_,)), jnp.zeros((c_,))
    g3v, b3v = jnp.ones((c2,)), jnp.zeros((c2,))

    params = pack_params(w1_oihw, w2_oihw, w3_oihw,
                         g1v, b1v, g2v, b2v, g3v, b3v, width=W)

    out = jax.jit(bottleneck_resnext_forward)(x, params)
    out = jax.block_until_ready(out)
    assert out.shape == (N, c2, H, W) and out.dtype == jnp.float32

    # Check 1 (tight): pure-JAX mirror at matched (bf16-MXU) precision.
    ref_m = reference_matched(x, w1_oihw, w2_oihw, w3_oihw,
                              g1v, b1v, g2v, b2v, g3v, b3v)
    err_m = float(jnp.max(jnp.abs(out - ref_m)))
    assert jnp.allclose(out, ref_m, atol=2e-3, rtol=2e-3), err_m

    # Check 2 (loose): strict-f32 lax.conv reference (exact PyTorch math);
    # tolerance reflects the kernel's native bf16-input MXU matmuls vs f32.
    ref_f = x
    ref = conv_bn_silu_f32(x, w1_oihw, g1v, b1v, 1, 0, 1)
    ref = conv_bn_silu_f32(ref, w2_oihw, g2v, b2v, 1, 1, g)
    ref = conv_bn_silu_f32(ref, w3_oihw, g3v, b3v, 1, 0, 1)
    ref_f = ref_f + ref
    err_f = float(jnp.max(jnp.abs(out - ref_f)))
    assert jnp.allclose(out, ref_f, atol=3e-2, rtol=3e-3), err_f

    print("KERNEL_OK")
</pallas_src>

<mosaic_0001>
module attributes {stable_mosaic.version = 11 : i64} {
  func.func @bottleneck_resnext_kernel(%arg0: memref<32x1024xf32, #tpu.memory_space<vmem>>, %arg1: memref<1024x512xbf16, #tpu.memory_space<vmem>>, %arg2: memref<1x512xf32, #tpu.memory_space<vmem>>, %arg3: memref<1x512xf32, #tpu.memory_space<vmem>>, %arg4: memref<9x512xf32, #tpu.memory_space<vmem>>, %arg5: memref<1x512xf32, #tpu.memory_space<vmem>>, %arg6: memref<1x512xf32, #tpu.memory_space<vmem>>, %arg7: memref<512x1024xbf16, #tpu.memory_space<vmem>>, %arg8: memref<1x1024xf32, #tpu.memory_space<vmem>>, %arg9: memref<1x1024xf32, #tpu.memory_space<vmem>>, %arg10: memref<32x1024xf32, #tpu.memory_space<vmem>>) attributes {dimension_semantics = [], scalar_prefetch = 0 : i64, scratch_operands = 0 : i64, tpu.core_type = #tpu.core_type<tc>} {
    %c0 = arith.constant 0 : index
    %c0_0 = arith.constant 0 : index
    %0 = vector.load %arg0[%c0, %c0_0] : memref<32x1024xf32, #tpu.memory_space<vmem>>, vector<32x1024xf32>
    %1 = arith.truncf %0 : vector<32x1024xf32> to vector<32x1024xbf16>
    %c0_1 = arith.constant 0 : index
    %c0_2 = arith.constant 0 : index
    %2 = vector.load %arg1[%c0_1, %c0_2] : memref<1024x512xbf16, #tpu.memory_space<vmem>>, vector<1024x512xbf16>
    %cst = arith.constant dense<0.000000e+00> : vector<32x512xf32>
    %3 = tpu.matmul %1, %2, %cst {dimension_numbers = #tpu.dot_dimension_numbers<[1], [0], [0], [1], [0, 0, 1, 1], [], []>} : vector<32x1024xbf16>, vector<1024x512xbf16>, vector<32x512xf32> -> vector<32x512xf32>
    %c0_3 = arith.constant 0 : index
    %c0_4 = arith.constant 0 : index
    %4 = vector.load %arg2[%c0_3, %c0_4] : memref<1x512xf32, #tpu.memory_space<vmem>>, vector<1x512xf32>
    %c0_5 = arith.constant 0 : index
    %c0_6 = arith.constant 0 : index
    %5 = vector.load %arg3[%c0_5, %c0_6] : memref<1x512xf32, #tpu.memory_space<vmem>>, vector<1x512xf32>
    %cst_7 = arith.constant dense<0.000000e+00> : vector<512xf32>
    %6 = vector.multi_reduction <add>, %3, %cst_7 [0] : vector<32x512xf32> to vector<512xf32>
    %7 = vector.shape_cast %6 : vector<512xf32> to vector<1x512xf32>
    %8 = arith.mulf %3, %3 : vector<32x512xf32>
    %cst_8 = arith.constant dense<0.000000e+00> : vector<512xf32>
    %9 = vector.multi_reduction <add>, %8, %cst_8 [0] : vector<32x512xf32> to vector<512xf32>
    %10 = vector.shape_cast %9 : vector<512xf32> to vector<1x512xf32>
    %c256_i32 = arith.constant 256 : i32
    %11 = tpu.dynamic_rotate %7 by %c256_i32 dim 1 : vector<1x512xf32>, i32 -> vector<1x512xf32>
    %12 = arith.addf %7, %11 : vector<1x512xf32>
    %c256_i32_9 = arith.constant 256 : i32
    %13 = tpu.dynamic_rotate %10 by %c256_i32_9 dim 1 : vector<1x512xf32>, i32 -> vector<1x512xf32>
    %14 = arith.addf %10, %13 : vector<1x512xf32>
    %c128_i32 = arith.constant 128 : i32
    %15 = tpu.dynamic_rotate %12 by %c128_i32 dim 1 : vector<1x512xf32>, i32 -> vector<1x512xf32>
    %16 = arith.addf %12, %15 : vector<1x512xf32>
    %c128_i32_10 = arith.constant 128 : i32
    %17 = tpu.dynamic_rotate %14 by %c128_i32_10 dim 1 : vector<1x512xf32>, i32 -> vector<1x512xf32>
    %18 = arith.addf %14, %17 : vector<1x512xf32>
    %c64_i32 = arith.constant 64 : i32
    %19 = tpu.dynamic_rotate %16 by %c64_i32 dim 1 : vector<1x512xf32>, i32 -> vector<1x512xf32>
    %20 = arith.addf %16, %19 : vector<1x512xf32>
    %c64_i32_11 = arith.constant 64 : i32
    %21 = tpu.dynamic_rotate %18 by %c64_i32_11 dim 1 : vector<1x512xf32>, i32 -> vector<1x512xf32>
    %22 = arith.addf %18, %21 : vector<1x512xf32>
    %c32_i32 = arith.constant 32 : i32
    %23 = tpu.dynamic_rotate %20 by %c32_i32 dim 1 : vector<1x512xf32>, i32 -> vector<1x512xf32>
    %24 = arith.addf %20, %23 : vector<1x512xf32>
    %c32_i32_12 = arith.constant 32 : i32
    %25 = tpu.dynamic_rotate %22 by %c32_i32_12 dim 1 : vector<1x512xf32>, i32 -> vector<1x512xf32>
    %26 = arith.addf %22, %25 : vector<1x512xf32>
    %cst_13 = arith.constant 0.001953125 : f32
    %27 = vector.broadcast %cst_13 : f32 to vector<1x512xf32>
    %28 = arith.mulf %24, %27 : vector<1x512xf32>
    %cst_14 = arith.constant 0.001953125 : f32
    %29 = vector.broadcast %cst_14 : f32 to vector<1x512xf32>
    %30 = arith.mulf %26, %29 : vector<1x512xf32>
    %31 = arith.mulf %28, %28 : vector<1x512xf32>
    %32 = arith.subf %30, %31 : vector<1x512xf32>
    %cst_15 = arith.constant 0.000000e+00 : f32
    %33 = vector.broadcast %cst_15 : f32 to vector<1x512xf32>
    %34 = arith.maximumf %32, %33 : vector<1x512xf32>
    %cst_16 = arith.constant 9.99999974E-6 : f32
    %35 = vector.broadcast %cst_16 : f32 to vector<1x512xf32>
    %36 = arith.addf %34, %35 : vector<1x512xf32>
    %37 = math.rsqrt %36 : vector<1x512xf32>
    %38 = arith.mulf %4, %37 : vector<1x512xf32>
    %39 = arith.mulf %28, %38 : vector<1x512xf32>
    %40 = arith.subf %5, %39 : vector<1x512xf32>
    %41 = vector.broadcast %38 : vector<1x512xf32> to vector<32x512xf32>
    %42 = arith.mulf %3, %41 : vector<32x512xf32>
    %43 = vector.broadcast %40 : vector<1x512xf32> to vector<32x512xf32>
    %44 = arith.addf %42, %43 : vector<32x512xf32>
    %45 = arith.negf %44 : vector<32x512xf32>
    %46 = math.exp %45 : vector<32x512xf32>
    %cst_17 = arith.constant 1.000000e+00 : f32
    %47 = vector.broadcast %cst_17 : f32 to vector<32x512xf32>
    %48 = arith.addf %47, %46 : vector<32x512xf32>
    %49 = arith.divf %47, %48 : vector<32x512xf32>
    %50 = arith.mulf %44, %49 : vector<32x512xf32>
    %c32_i32_18 = arith.constant 32 : i32
    %51 = tpu.dynamic_rotate %50 by %c32_i32_18 dim 1 : vector<32x512xf32>, i32 -> vector<32x512xf32>
    %c480_i32 = arith.constant 480 : i32
    %52 = tpu.dynamic_rotate %50 by %c480_i32 dim 1 : vector<32x512xf32>, i32 -> vector<32x512xf32>
    %c0_19 = arith.constant 0 : index
    %c0_20 = arith.constant 0 : index
    %53 = vector.load %arg4[%c0_19, %c0_20] : memref<9x512xf32, #tpu.memory_space<vmem>>, vector<1x512xf32>
    %54 = vector.broadcast %53 : vector<1x512xf32> to vector<32x512xf32>
    %55 = arith.mulf %51, %54 : vector<32x512xf32>
    %c1 = arith.constant 1 : index
    %c0_21 = arith.constant 0 : index
    %56 = vector.load %arg4[%c1, %c0_21] : memref<9x512xf32, #tpu.memory_space<vmem>>, vector<1x512xf32>
    %57 = vector.broadcast %56 : vector<1x512xf32> to vector<32x512xf32>
    %58 = arith.mulf %50, %57 : vector<32x512xf32>
    %59 = arith.addf %55, %58 : vector<32x512xf32>
    %c2 = arith.constant 2 : index
    %c0_22 = arith.constant 0 : index
    %60 = vector.load %arg4[%c2, %c0_22] : memref<9x512xf32, #tpu.memory_space<vmem>>, vector<1x512xf32>
    %61 = vector.broadcast %60 : vector<1x512xf32> to vector<32x512xf32>
    %62 = arith.mulf %52, %61 : vector<32x512xf32>
    %63 = arith.addf %59, %62 : vector<32x512xf32>
    %c3 = arith.constant 3 : index
    %c0_23 = arith.constant 0 : index
    %64 = vector.load %arg4[%c3, %c0_23] : memref<9x512xf32, #tpu.memory_space<vmem>>, vector<1x512xf32>
    %65 = vector.broadcast %64 : vector<1x512xf32> to vector<32x512xf32>
    %66 = arith.mulf %51, %65 : vector<32x512xf32>
    %c4 = arith.constant 4 : index
    %c0_24 = arith.constant 0 : index
    %67 = vector.load %arg4[%c4, %c0_24] : memref<9x512xf32, #tpu.memory_space<vmem>>, vector<1x512xf32>
    %68 = vector.broadcast %67 : vector<1x512xf32> to vector<32x512xf32>
    %69 = arith.mulf %50, %68 : vector<32x512xf32>
    %70 = arith.addf %66, %69 : vector<32x512xf32>
    %c5 = arith.constant 5 : index
    %c0_25 = arith.constant 0 : index
    %71 = vector.load %arg4[%c5, %c0_25] : memref<9x512xf32, #tpu.memory_space<vmem>>, vector<1x512xf32>
    %72 = vector.broadcast %71 : vector<1x512xf32> to vector<32x512xf32>
    %73 = arith.mulf %52, %72 : vector<32x512xf32>
    %74 = arith.addf %70, %73 : vector<32x512xf32>
    %c6 = arith.constant 6 : index
    %c0_26 = arith.constant 0 : index
    %75 = vector.load %arg4[%c6, %c0_26] : memref<9x512xf32, #tpu.memory_space<vmem>>, vector<1x512xf32>
    %76 = vector.broadcast %75 : vector<1x512xf32> to vector<32x512xf32>
    %77 = arith.mulf %51, %76 : vector<32x512xf32>
    %c7 = arith.constant 7 : index
    %c0_27 = arith.constant 0 : index
    %78 = vector.load %arg4[%c7, %c0_27] : memref<9x512xf32, #tpu.memory_space<vmem>>, vector<1x512xf32>
    %79 = vector.broadcast %78 : vector<1x512xf32> to vector<32x512xf32>
    %80 = arith.mulf %50, %79 : vector<32x512xf32>
    %81 = arith.addf %77, %80 : vector<32x512xf32>
    %c8 = arith.constant 8 : index
    %c0_28 = arith.constant 0 : index
    %82 = vector.load %arg4[%c8, %c0_28] : memref<9x512xf32, #tpu.memory_space<vmem>>, vector<1x512xf32>
    %83 = vector.broadcast %82 : vector<1x512xf32> to vector<32x512xf32>
    %84 = arith.mulf %52, %83 : vector<32x512xf32>
    %85 = arith.addf %81, %84 : vector<32x512xf32>
    %86 = tpu.iota {dimensions = array<i32: 0>} : vector<32x512xi32>
    %c15_i32 = arith.constant 15 : i32
    %87 = vector.broadcast %c15_i32 : i32 to vector<32x512xi32>
    %88 = arith.andi %86, %87 : vector<32x512xi32>
    %c0_i32 = arith.constant 0 : i32
    %89 = vector.broadcast %c0_i32 : i32 to vector<32x512xi32>
    %90 = arith.cmpi sgt, %88, %89 : vector<32x512xi32>
    %c1_i32 = arith.constant 1 : i32
    %91 = tpu.dynamic_rotate %63 by %c1_i32 dim 0 : vector<32x512xf32>, i32 -> vector<32x512xf32>
    %cst_29 = arith.constant 0.000000e+00 : f32
    %92 = vector.broadcast %cst_29 : f32 to vector<32x512xf32>
    %93 = arith.select %90, %91, %92 : vector<32x512xi1>, vector<32x512xf32>
    %c15_i32_30 = arith.constant 15 : i32
    %94 = vector.broadcast %c15_i32_30 : i32 to vector<32x512xi32>
    %95 = arith.cmpi slt, %88, %94 : vector<32x512xi32>
    %c31_i32 = arith.constant 31 : i32
    %96 = tpu.dynamic_rotate %85 by %c31_i32 dim 0 : vector<32x512xf32>, i32 -> vector<32x512xf32>
    %cst_31 = arith.constant 0.000000e+00 : f32
    %97 = vector.broadcast %cst_31 : f32 to vector<32x512xf32>
    %98 = arith.select %95, %96, %97 : vector<32x512xi1>, vector<32x512xf32>
    %99 = arith.addf %74, %93 : vector<32x512xf32>
    %100 = arith.addf %99, %98 : vector<32x512xf32>
    %c0_32 = arith.constant 0 : index
    %c0_33 = arith.constant 0 : index
    %101 = vector.load %arg5[%c0_32, %c0_33] : memref<1x512xf32, #tpu.memory_space<vmem>>, vector<1x512xf32>
    %c0_34 = arith.constant 0 : index
    %c0_35 = arith.constant 0 : index
    %102 = vector.load %arg6[%c0_34, %c0_35] : memref<1x512xf32, #tpu.memory_space<vmem>>, vector<1x512xf32>
    %cst_36 = arith.constant dense<0.000000e+00> : vector<512xf32>
    %103 = vector.multi_reduction <add>, %100, %cst_36 [0] : vector<32x512xf32> to vector<512xf32>
    %104 = vector.shape_cast %103 : vector<512xf32> to vector<1x512xf32>
    %105 = arith.mulf %100, %100 : vector<32x512xf32>
    %cst_37 = arith.constant dense<0.000000e+00> : vector<512xf32>
    %106 = vector.multi_reduction <add>, %105, %cst_37 [0] : vector<32x512xf32> to vector<512xf32>
    %107 = vector.shape_cast %106 : vector<512xf32> to vector<1x512xf32>
    %c256_i32_38 = arith.constant 256 : i32
    %108 = tpu.dynamic_rotate %104 by %c256_i32_38 dim 1 : vector<1x512xf32>, i32 -> vector<1x512xf32>
    %109 = arith.addf %104, %108 : vector<1x512xf32>
    %c256_i32_39 = arith.constant 256 : i32
    %110 = tpu.dynamic_rotate %107 by %c256_i32_39 dim 1 : vector<1x512xf32>, i32 -> vector<1x512xf32>
    %111 = arith.addf %107, %110 : vector<1x512xf32>
    %c128_i32_40 = arith.constant 128 : i32
    %112 = tpu.dynamic_rotate %109 by %c128_i32_40 dim 1 : vector<1x512xf32>, i32 -> vector<1x512xf32>
    %113 = arith.addf %109, %112 : vector<1x512xf32>
    %c128_i32_41 = arith.constant 128 : i32
    %114 = tpu.dynamic_rotate %111 by %c128_i32_41 dim 1 : vector<1x512xf32>, i32 -> vector<1x512xf32>
    %115 = arith.addf %111, %114 : vector<1x512xf32>
    %c64_i32_42 = arith.constant 64 : i32
    %116 = tpu.dynamic_rotate %113 by %c64_i32_42 dim 1 : vector<1x512xf32>, i32 -> vector<1x512xf32>
    %117 = arith.addf %113, %116 : vector<1x512xf32>
    %c64_i32_43 = arith.constant 64 : i32
    %118 = tpu.dynamic_rotate %115 by %c64_i32_43 dim 1 : vector<1x512xf32>, i32 -> vector<1x512xf32>
    %119 = arith.addf %115, %118 : vector<1x512xf32>
    %c32_i32_44 = arith.constant 32 : i32
    %120 = tpu.dynamic_rotate %117 by %c32_i32_44 dim 1 : vector<1x512xf32>, i32 -> vector<1x512xf32>
    %121 = arith.addf %117, %120 : vector<1x512xf32>
    %c32_i32_45 = arith.constant 32 : i32
    %122 = tpu.dynamic_rotate %119 by %c32_i32_45 dim 1 : vector<1x512xf32>, i32 -> vector<1x512xf32>
    %123 = arith.addf %119, %122 : vector<1x512xf32>
    %cst_46 = arith.constant 0.001953125 : f32
    %124 = vector.broadcast %cst_46 : f32 to vector<1x512xf32>
    %125 = arith.mulf %121, %124 : vector<1x512xf32>
    %cst_47 = arith.constant 0.001953125 : f32
    %126 = vector.broadcast %cst_47 : f32 to vector<1x512xf32>
    %127 = arith.mulf %123, %126 : vector<1x512xf32>
    %128 = arith.mulf %125, %125 : vector<1x512xf32>
    %129 = arith.subf %127, %128 : vector<1x512xf32>
    %cst_48 = arith.constant 0.000000e+00 : f32
    %130 = vector.broadcast %cst_48 : f32 to vector<1x512xf32>
    %131 = arith.maximumf %129, %130 : vector<1x512xf32>
    %cst_49 = arith.constant 9.99999974E-6 : f32
    %132 = vector.broadcast %cst_49 : f32 to vector<1x512xf32>
    %133 = arith.addf %131, %132 : vector<1x512xf32>
    %134 = math.rsqrt %133 : vector<1x512xf32>
    %135 = arith.mulf %101, %134 : vector<1x512xf32>
    %136 = arith.mulf %125, %135 : vector<1x512xf32>
    %137 = arith.subf %102, %136 : vector<1x512xf32>
    %138 = vector.broadcast %135 : vector<1x512xf32> to vector<32x512xf32>
    %139 = arith.mulf %100, %138 : vector<32x512xf32>
    %140 = vector.broadcast %137 : vector<1x512xf32> to vector<32x512xf32>
    %141 = arith.addf %139, %140 : vector<32x512xf32>
    %142 = arith.negf %141 : vector<32x512xf32>
    %143 = math.exp %142 : vector<32x512xf32>
    %cst_50 = arith.constant 1.000000e+00 : f32
    %144 = vector.broadcast %cst_50 : f32 to vector<32x512xf32>
    %145 = arith.addf %144, %143 : vector<32x512xf32>
    %146 = arith.divf %144, %145 : vector<32x512xf32>
    %147 = arith.mulf %141, %146 : vector<32x512xf32>
    %148 = arith.truncf %147 : vector<32x512xf32> to vector<32x512xbf16>
    %c0_51 = arith.constant 0 : index
    %c0_52 = arith.constant 0 : index
    %149 = vector.load %arg7[%c0_51, %c0_52] : memref<512x1024xbf16, #tpu.memory_space<vmem>>, vector<512x1024xbf16>
    %cst_53 = arith.constant dense<0.000000e+00> : vector<32x1024xf32>
    %150 = tpu.matmul %148, %149, %cst_53 {dimension_numbers = #tpu.dot_dimension_numbers<[1], [0], [0], [1], [0, 0, 1, 1], [], []>} : vector<32x512xbf16>, vector<512x1024xbf16>, vector<32x1024xf32> -> vector<32x1024xf32>
    %c0_54 = arith.constant 0 : index
    %c0_55 = arith.constant 0 : index
    %151 = vector.load %arg8[%c0_54, %c0_55] : memref<1x1024xf32, #tpu.memory_space<vmem>>, vector<1x1024xf32>
    %c0_56 = arith.constant 0 : index
    %c0_57 = arith.constant 0 : index
    %152 = vector.load %arg9[%c0_56, %c0_57] : memref<1x1024xf32, #tpu.memory_space<vmem>>, vector<1x1024xf32>
    %cst_58 = arith.constant dense<0.000000e+00> : vector<1024xf32>
    %153 = vector.multi_reduction <add>, %150, %cst_58 [0] : vector<32x1024xf32> to vector<1024xf32>
    %154 = vector.shape_cast %153 : vector<1024xf32> to vector<1x1024xf32>
    %155 = arith.mulf %150, %150 : vector<32x1024xf32>
    %cst_59 = arith.constant dense<0.000000e+00> : vector<1024xf32>
    %156 = vector.multi_reduction <add>, %155, %cst_59 [0] : vector<32x1024xf32> to vector<1024xf32>
    %157 = vector.shape_cast %156 : vector<1024xf32> to vector<1x1024xf32>
    %c512_i32 = arith.constant 512 : i32
    %158 = tpu.dynamic_rotate %154 by %c512_i32 dim 1 : vector<1x1024xf32>, i32 -> vector<1x1024xf32>
    %159 = arith.addf %154, %158 : vector<1x1024xf32>
    %c512_i32_60 = arith.constant 512 : i32
    %160 = tpu.dynamic_rotate %157 by %c512_i32_60 dim 1 : vector<1x1024xf32>, i32 -> vector<1x1024xf32>
    %161 = arith.addf %157, %160 : vector<1x1024xf32>
    %c256_i32_61 = arith.constant 256 : i32
    %162 = tpu.dynamic_rotate %159 by %c256_i32_61 dim 1 : vector<1x1024xf32>, i32 -> vector<1x1024xf32>
    %163 = arith.addf %159, %162 : vector<1x1024xf32>
    %c256_i32_62 = arith.constant 256 : i32
    %164 = tpu.dynamic_rotate %161 by %c256_i32_62 dim 1 : vector<1x1024xf32>, i32 -> vector<1x1024xf32>
    %165 = arith.addf %161, %164 : vector<1x1024xf32>
    %c128_i32_63 = arith.constant 128 : i32
    %166 = tpu.dynamic_rotate %163 by %c128_i32_63 dim 1 : vector<1x1024xf32>, i32 -> vector<1x1024xf32>
    %167 = arith.addf %163, %166 : vector<1x1024xf32>
    %c128_i32_64 = arith.constant 128 : i32
    %168 = tpu.dynamic_rotate %165 by %c128_i32_64 dim 1 : vector<1x1024xf32>, i32 -> vector<1x1024xf32>
    %169 = arith.addf %165, %168 : vector<1x1024xf32>
    %c64_i32_65 = arith.constant 64 : i32
    %170 = tpu.dynamic_rotate %167 by %c64_i32_65 dim 1 : vector<1x1024xf32>, i32 -> vector<1x1024xf32>
    %171 = arith.addf %167, %170 : vector<1x1024xf32>
    %c64_i32_66 = arith.constant 64 : i32
    %172 = tpu.dynamic_rotate %169 by %c64_i32_66 dim 1 : vector<1x1024xf32>, i32 -> vector<1x1024xf32>
    %173 = arith.addf %169, %172 : vector<1x1024xf32>
    %cst_67 = arith.constant 0.001953125 : f32
    %174 = vector.broadcast %cst_67 : f32 to vector<1x1024xf32>
    %175 = arith.mulf %171, %174 : vector<1x1024xf32>
    %cst_68 = arith.constant 0.001953125 : f32
    %176 = vector.broadcast %cst_68 : f32 to vector<1x1024xf32>
    %177 = arith.mulf %173, %176 : vector<1x1024xf32>
    %178 = arith.mulf %175, %175 : vector<1x1024xf32>
    %179 = arith.subf %177, %178 : vector<1x1024xf32>
    %cst_69 = arith.constant 0.000000e+00 : f32
    %180 = vector.broadcast %cst_69 : f32 to vector<1x1024xf32>
    %181 = arith.maximumf %179, %180 : vector<1x1024xf32>
    %cst_70 = arith.constant 9.99999974E-6 : f32
    %182 = vector.broadcast %cst_70 : f32 to vector<1x1024xf32>
    %183 = arith.addf %181, %182 : vector<1x1024xf32>
    %184 = math.rsqrt %183 : vector<1x1024xf32>
    %185 = arith.mulf %151, %184 : vector<1x1024xf32>
    %186 = arith.mulf %175, %185 : vector<1x1024xf32>
    %187 = arith.subf %152, %186 : vector<1x1024xf32>
    %188 = vector.broadcast %185 : vector<1x1024xf32> to vector<32x1024xf32>
    %189 = arith.mulf %150, %188 : vector<32x1024xf32>
    %190 = vector.broadcast %187 : vector<1x1024xf32> to vector<32x1024xf32>
    %191 = arith.addf %189, %190 : vector<32x1024xf32>
    %192 = arith.negf %191 : vector<32x1024xf32>
    %193 = math.exp %192 : vector<32x1024xf32>
    %cst_71 = arith.constant 1.000000e+00 : f32
    %194 = vector.broadcast %cst_71 : f32 to vector<32x1024xf32>
    %195 = arith.addf %194, %193 : vector<32x1024xf32>
    %196 = arith.divf %194, %195 : vector<32x1024xf32>
    %197 = arith.mulf %191, %196 : vector<32x1024xf32>
    %198 = arith.addf %0, %197 : vector<32x1024xf32>
    %c0_72 = arith.constant 0 : index
    %c0_73 = arith.constant 0 : index
    %199 = vector.load %arg10[%c0_72, %c0_73] : memref<32x1024xf32, #tpu.memory_space<vmem>>, vector<32x1024xf32>
    tpu.vector_store %arg10[%c0_72, %c0_73], %198 {strides = array<i32>} : memref<32x1024xf32, #tpu.memory_space<vmem>>, vector<32x1024xf32>,
    return
  }
}

</mosaic_0001>

<bundles_post_ra>
// kernel: bottleneck_resnext_forward.1
= control target key start
LH: loop header
LB: loop body
LE: loop exit
PB: predicated region body
PF: predicated region fallthrough
CT: control target
= control target key end

     0   :  { %15 = vsyncpa [#allocation3], 0  ;;  %s10109_s0 = inlined_call_operand.vmem [shape: f32[32,1024], index: 0, kind: input, shape index: {}, may-alias: {0,10}]   ;;  %s10110_s1 = inlined_call_operand.hbm [shape: bf16[1024,512], index: 1, kind: input, shape index: {}]   ;;  %s10111_s2 = inlined_call_operand.vmem [shape: f32[1,512], index: 2, kind: input, shape index: {}]   ;;  %s10112_s3 = inlined_call_operand.vmem [shape: f32[1,512], index: 3, kind: input, shape index: {}]   ;;  %s10113_s4 = inlined_call_operand.vmem [shape: f32[9,512], index: 4, kind: input, shape index: {}]   ;;  %s10114_s5 = inlined_call_operand.vmem [shape: f32[1,512], index: 5, kind: input, shape index: {}]   ;;  %s10115_s6 = inlined_call_operand.vmem [shape: f32[1,512], index: 6, kind: input, shape index: {}]   ;;  %s10116_s7 = inlined_call_operand.hbm [shape: bf16[512,1024], index: 7, kind: input, shape index: {}]   ;;  %s10117_s8 = inlined_call_operand.vmem [shape: f32[1,1024], index: 8, kind: input, shape index: {}]   ;;  %s10118_s9 = inlined_call_operand.vmem [shape: f32[1,1024], index: 9, kind: input, shape index: {}]   ;;  %s10119_s10 = inlined_call_operand.vmem [shape: f32[32,1024], index: 10, kind: output, shape index: {}, may-alias: {0,10}]  }
   0x1   :  { %16 = vsyncpa [#allocation5], 0  ;;  %s7487_s13 = smov [#allocation2]  }
   0x2   :  { %s24_s14 = sshll.u32 %s7487_s13, 4  ;;  %s25_s14 = int_to_ptr.vmem [resolvable:$true] %s24_s14 }
   0x3   :  { %s7451_s15 = scalar_lea.vmem %s25_s14, 32768  ;;  %p7456_p1 = scmp.lt.s32.totalorder %s25_s14, %s25_s14 }
   0x4   :  { %p7452_p0 = scmp.ne.s32.totalorder %s25_s14, %s7451_s15  ;;  %p7457_p2 = scmp.lt.s32.totalorder %s7451_s15, %s7451_s15 }
   0x6   :  { %p7458_p3 = por %p7457_p2, %p7456_p1 }
   0x8   :  { %p7459_p4 = pnand %p7458_p3, %p7452_p0 }
   0xa   :  { %7462 = shalt.err (!%p7459_p4)
}
   0xb   :  { %s7488_s16 = smov 256   ;;  %s7489_s17 = smov 16  }
   0xc   :  { %30 = dma.hbm_to_vmem [thread:$0]  %s10110_s1, 32768, %s25_s14, [#allocation3], %s7488_s16, %s7488_s16, %s7489_s17  }
   0xd   :  { %s7490_s20 = smov [#allocation4]  }
   0xe   :  { %s46_s21 = sshll.u32 %s7490_s20, 4  ;;  %s47_s21 = int_to_ptr.vmem [resolvable:$true] %s46_s21 }
   0xf   :  { %s7471_s22 = scalar_lea.vmem %s47_s21, 32768  ;;  %p7476_p6 = scmp.lt.s32.totalorder %s47_s21, %s47_s21 }
  0x10   :  { %p7472_p5 = scmp.ne.s32.totalorder %s47_s21, %s7471_s22  ;;  %p7477_p7 = scmp.lt.s32.totalorder %s7471_s22, %s7471_s22 }
  0x12   :  { %p7478_p8 = por %p7477_p7, %p7476_p6 }
  0x14   :  { %p7479_p9 = pnand %p7478_p8, %p7472_p5 }
  0x16   :  { %7482 = shalt.err (!%p7479_p9)
}
  0x17   :  { %s7491_s23 = smov 512   ;;  %s7492_s24 = smov 32  }
  0x18   :  { %52 = dma.hbm_to_vmem [thread:$0]  %s10116_s7, 32768, %s47_s21, [#allocation5], %s7491_s23, %s7491_s23, %s7492_s24  }
  0x19   :  { %7483 = dma.done.wait [#allocation3], 32768  }
  0x1a   :  { %7484 = vsyncadd [#allocation3], 4294934528 }
  0x1b   :  { %7485 = dma.done.wait [#allocation5], 32768  }
  0x1c   :  { %7486 = vsyncadd [#allocation5], 4294934528  ;;  %v6765_v0 = vld [vmem:[#allocation2 + $0xe4] ss:$16 sps:$4 sm:$0xff]   ;;  %v6769_v2 = vld [vmem:[#allocation2 + $0xe0] ss:$16 sps:$4 sm:$0xff]  }
  0x1d   :  { %v6767_v1 = vld [vmem:[#allocation2 + $0x2e4] ss:$16 sps:$4 sm:$0xff]   ;;  %1647 = vmatprep.subr.bf16.mxu0 %v6765_v0  ;;  %v6770_v3 = vld [vmem:[#allocation2 + $0x2e0] ss:$16 sps:$4 sm:$0xff]   ;;  %v64_v46 = vld [vmem:[%s10109_s0 + $0x8] sm:$0xff]  ;;  %s7493_s7 = smov 64  }
  0x1e   :  { %1700 = vmatprep.subr.bf16.mxu1 %v6767_v1  ;;  %v6771_v4 = vld [vmem:[#allocation2 + $0xc4] ss:$16 sps:$4 sm:$0xff]   ;;  %1648 = vmatpush1.bf16.msra.mxu0 %v6769_v2  ;;  %v6775_v6 = vld [vmem:[#allocation2 + $0xc0] ss:$16 sps:$4 sm:$0xff]   ;;  %v72_v47 = vld [vmem:[%s10109_s0 + $0x48] sm:$0xff] }
  0x1f   :  { %1701 = vmatpush1.bf16.msra.mxu1 %v6770_v3  ;;  %v6773_v5 = vld [vmem:[#allocation2 + $0x2c4] ss:$16 sps:$4 sm:$0xff]   ;;  %1649 = vmatprep.subr.bf16.mxu0 %v6771_v4  ;;  %v6776_v7 = vld [vmem:[#allocation2 + $0x2c0] ss:$16 sps:$4 sm:$0xff]   ;;  %v66_v48 = vld [vmem:[%s10109_s0 + $0x18] sm:$0xff]  ;;  %v7570_v53 = vpack.c.bf16 %v72_v47, %v64_v46 }
  0x20   :  { %1702 = vmatprep.subr.bf16.mxu1 %v6773_v5  ;;  %v6777_v8 = vld [vmem:[#allocation2 + $0xa4] ss:$16 sps:$4 sm:$0xff]   ;;  %v6781_v10 = vld [vmem:[#allocation2 + $0xa0] ss:$16 sps:$4 sm:$0xff]   ;;  %v74_v49 = vld [vmem:[%s10109_s0 + $0x58] sm:$0xff] }
  0x21   :  { %v6779_v9 = vld [vmem:[#allocation2 + $0x2a4] ss:$16 sps:$4 sm:$0xff]   ;;  %v6782_v11 = vld [vmem:[#allocation2 + $0x2a0] ss:$16 sps:$4 sm:$0xff]   ;;  %v7572_v54 = vpack.c.bf16 %v74_v49, %v66_v48  ;;  %1679 = vmatprep.mubr.bf16.mxu0 %v7570_v53 }
  0x22   :  { %1650 = vmatpush1.bf16.msra.mxu0 %v6775_v6  ;;  %v6783_v12 = vld [vmem:[#allocation2 + $0x84] ss:$16 sps:$4 sm:$0xff]   ;;  %v6787_v14 = vld [vmem:[#allocation2 + $0x80] ss:$16 sps:$4 sm:$0xff]  }
  0x23   :  { %1703 = vmatpush1.bf16.msra.mxu1 %v6776_v7  ;;  %1651 = vmatprep.subr.bf16.mxu0 %v6777_v8  ;;  %v6785_v13 = vld [vmem:[#allocation2 + $0x284] ss:$16 sps:$4 sm:$0xff]   ;;  %v6788_v15 = vld [vmem:[#allocation2 + $0x280] ss:$16 sps:$4 sm:$0xff]  }
  0x24   :  { %1704 = vmatprep.subr.bf16.mxu1 %v6779_v9  ;;  %v6789_v16 = vld [vmem:[#allocation2 + $0x64] ss:$16 sps:$4 sm:$0xff]   ;;  %v6793_v18 = vld [vmem:[#allocation2 + $0x60] ss:$16 sps:$4 sm:$0xff]   ;;  %1732 = vmatprep.mubr.bf16.mxu1 %v7572_v54 }
  0x25   :  { %v6791_v17 = vld [vmem:[#allocation2 + $0x264] ss:$16 sps:$4 sm:$0xff]   ;;  %v6794_v19 = vld [vmem:[#allocation2 + $0x260] ss:$16 sps:$4 sm:$0xff]  }
  0x26   :  { %1652 = vmatpush1.bf16.msra.mxu0 %v6781_v10  ;;  %v6795_v20 = vld [vmem:[#allocation2 + $0x44] ss:$16 sps:$4 sm:$0xff]   ;;  %v6799_v22 = vld [vmem:[#allocation2 + $0x40] ss:$16 sps:$4 sm:$0xff]  }
  0x27   :  { %1705 = vmatpush1.bf16.msra.mxu1 %v6782_v11  ;;  %1653 = vmatprep.subr.bf16.mxu0 %v6783_v12  ;;  %v6797_v21 = vld [vmem:[#allocation2 + $0x244] ss:$16 sps:$4 sm:$0xff]   ;;  %v6800_v23 = vld [vmem:[#allocation2 + $0x240] ss:$16 sps:$4 sm:$0xff]  }
  0x28   :  { %1706 = vmatprep.subr.bf16.mxu1 %v6785_v13  ;;  %v6801_v24 = vld [vmem:[#allocation2 + $0x24] ss:$16 sps:$4 sm:$0xff]   ;;  %v6805_v26 = vld [vmem:[#allocation2 + $0x20] ss:$16 sps:$4 sm:$0xff]  }
  0x29   :  { %v6803_v25 = vld [vmem:[#allocation2 + $0x224] ss:$16 sps:$4 sm:$0xff]   ;;  %v6806_v27 = vld [vmem:[#allocation2 + $0x220] ss:$16 sps:$4 sm:$0xff]  }
  0x2a   :  { %1654 = vmatpush1.bf16.msra.mxu0 %v6787_v14  ;;  %v6807_v28 = vld [vmem:[#allocation2 + $0x4] ss:$16 sps:$4 sm:$0xff]   ;;  %v6811_v30 = vld [vmem:[#allocation2] ss:$16 sps:$4 sm:$0xff]  }
  0x2b   :  { %1707 = vmatpush1.bf16.msra.mxu1 %v6788_v15  ;;  %1655 = vmatprep.subr.bf16.mxu0 %v6789_v16  ;;  %v6809_v29 = vld [vmem:[#allocation2 + $0x204] ss:$16 sps:$4 sm:$0xff]   ;;  %v6812_v31 = vld [vmem:[#allocation2 + $0x200] ss:$16 sps:$4 sm:$0xff]  }
  0x2c   :  { %1708 = vmatprep.subr.bf16.mxu1 %v6791_v17  ;;  %v6813_v32 = vld [vmem:[#allocation2 + $0x1e4] ss:$16 sps:$4 sm:$0xff]   ;;  %v6817_v34 = vld [vmem:[#allocation2 + $0x1e0] ss:$16 sps:$4 sm:$0xff]  }
  0x2d   :  { %v6815_v33 = vld [vmem:[#allocation2 + $0x3e4] ss:$16 sps:$4 sm:$0xff]   ;;  %v6818_v35 = vld [vmem:[#allocation2 + $0x3e0] ss:$16 sps:$4 sm:$0xff]  }
  0x2e   :  { %1656 = vmatpush1.bf16.msra.mxu0 %v6793_v18  ;;  %v6819_v36 = vld [vmem:[#allocation2 + $0x1c4] ss:$16 sps:$4 sm:$0xff]   ;;  %v6823_v38 = vld [vmem:[#allocation2 + $0x1c0] ss:$16 sps:$4 sm:$0xff]  }
  0x2f   :  { %1709 = vmatpush1.bf16.msra.mxu1 %v6794_v19  ;;  %1657 = vmatprep.subr.bf16.mxu0 %v6795_v20  ;;  %v6821_v37 = vld [vmem:[#allocation2 + $0x3c4] ss:$16 sps:$4 sm:$0xff]   ;;  %v6824_v39 = vld [vmem:[#allocation2 + $0x3c0] ss:$16 sps:$4 sm:$0xff]  }
  0x30   :  { %1710 = vmatprep.subr.bf16.mxu1 %v6797_v21  ;;  %v6825_v40 = vld [vmem:[#allocation2 + $0x1a4] ss:$16 sps:$4 sm:$0xff]   ;;  %v6829_v42 = vld [vmem:[#allocation2 + $0x1a0] ss:$16 sps:$4 sm:$0xff]  }
  0x31   :  { %v6827_v41 = vld [vmem:[#allocation2 + $0x3a4] ss:$16 sps:$4 sm:$0xff]   ;;  %v6830_v43 = vld [vmem:[#allocation2 + $0x3a0] ss:$16 sps:$4 sm:$0xff]  }
  0x32   :  { %1658 = vmatpush1.bf16.msra.mxu0 %v6799_v22  ;;  %v6831_v44 = vld [vmem:[#allocation2 + $0x184] ss:$16 sps:$4 sm:$0xff]   ;;  %v6835_v50 = vld [vmem:[#allocation2 + $0x180] ss:$16 sps:$4 sm:$0xff]  }
  0x33   :  { %1711 = vmatpush1.bf16.msra.mxu1 %v6800_v23  ;;  %1659 = vmatprep.subr.bf16.mxu0 %v6801_v24  ;;  %v6833_v45 = vld [vmem:[#allocation2 + $0x384] ss:$16 sps:$4 sm:$0xff]   ;;  %v6836_v51 = vld [vmem:[#allocation2 + $0x380] ss:$16 sps:$4 sm:$0xff]  }
  0x34   :  { %1712 = vmatprep.subr.bf16.mxu1 %v6803_v25  ;;  %v6837_v52 = vld [vmem:[#allocation2 + $0x164] ss:$16 sps:$4 sm:$0xff]   ;;  %v6841_v56 = vld [vmem:[#allocation2 + $0x160] ss:$16 sps:$4 sm:$0xff]  }
  0x35   :  { %v6839_v55 = vld [vmem:[#allocation2 + $0x364] ss:$16 sps:$4 sm:$0xff]   ;;  %v6842_v57 = vld [vmem:[#allocation2 + $0x360] ss:$16 sps:$4 sm:$0xff]  }
  0x36   :  { %1660 = vmatpush1.bf16.msra.mxu0 %v6805_v26  ;;  %v6843_v58 = vld [vmem:[#allocation2 + $0x144] ss:$16 sps:$4 sm:$0xff]   ;;  %v6847_v60 = vld [vmem:[#allocation2 + $0x140] ss:$16 sps:$4 sm:$0xff]  }
  0x37   :  { %1713 = vmatpush1.bf16.msra.mxu1 %v6806_v27  ;;  %1661 = vmatprep.subr.bf16.mxu0 %v6807_v28  ;;  %v6845_v59 = vld [vmem:[#allocation2 + $0x344] ss:$16 sps:$4 sm:$0xff]   ;;  %v6848_v61 = vld [vmem:[#allocation2 + $0x340] ss:$16 sps:$4 sm:$0xff]  }
  0x38   :  { %1714 = vmatprep.subr.bf16.mxu1 %v6809_v29  ;;  %v6849_v62 = vld [vmem:[#allocation2 + $0x124] ss:$16 sps:$4 sm:$0xff]   ;;  %v6853_v0 = vld [vmem:[#allocation2 + $0x120] ss:$16 sps:$4 sm:$0xff]  }
  0x39   :  { %v6851_v63 = vld [vmem:[#allocation2 + $0x324] ss:$16 sps:$4 sm:$0xff]   ;;  %v6854_v1 = vld [vmem:[#allocation2 + $0x320] ss:$16 sps:$4 sm:$0xff]  }
  0x3a   :  { %1662 = vmatpush1.bf16.msra.mxu0 %v6811_v30  ;;  %v6855_v2 = vld [vmem:[#allocation2 + $0x104] ss:$16 sps:$4 sm:$0xff]   ;;  %v6859_v4 = vld [vmem:[#allocation2 + $0x100] ss:$16 sps:$4 sm:$0xff]  }
  0x3b   :  { %1715 = vmatpush1.bf16.msra.mxu1 %v6812_v31  ;;  %1663 = vmatprep.subr.bf16.mxu0 %v6813_v32  ;;  %v6857_v3 = vld [vmem:[#allocation2 + $0x304] ss:$16 sps:$4 sm:$0xff]   ;;  %v6860_v5 = vld [vmem:[#allocation2 + $0x300] ss:$16 sps:$4 sm:$0xff]  }
  0x3c   :  { %1716 = vmatprep.subr.bf16.mxu1 %v6815_v33  ;;  %v63_v6 = vld [vmem:[%s10109_s0] sm:$0xff]  ;;  %v65_v8 = vld [vmem:[%s10109_s0 + $0x10] sm:$0xff] }
  0x3d   :  { %v71_v7 = vld [vmem:[%s10109_s0 + $0x40] sm:$0xff]  ;;  %v73_v9 = vld [vmem:[%s10109_s0 + $0x50] sm:$0xff] }
  0x3e   :  { %1664 = vmatpush2.bf16.msra.mxu0 %v6817_v34  ;;  %v6863_v10 = vld [vmem:[#allocation2 + $0x4e4] ss:$16 sps:$4 sm:$0xff]   ;;  %v7588_v12 = vpack.c.bf16 %v71_v7, %v63_v6  ;;  %v7590_v13 = vpack.c.bf16 %v73_v9, %v65_v8  ;;  %v6861_v14 = vld [vmem:[#allocation2 + $0x4e0] ss:$16 sps:$4 sm:$0xff]   ;;  %v80_v34 = vld [vmem:[%s10109_s0 + $0x88] sm:$0xff] }
  0x3f   :  { %1717 = vmatpush2.bf16.msra.mxu1 %v6818_v35  ;;  %1665 = vmatprep.subr.bf16.mxu0 %v6819_v36  ;;  %v6866_v11 = vld [vmem:[#allocation2 + $0x6e4] ss:$16 sps:$4 sm:$0xff]   ;;  %v6864_v15 = vld [vmem:[#allocation2 + $0x6e0] ss:$16 sps:$4 sm:$0xff]   ;;  %v88_v35 = vld [vmem:[%s10109_s0 + $0xc8] sm:$0xff] }
  0x40   :  { %1718 = vmatprep.subr.bf16.mxu1 %v6821_v37  ;;  %v6869_v16 = vld [vmem:[#allocation2 + $0x4c4] ss:$16 sps:$4 sm:$0xff]   ;;  %v6867_v18 = vld [vmem:[#allocation2 + $0x4c0] ss:$16 sps:$4 sm:$0xff]   ;;  %v82_v36 = vld [vmem:[%s10109_s0 + $0x98] sm:$0xff]  ;;  %v7603_v37 = vpack.c.bf16 %v88_v35, %v80_v34 }
  0x41   :  { %v6872_v17 = vld [vmem:[#allocation2 + $0x6c4] ss:$16 sps:$4 sm:$0xff]   ;;  %v6870_v19 = vld [vmem:[#allocation2 + $0x6c0] ss:$16 sps:$4 sm:$0xff]  }
  0x42   :  { %1666 = vmatpush2.bf16.msra.mxu0 %v6823_v38  ;;  %v6875_v20 = vld [vmem:[#allocation2 + $0x4a4] ss:$16 sps:$4 sm:$0xff]   ;;  %v6873_v22 = vld [vmem:[#allocation2 + $0x4a0] ss:$16 sps:$4 sm:$0xff]   ;;  %v90_v38 = vld [vmem:[%s10109_s0 + $0xd8] sm:$0xff] }
  0x43   :  { %1719 = vmatpush2.bf16.msra.mxu1 %v6824_v39  ;;  %1667 = vmatprep.subr.bf16.mxu0 %v6825_v40  ;;  %v6878_v21 = vld [vmem:[#allocation2 + $0x6a4] ss:$16 sps:$4 sm:$0xff]   ;;  %v6876_v23 = vld [vmem:[#allocation2 + $0x6a0] ss:$16 sps:$4 sm:$0xff]  }
  0x44   :  { %1720 = vmatprep.subr.bf16.mxu1 %v6827_v41  ;;  %v6881_v24 = vld [vmem:[#allocation2 + $0x484] ss:$16 sps:$4 sm:$0xff]   ;;  %v6879_v26 = vld [vmem:[#allocation2 + $0x480] ss:$16 sps:$4 sm:$0xff]   ;;  %v7614_v41 = vpack.c.bf16 %v90_v38, %v82_v36 }
  0x45   :  { %v6884_v25 = vld [vmem:[#allocation2 + $0x684] ss:$16 sps:$4 sm:$0xff]   ;;  %v6882_v27 = vld [vmem:[#allocation2 + $0x680] ss:$16 sps:$4 sm:$0xff]  }
  0x46   :  { %1668 = vmatpush2.bf16.msra.mxu0 %v6829_v42  ;;  %v6887_v28 = vld [vmem:[#allocation2 + $0x464] ss:$16 sps:$4 sm:$0xff]   ;;  %v6885_v30 = vld [vmem:[#allocation2 + $0x460] ss:$16 sps:$4 sm:$0xff]  }
  0x47   :  { %1721 = vmatpush2.bf16.msra.mxu1 %v6830_v43  ;;  %1669 = vmatprep.subr.bf16.mxu0 %v6831_v44  ;;  %v6890_v29 = vld [vmem:[#allocation2 + $0x664] ss:$16 sps:$4 sm:$0xff]   ;;  %v6888_v31 = vld [vmem:[#allocation2 + $0x660] ss:$16 sps:$4 sm:$0xff]  }
  0x48   :  { %1722 = vmatprep.subr.bf16.mxu1 %v6833_v45  ;;  %v6893_v32 = vld [vmem:[#allocation2 + $0x444] ss:$16 sps:$4 sm:$0xff]   ;;  %v6891_v45 = vld [vmem:[#allocation2 + $0x440] ss:$16 sps:$4 sm:$0xff]  }
  0x49   :  { %v6896_v33 = vld [vmem:[#allocation2 + $0x644] ss:$16 sps:$4 sm:$0xff]   ;;  %v6894_v46 = vld [vmem:[#allocation2 + $0x640] ss:$16 sps:$4 sm:$0xff]  }
  0x4a   :  { %1670 = vmatpush2.bf16.msra.mxu0 %v6835_v50  ;;  %v79_v39 = vld [vmem:[%s10109_s0 + $0x80] sm:$0xff]  ;;  %v81_v43 = vld [vmem:[%s10109_s0 + $0x90] sm:$0xff] }
  0x4b   :  { %1723 = vmatpush2.bf16.msra.mxu1 %v6836_v51  ;;  %1671 = vmatprep.subr.bf16.mxu0 %v6837_v52  ;;  %v87_v40 = vld [vmem:[%s10109_s0 + $0xc0] sm:$0xff]  ;;  %v89_v44 = vld [vmem:[%s10109_s0 + $0xd0] sm:$0xff] }
  0x4c   :  { %1724 = vmatprep.subr.bf16.mxu1 %v6839_v55  ;;  %v7616_v42 = vpack.c.bf16 %v87_v40, %v79_v39  ;;  %v7625_v47 = vpack.c.bf16 %v89_v44, %v81_v43  ;;  %v6899_v48 = vld [vmem:[#allocation2 + $0x424] ss:$16 sps:$4 sm:$0xff]   ;;  %v6897_v50 = vld [vmem:[#allocation2 + $0x420] ss:$16 sps:$4 sm:$0xff]   ;;  %v6959_v39 = vld [vmem:[#allocation2 + $0xec] ss:$16 sps:$4 sm:$0xff]  }
  0x4d   :  { %v6902_v49 = vld [vmem:[#allocation2 + $0x624] ss:$16 sps:$4 sm:$0xff]   ;;  %v6900_v51 = vld [vmem:[#allocation2 + $0x620] ss:$16 sps:$4 sm:$0xff]   ;;  %v6962_v40 = vld [vmem:[#allocation2 + $0x2ec] ss:$16 sps:$4 sm:$0xff]  }
  0x4e   :  { %1672 = vmatpush2.bf16.msra.mxu0 %v6841_v56  ;;  %v6905_v52 = vld [vmem:[#allocation2 + $0x404] ss:$16 sps:$4 sm:$0xff]   ;;  %v68_v56 = vld [vmem:[%s10109_s0 + $0x28] sm:$0xff]  ;;  %v6915_v6 = vld [vmem:[#allocation2 + $0x5c0] ss:$16 sps:$4 sm:$0xff]  }
  0x4f   :  { %1725 = vmatpush2.bf16.msra.mxu1 %v6842_v57  ;;  %1673 = vmatprep.subr.bf16.mxu0 %v6843_v58  ;;  %v6908_v55 = vld [vmem:[#allocation2 + $0x604] ss:$16 sps:$4 sm:$0xff]   ;;  %v76_v57 = vld [vmem:[%s10109_s0 + $0x68] sm:$0xff]  ;;  %v70_v58 = vld [vmem:[%s10109_s0 + $0x38] sm:$0xff] }
  0x50   :  { %1726 = vmatprep.subr.bf16.mxu1 %v6845_v59  ;;  %v78_v59 = vld [vmem:[%s10109_s0 + $0x78] sm:$0xff]  ;;  %v6918_v7 = vld [vmem:[#allocation2 + $0x7c0] ss:$16 sps:$4 sm:$0xff]   ;;  %v6923_v8 = vld [vmem:[#allocation2 + $0x5a4] ss:$16 sps:$4 sm:$0xff]  }
  0x51   :  { %v6926_v9 = vld [vmem:[#allocation2 + $0x7a4] ss:$16 sps:$4 sm:$0xff]   ;;  %v6957_v43 = vld [vmem:[#allocation2 + $0xe8] ss:$16 sps:$4 sm:$0xff]  }
  0x52   :  { %1674 = vmatpush2.bf16.msra.mxu0 %v6847_v60  ;;  %v6903_v60 = vld [vmem:[#allocation2 + $0x400] ss:$16 sps:$4 sm:$0xff]   ;;  %v6960_v44 = vld [vmem:[#allocation2 + $0x2e8] ss:$16 sps:$4 sm:$0xff]  }
  0x53   :  { %1727 = vmatpush2.bf16.msra.mxu1 %v6848_v61  ;;  %1675 = vmatprep.subr.bf16.mxu0 %v6849_v62  ;;  %v6906_v61 = vld [vmem:[#allocation2 + $0x600] ss:$16 sps:$4 sm:$0xff]   ;;  %v6911_v62 = vld [vmem:[#allocation2 + $0x5e4] ss:$16 sps:$4 sm:$0xff]  }
  0x54   :  { %1728 = vmatprep.subr.bf16.mxu1 %v6851_v63  ;;  %v7642_v63 = vpack.c.bf16 %v76_v57, %v68_v56  ;;  %v67_v34 = vld [vmem:[%s10109_s0 + $0x20] sm:$0xff]  ;;  %v69_v36 = vld [vmem:[%s10109_s0 + $0x30] sm:$0xff]  ;;  %v6963_v56 = vld [vmem:[#allocation2 + $0xc8] ss:$16 sps:$4 sm:$0xff]  }
  0x55   :  { %v75_v35 = vld [vmem:[%s10109_s0 + $0x60] sm:$0xff]  ;;  %v77_v38 = vld [vmem:[%s10109_s0 + $0x70] sm:$0xff]  ;;  %v6966_v57 = vld [vmem:[#allocation2 + $0x2c8] ss:$16 sps:$4 sm:$0xff]  }
  0x56   :  { %1676 = vmatpush2.bf16.msra.mxu0 %v6853_v0  ;;  %v7644_v0 = vpack.c.bf16 %v78_v59, %v70_v58  ;;  %v83_v59 = vld [vmem:[%s10109_s0 + $0xa0] sm:$0xff] }
  0x57   :  { %1729 = vmatpush2.bf16.msra.mxu1 %v6854_v1  ;;  %1677 = vmatprep.subr.bf16.mxu0 %v6855_v2  ;;  %v6914_v1 = vld [vmem:[#allocation2 + $0x7e4] ss:$16 sps:$4 sm:$0xff]   ;;  %v6909_v2 = vld [vmem:[#allocation2 + $0x5e0] ss:$16 sps:$4 sm:$0xff]  }
  0x58   :  { %1730 = vmatprep.subr.bf16.mxu1 %v6857_v3  ;;  %v6912_v3 = vld [vmem:[#allocation2 + $0x7e0] ss:$16 sps:$4 sm:$0xff]  }
  0x5a   :  { %1678 = vmatpush2.bf16.msra.mxu0 %v6859_v4  ;;  %v6917_v4 = vld [vmem:[#allocation2 + $0x5c4] ss:$16 sps:$4 sm:$0xff]  }
  0x5b   :  { %1731 = vmatpush2.bf16.msra.mxu1 %v6860_v5  ;;  %1753 = vmatprep.subr.bf16.mxu0 %v6863_v10  ;;  %v6920_v5 = vld [vmem:[#allocation2 + $0x7c4] ss:$16 sps:$4 sm:$0xff]   ;;  %v6921_v10 = vld [vmem:[#allocation2 + $0x5a0] ss:$16 sps:$4 sm:$0xff]  }
  0x5c   :  { %1806 = vmatprep.subr.bf16.mxu1 %v6866_v11  ;;  %v6924_v11 = vld [vmem:[#allocation2 + $0x7a0] ss:$16 sps:$4 sm:$0xff]  }
  0x5d   :  { %1680 = vmatmul.mubr.bf16.vlgmr.msra.gmra.mxu0 %v7588_v12 }
  0x5e   :  { %1733 = vmatmul.mubr.bf16.vlgmr.msra.gmra.mxu1 %v7590_v13  ;;  %1754 = vmatpush1.bf16.msra.mxu0 %v6861_v14  ;;  %v6929_v14 = vld [vmem:[#allocation2 + $0x584] ss:$16 sps:$4 sm:$0xff]  }
  0x5f   :  { %1807 = vmatpush1.bf16.msra.mxu1 %v6864_v15  ;;  %1755 = vmatprep.subr.bf16.mxu0 %v6869_v16  ;;  %v6932_v15 = vld [vmem:[#allocation2 + $0x784] ss:$16 sps:$4 sm:$0xff]   ;;  %v6927_v16 = vld [vmem:[#allocation2 + $0x580] ss:$16 sps:$4 sm:$0xff]  }
  0x60   :  { %1808 = vmatprep.subr.bf16.mxu1 %v6872_v17  ;;  %1689 = vmatprep.mubr.bf16.mxu0 %v7603_v37  ;;  %v6930_v17 = vld [vmem:[#allocation2 + $0x780] ss:$16 sps:$4 sm:$0xff]  }
  0x61   :  { %1742 = vmatprep.mubr.bf16.mxu1 %v7614_v41 }
  0x62   :  { %1756 = vmatpush1.bf16.msra.mxu0 %v6867_v18  ;;  %v6935_v18 = vld [vmem:[#allocation2 + $0x564] ss:$16 sps:$4 sm:$0xff]  }
  0x63   :  { %1809 = vmatpush1.bf16.msra.mxu1 %v6870_v19  ;;  %1757 = vmatprep.subr.bf16.mxu0 %v6875_v20  ;;  %v6938_v19 = vld [vmem:[#allocation2 + $0x764] ss:$16 sps:$4 sm:$0xff]   ;;  %v6933_v20 = vld [vmem:[#allocation2 + $0x560] ss:$16 sps:$4 sm:$0xff]  }
  0x64   :  { %1810 = vmatprep.subr.bf16.mxu1 %v6878_v21  ;;  %v6936_v21 = vld [vmem:[#allocation2 + $0x760] ss:$16 sps:$4 sm:$0xff]  }
  0x65   :  { %1690 = vmatmul.mubr.bf16.gmra.mxu0 %v7616_v42 }
  0x66   :  { %1758 = vmatpush1.bf16.msra.mxu0 %v6873_v22  ;;  %1743 = vmatmul.mubr.bf16.gmra.mxu1 %v7625_v47  ;;  %v6941_v22 = vld [vmem:[#allocation2 + $0x544] ss:$16 sps:$4 sm:$0xff]  }
  0x67   :  { %1811 = vmatpush1.bf16.msra.mxu1 %v6876_v23  ;;  %1759 = vmatprep.subr.bf16.mxu0 %v6881_v24  ;;  %v6944_v23 = vld [vmem:[#allocation2 + $0x744] ss:$16 sps:$4 sm:$0xff]   ;;  %v6939_v24 = vld [vmem:[#allocation2 + $0x540] ss:$16 sps:$4 sm:$0xff]  }
  0x68   :  { %1812 = vmatprep.subr.bf16.mxu1 %v6884_v25  ;;  %1785 = vmatprep.mubr.bf16.mxu0 %v7642_v63  ;;  %v6942_v25 = vld [vmem:[#allocation2 + $0x740] ss:$16 sps:$4 sm:$0xff]  }
  0x69   :  { %1838 = vmatprep.mubr.bf16.mxu1 %v7644_v0 }
  0x6a   :  { %1760 = vmatpush1.bf16.msra.mxu0 %v6879_v26  ;;  %v6947_v26 = vld [vmem:[#allocation2 + $0x524] ss:$16 sps:$4 sm:$0xff]  }
  0x6b   :  { %1813 = vmatpush1.bf16.msra.mxu1 %v6882_v27  ;;  %1761 = vmatprep.subr.bf16.mxu0 %v6887_v28  ;;  %v6950_v27 = vld [vmem:[#allocation2 + $0x724] ss:$16 sps:$4 sm:$0xff]   ;;  %v6945_v28 = vld [vmem:[#allocation2 + $0x520] ss:$16 sps:$4 sm:$0xff]  }
  0x6c   :  { %1814 = vmatprep.subr.bf16.mxu1 %v6890_v29  ;;  %v6948_v29 = vld [vmem:[#allocation2 + $0x720] ss:$16 sps:$4 sm:$0xff]  }
  0x6e   :  { %1762 = vmatpush1.bf16.msra.mxu0 %v6885_v30  ;;  %v6953_v30 = vld [vmem:[#allocation2 + $0x504] ss:$16 sps:$4 sm:$0xff]  }
  0x6f   :  { %1815 = vmatpush1.bf16.msra.mxu1 %v6888_v31  ;;  %1763 = vmatprep.subr.bf16.mxu0 %v6893_v32  ;;  %v6956_v31 = vld [vmem:[#allocation2 + $0x704] ss:$16 sps:$4 sm:$0xff]   ;;  %v6951_v32 = vld [vmem:[#allocation2 + $0x500] ss:$16 sps:$4 sm:$0xff]  }
  0x70   :  { %1816 = vmatprep.subr.bf16.mxu1 %v6896_v33  ;;  %v6954_v33 = vld [vmem:[#allocation2 + $0x700] ss:$16 sps:$4 sm:$0xff]  }
  0x72   :  { %1764 = vmatpush1.bf16.msra.mxu0 %v6891_v45  ;;  %v84_v45 = vld [vmem:[%s10109_s0 + $0xa8] sm:$0xff] }
  0x73   :  { %1817 = vmatpush1.bf16.msra.mxu1 %v6894_v46  ;;  %1765 = vmatprep.subr.bf16.mxu0 %v6899_v48  ;;  %v92_v46 = vld [vmem:[%s10109_s0 + $0xe8] sm:$0xff]  ;;  %v7666_v48 = vpack.c.bf16 %v75_v35, %v67_v34 }
  0x74   :  { %1818 = vmatprep.subr.bf16.mxu1 %v6902_v49  ;;  %v7668_v49 = vpack.c.bf16 %v77_v38, %v69_v36  ;;  %v7676_v58 = vpack.c.bf16 %v92_v46, %v84_v45  ;;  %v7011_v34 = vld [vmem:[#allocation2 + $0x1c8] ss:$16 sps:$4 sm:$0xff]   ;;  %v7019_v36 = vld [vmem:[#allocation2 + $0x1ac] ss:$16 sps:$4 sm:$0xff]  }
  0x75   :  { %v7014_v35 = vld [vmem:[#allocation2 + $0x3c8] ss:$16 sps:$4 sm:$0xff]   ;;  %v7022_v38 = vld [vmem:[#allocation2 + $0x3ac] ss:$16 sps:$4 sm:$0xff]  }
  0x76   :  { %1766 = vmatpush1.bf16.msra.mxu0 %v6897_v50  ;;  %v86_v50 = vld [vmem:[%s10109_s0 + $0xb8] sm:$0xff] }
  0x77   :  { %1819 = vmatpush1.bf16.msra.mxu1 %v6900_v51  ;;  %1767 = vmatprep.subr.bf16.mxu0 %v6905_v52  ;;  %v94_v51 = vld [vmem:[%s10109_s0 + $0xf8] sm:$0xff] }
  0x78   :  { %1820 = vmatprep.subr.bf16.mxu1 %v6908_v55  ;;  %v6965_v52 = vld [vmem:[#allocation2 + $0xcc] ss:$16 sps:$4 sm:$0xff]   ;;  %v7023_v45 = vld [vmem:[#allocation2 + $0x188] ss:$16 sps:$4 sm:$0xff]  }
  0x79   :  { %v6968_v55 = vld [vmem:[#allocation2 + $0x2cc] ss:$16 sps:$4 sm:$0xff]   ;;  %v7026_v46 = vld [vmem:[#allocation2 + $0x388] ss:$16 sps:$4 sm:$0xff]  }
  0x7a   :  { %1768 = vmatpush1.bf16.msra.mxu0 %v6903_v60  ;;  %v91_v60 = vld [vmem:[%s10109_s0 + $0xe0] sm:$0xff] }
  0x7b   :  { %1821 = vmatpush1.bf16.msra.mxu1 %v6906_v61  ;;  %1769 = vmatprep.subr.bf16.mxu0 %v6911_v62  ;;  %v7684_v61 = vpack.c.bf16 %v94_v51, %v86_v50  ;;  %v6971_v62 = vld [vmem:[#allocation2 + $0xac] ss:$16 sps:$4 sm:$0xff]  }
  0x7c   :  { %1822 = vmatprep.subr.bf16.mxu1 %v6914_v1  ;;  %v85_v1 = vld [vmem:[%s10109_s0 + $0xb0] sm:$0xff]  ;;  %v7031_v50 = vld [vmem:[#allocation2 + $0x16c] ss:$16 sps:$4 sm:$0xff]  }
  0x7d   :  { %v7034_v51 = vld [vmem:[#allocation2 + $0x36c] ss:$16 sps:$4 sm:$0xff]  }
  0x7e   :  { %1770 = vmatpush2.bf16.msra.mxu0 %v6909_v2  ;;  %v93_v2 = vld [vmem:[%s10109_s0 + $0xf0] sm:$0xff] }
  0x7f   :  { %1823 = vmatpush2.bf16.msra.mxu1 %v6912_v3  ;;  %1771 = vmatprep.subr.bf16.mxu0 %v6917_v4  ;;  %v6974_v3 = vld [vmem:[#allocation2 + $0x2ac] ss:$16 sps:$4 sm:$0xff]   ;;  %v7696_v4 = vpack.c.bf16 %v91_v60, %v83_v59  ;;  %v7035_v59 = vld [vmem:[#allocation2 + $0x148] ss:$16 sps:$4 sm:$0xff]  }
  0x80   :  { %1824 = vmatprep.subr.bf16.mxu1 %v6920_v5  ;;  %v6969_v5 = vld [vmem:[#allocation2 + $0xa8] ss:$16 sps:$4 sm:$0xff]  }
  0x81   :  { %v7038_v60 = vld [vmem:[#allocation2 + $0x348] ss:$16 sps:$4 sm:$0xff]  }
  0x82   :  { %1772 = vmatpush2.bf16.msra.mxu0 %v6915_v6  ;;  %v6972_v6 = vld [vmem:[#allocation2 + $0x2a8] ss:$16 sps:$4 sm:$0xff]  }
  0x83   :  { %1825 = vmatpush2.bf16.msra.mxu1 %v6918_v7  ;;  %1773 = vmatprep.subr.bf16.mxu0 %v6923_v8  ;;  %v7698_v7 = vpack.c.bf16 %v93_v2, %v85_v1  ;;  %v6977_v8 = vld [vmem:[#allocation2 + $0x8c] ss:$16 sps:$4 sm:$0xff]   ;;  %v7041_v2 = vld [vmem:[#allocation2 + $0x128] ss:$16 sps:$4 sm:$0xff]  }
  0x84   :  { %1826 = vmatprep.subr.bf16.mxu1 %v6926_v9  ;;  %v6980_v9 = vld [vmem:[#allocation2 + $0x28c] ss:$16 sps:$4 sm:$0xff]  }
  0x85   :  { %v7046_v1 = vld [vmem:[#allocation2 + $0x32c] ss:$16 sps:$4 sm:$0xff]  }
  0x86   :  { %1774 = vmatpush2.bf16.msra.mxu0 %v6921_v10  ;;  %v6975_v10 = vld [vmem:[#allocation2 + $0x88] ss:$16 sps:$4 sm:$0xff]  }
  0x87   :  { %1827 = vmatpush2.bf16.msra.mxu1 %v6924_v11  ;;  %1775 = vmatprep.subr.bf16.mxu0 %v6929_v14  ;;  %v6978_v11 = vld [vmem:[#allocation2 + $0x288] ss:$16 sps:$4 sm:$0xff]   ;;  %v6983_v14 = vld [vmem:[#allocation2 + $0x6c] ss:$16 sps:$4 sm:$0xff]  }
  0x88   :  { %1828 = vmatprep.subr.bf16.mxu1 %v6932_v15  ;;  %v6986_v15 = vld [vmem:[#allocation2 + $0x26c] ss:$16 sps:$4 sm:$0xff]  }
  0x8a   :  { %1776 = vmatpush2.bf16.msra.mxu0 %v6927_v16  ;;  %v6981_v16 = vld [vmem:[#allocation2 + $0x68] ss:$16 sps:$4 sm:$0xff]  }
  0x8b   :  { %1829 = vmatpush2.bf16.msra.mxu1 %v6930_v17  ;;  %1777 = vmatprep.subr.bf16.mxu0 %v6935_v18  ;;  %v6984_v17 = vld [vmem:[#allocation2 + $0x268] ss:$16 sps:$4 sm:$0xff]   ;;  %v6989_v18 = vld [vmem:[#allocation2 + $0x4c] ss:$16 sps:$4 sm:$0xff]  }
  0x8c   :  { %1830 = vmatprep.subr.bf16.mxu1 %v6938_v19  ;;  %v6992_v19 = vld [vmem:[#allocation2 + $0x24c] ss:$16 sps:$4 sm:$0xff]  }
  0x8e   :  { %1778 = vmatpush2.bf16.msra.mxu0 %v6933_v20  ;;  %v6987_v20 = vld [vmem:[#allocation2 + $0x48] ss:$16 sps:$4 sm:$0xff]  }
  0x8f   :  { %1831 = vmatpush2.bf16.msra.mxu1 %v6936_v21  ;;  %1779 = vmatprep.subr.bf16.mxu0 %v6941_v22  ;;  %v6990_v21 = vld [vmem:[#allocation2 + $0x248] ss:$16 sps:$4 sm:$0xff]   ;;  %v6995_v22 = vld [vmem:[#allocation2 + $0x2c] ss:$16 sps:$4 sm:$0xff]  }
  0x90   :  { %1832 = vmatprep.subr.bf16.mxu1 %v6944_v23  ;;  %v6998_v23 = vld [vmem:[#allocation2 + $0x22c] ss:$16 sps:$4 sm:$0xff]  }
  0x92   :  { %1780 = vmatpush2.bf16.msra.mxu0 %v6939_v24  ;;  %v6993_v24 = vld [vmem:[#allocation2 + $0x28] ss:$16 sps:$4 sm:$0xff]  }
  0x93   :  { %1833 = vmatpush2.bf16.msra.mxu1 %v6942_v25  ;;  %1781 = vmatprep.subr.bf16.mxu0 %v6947_v26  ;;  %v7004_v25 = vld [vmem:[#allocation2 + $0x20c] ss:$16 sps:$4 sm:$0xff]   ;;  %v6999_v26 = vld [vmem:[#allocation2 + $0x8] ss:$16 sps:$4 sm:$0xff]  }
  0x94   :  { %1834 = vmatprep.subr.bf16.mxu1 %v6950_v27  ;;  %v7002_v27 = vld [vmem:[#allocation2 + $0x208] ss:$16 sps:$4 sm:$0xff]  }
  0x96   :  { %1782 = vmatpush2.bf16.msra.mxu0 %v6945_v28  ;;  %v7007_v28 = vld [vmem:[#allocation2 + $0x1ec] ss:$16 sps:$4 sm:$0xff]  }
  0x97   :  { %1835 = vmatpush2.bf16.msra.mxu1 %v6948_v29  ;;  %1783 = vmatprep.subr.bf16.mxu0 %v6953_v30  ;;  %v7010_v29 = vld [vmem:[#allocation2 + $0x3ec] ss:$16 sps:$4 sm:$0xff]   ;;  %v7005_v30 = vld [vmem:[#allocation2 + $0x1e8] ss:$16 sps:$4 sm:$0xff]  }
  0x98   :  { %1836 = vmatprep.subr.bf16.mxu1 %v6956_v31  ;;  %v7008_v31 = vld [vmem:[#allocation2 + $0x3e8] ss:$16 sps:$4 sm:$0xff]  }
  0x9a   :  { %1784 = vmatpush2.bf16.msra.mxu0 %v6951_v32  ;;  %v7013_v32 = vld [vmem:[#allocation2 + $0x1cc] ss:$16 sps:$4 sm:$0xff]  }
  0x9b   :  { %1837 = vmatpush2.bf16.msra.mxu1 %v6954_v33  ;;  %1859 = vmatprep.subr.bf16.mxu0 %v6959_v39  ;;  %v7016_v33 = vld [vmem:[#allocation2 + $0x3cc] ss:$16 sps:$4 sm:$0xff]   ;;  %v7017_v39 = vld [vmem:[#allocation2 + $0x1a8] ss:$16 sps:$4 sm:$0xff]  }
  0x9c   :  { %1912 = vmatprep.subr.bf16.mxu1 %v6962_v40  ;;  %v7020_v40 = vld [vmem:[#allocation2 + $0x3a8] ss:$16 sps:$4 sm:$0xff]  }
  0x9d   :  { %1786 = vmatmul.mubr.bf16.vlgmr.msra.gmra.mxu0 %v7666_v48 }
  0x9e   :  { %1839 = vmatmul.mubr.bf16.vlgmr.msra.gmra.mxu1 %v7668_v49  ;;  %1860 = vmatpush1.bf16.msra.mxu0 %v6957_v43  ;;  %v7025_v43 = vld [vmem:[#allocation2 + $0x18c] ss:$16 sps:$4 sm:$0xff]  }
  0x9f   :  { %1913 = vmatpush1.bf16.msra.mxu1 %v6960_v44  ;;  %1861 = vmatprep.subr.bf16.mxu0 %v6965_v52  ;;  %v7028_v44 = vld [vmem:[#allocation2 + $0x38c] ss:$16 sps:$4 sm:$0xff]   ;;  %v7029_v52 = vld [vmem:[#allocation2 + $0x168] ss:$16 sps:$4 sm:$0xff]  }
  0xa0   :  { %1914 = vmatprep.subr.bf16.mxu1 %v6968_v55  ;;  %1795 = vmatprep.mubr.bf16.mxu0 %v7676_v58  ;;  %v7032_v55 = vld [vmem:[#allocation2 + $0x368] ss:$16 sps:$4 sm:$0xff]  }
  0xa1   :  { %1848 = vmatprep.mubr.bf16.mxu1 %v7684_v61 }
  0xa2   :  { %1862 = vmatpush1.bf16.msra.mxu0 %v6963_v56  ;;  %v7037_v56 = vld [vmem:[#allocation2 + $0x14c] ss:$16 sps:$4 sm:$0xff]  }
  0xa3   :  { %1915 = vmatpush1.bf16.msra.mxu1 %v6966_v57  ;;  %1863 = vmatprep.subr.bf16.mxu0 %v6971_v62  ;;  %v7040_v57 = vld [vmem:[#allocation2 + $0x34c] ss:$16 sps:$4 sm:$0xff]  }
  0xa4   :  { %1916 = vmatprep.subr.bf16.mxu1 %v6974_v3  ;;  %v7043_v62 = vld [vmem:[#allocation2 + $0x12c] ss:$16 sps:$4 sm:$0xff]   ;;  %v7044_v3 = vld [vmem:[#allocation2 + $0x328] ss:$16 sps:$4 sm:$0xff]  }
  0xa5   :  { %1796 = vmatmul.mubr.bf16.gmra.mxu0 %v7696_v4 }
  0xa6   :  { %1849 = vmatmul.mubr.bf16.gmra.mxu1 %v7698_v7  ;;  %1864 = vmatpush1.bf16.msra.mxu0 %v6969_v5  ;;  %v7049_v5 = vld [vmem:[#allocation2 + $0x10c] ss:$16 sps:$4 sm:$0xff]  }
  0xa7   :  { %1917 = vmatpush1.bf16.msra.mxu1 %v6972_v6  ;;  %1865 = vmatprep.subr.bf16.mxu0 %v6977_v8  ;;  %v7052_v6 = vld [vmem:[#allocation2 + $0x30c] ss:$16 sps:$4 sm:$0xff]   ;;  %v7047_v8 = vld [vmem:[#allocation2 + $0x108] ss:$16 sps:$4 sm:$0xff]  }
  0xa8   :  { %1918 = vmatprep.subr.bf16.mxu1 %v6980_v9  ;;  %1891 = vmatprep.mubr.bf16.mxu0 %v7570_v53  ;;  %v6996_v53 = vld [vmem:[#allocation2 + $0x228] ss:$16 sps:$4 sm:$0xff]  }
  0xa9   :  { %1944 = vmatprep.mubr.bf16.mxu1 %v7572_v54  ;;  %v7001_v54 = vld [vmem:[#allocation2 + $0xc] ss:$16 sps:$4 sm:$0xff]   ;;  %v7050_v9 = vld [vmem:[#allocation2 + $0x308] ss:$16 sps:$4 sm:$0xff]  }
  0xaa   :  { %1866 = vmatpush1.bf16.msra.mxu0 %v6975_v10  ;;  %v7055_v10 = vld [vmem:[#allocation2 + $0x4ec] ss:$16 sps:$4 sm:$0xff]  }
  0xab   :  { %1919 = vmatpush1.bf16.msra.mxu1 %v6978_v11  ;;  %1867 = vmatprep.subr.bf16.mxu0 %v6983_v14  ;;  %v7058_v11 = vld [vmem:[#allocation2 + $0x6ec] ss:$16 sps:$4 sm:$0xff]   ;;  %v7053_v14 = vld [vmem:[#allocation2 + $0x4e8] ss:$16 sps:$4 sm:$0xff]  }
  0xac   :  { %1920 = vmatprep.subr.bf16.mxu1 %v6986_v15  ;;  %v7056_v15 = vld [vmem:[#allocation2 + $0x6e8] ss:$16 sps:$4 sm:$0xff]  }
  0xae   :  { %1868 = vmatpush1.bf16.msra.mxu0 %v6981_v16  ;;  %v7061_v16 = vld [vmem:[#allocation2 + $0x4cc] ss:$16 sps:$4 sm:$0xff]  }
  0xaf   :  { %1921 = vmatpush1.bf16.msra.mxu1 %v6984_v17  ;;  %1869 = vmatprep.subr.bf16.mxu0 %v6989_v18  ;;  %v7064_v17 = vld [vmem:[#allocation2 + $0x6cc] ss:$16 sps:$4 sm:$0xff]   ;;  %v7059_v18 = vld [vmem:[#allocation2 + $0x4c8] ss:$16 sps:$4 sm:$0xff]  }
  0xb0   :  { %1922 = vmatprep.subr.bf16.mxu1 %v6992_v19  ;;  %v7062_v19 = vld [vmem:[#allocation2 + $0x6c8] ss:$16 sps:$4 sm:$0xff]  }
  0xb2   :  { %1870 = vmatpush1.bf16.msra.mxu0 %v6987_v20  ;;  %v7067_v20 = vld [vmem:[#allocation2 + $0x4ac] ss:$16 sps:$4 sm:$0xff]  }
  0xb3   :  { %1923 = vmatpush1.bf16.msra.mxu1 %v6990_v21  ;;  %1871 = vmatprep.subr.bf16.mxu0 %v6995_v22  ;;  %v7070_v21 = vld [vmem:[#allocation2 + $0x6ac] ss:$16 sps:$4 sm:$0xff]   ;;  %v7065_v22 = vld [vmem:[#allocation2 + $0x4a8] ss:$16 sps:$4 sm:$0xff]  }
  0xb4   :  { %1924 = vmatprep.subr.bf16.mxu1 %v6998_v23  ;;  %v7068_v23 = vld [vmem:[#allocation2 + $0x6a8] ss:$16 sps:$4 sm:$0xff]  }
  0xb6   :  { %1872 = vmatpush1.bf16.msra.mxu0 %v6993_v24  ;;  %v7071_v24 = vld [vmem:[#allocation2 + $0x488] ss:$16 sps:$4 sm:$0xff]  }
  0xb7   :  { %1925 = vmatpush1.bf16.msra.mxu1 %v6996_v53  ;;  %1873 = vmatprep.subr.bf16.mxu0 %v7001_v54  ;;  %v7074_v53 = vld [vmem:[#allocation2 + $0x688] ss:$16 sps:$4 sm:$0xff]  }
  0xb8   :  { %1926 = vmatprep.subr.bf16.mxu1 %v7004_v25  ;;  %v7077_v54 = vld [vmem:[#allocation2 + $0x468] ss:$16 sps:$4 sm:$0xff]  }
  0xb9   :  { %v7080_v25 = vld [vmem:[#allocation2 + $0x668] ss:$16 sps:$4 sm:$0xff]  }
  0xba   :  { %1874 = vmatpush1.bf16.msra.mxu0 %v6999_v26  ;;  %v7083_v26 = vld [vmem:[#allocation2 + $0x448] ss:$16 sps:$4 sm:$0xff]  }
  0xbb   :  { %1927 = vmatpush1.bf16.msra.mxu1 %v7002_v27  ;;  %1875 = vmatprep.subr.bf16.mxu0 %v7007_v28  ;;  %v7086_v27 = vld [vmem:[#allocation2 + $0x648] ss:$16 sps:$4 sm:$0xff]   ;;  %v7091_v28 = vld [vmem:[#allocation2 + $0x42c] ss:$16 sps:$4 sm:$0xff]  }
  0xbc   :  { %1928 = vmatprep.subr.bf16.mxu1 %v7010_v29  ;;  %v7094_v29 = vld [vmem:[#allocation2 + $0x62c] ss:$16 sps:$4 sm:$0xff]  }
  0xbe   :  { %1876 = vmatpush2.bf16.msra.mxu0 %v7005_v30  ;;  %v7097_v30 = vld [vmem:[#allocation2 + $0x40c] ss:$16 sps:$4 sm:$0xff]  }
  0xbf   :  { %1929 = vmatpush2.bf16.msra.mxu1 %v7008_v31  ;;  %1877 = vmatprep.subr.bf16.mxu0 %v7013_v32  ;;  %v7100_v31 = vld [vmem:[#allocation2 + $0x60c] ss:$16 sps:$4 sm:$0xff]   ;;  %v7095_v32 = vld [vmem:[#allocation2 + $0x408] ss:$16 sps:$4 sm:$0xff]  }
  0xc0   :  { %1930 = vmatprep.subr.bf16.mxu1 %v7016_v33  ;;  %v7098_v33 = vld [vmem:[#allocation2 + $0x608] ss:$16 sps:$4 sm:$0xff]  }
  0xc2   :  { %1878 = vmatpush2.bf16.msra.mxu0 %v7011_v34  ;;  %v7103_v34 = vld [vmem:[#allocation2 + $0x5ec] ss:$16 sps:$4 sm:$0xff]  }
  0xc3   :  { %1931 = vmatpush2.bf16.msra.mxu1 %v7014_v35  ;;  %1879 = vmatprep.subr.bf16.mxu0 %v7019_v36  ;;  %v7106_v35 = vld [vmem:[#allocation2 + $0x7ec] ss:$16 sps:$4 sm:$0xff]   ;;  %v7101_v36 = vld [vmem:[#allocation2 + $0x5e8] ss:$16 sps:$4 sm:$0xff]  }
  0xc4   :  { %1932 = vmatprep.subr.bf16.mxu1 %v7022_v38  ;;  %v7104_v38 = vld [vmem:[#allocation2 + $0x7e8] ss:$16 sps:$4 sm:$0xff]  }
  0xc6   :  { %1880 = vmatpush2.bf16.msra.mxu0 %v7017_v39  ;;  %v7109_v39 = vld [vmem:[#allocation2 + $0x5cc] ss:$16 sps:$4 sm:$0xff]  }
  0xc7   :  { %1933 = vmatpush2.bf16.msra.mxu1 %v7020_v40  ;;  %1881 = vmatprep.subr.bf16.mxu0 %v7025_v43  ;;  %v7112_v40 = vld [vmem:[#allocation2 + $0x7cc] ss:$16 sps:$4 sm:$0xff]   ;;  %v7107_v43 = vld [vmem:[#allocation2 + $0x5c8] ss:$16 sps:$4 sm:$0xff]  }
  0xc8   :  { %1934 = vmatprep.subr.bf16.mxu1 %v7028_v44  ;;  %v7110_v44 = vld [vmem:[#allocation2 + $0x7c8] ss:$16 sps:$4 sm:$0xff]  }
  0xca   :  { %1882 = vmatpush2.bf16.msra.mxu0 %v7023_v45  ;;  %v7115_v45 = vld [vmem:[#allocation2 + $0x5ac] ss:$16 sps:$4 sm:$0xff]  }
  0xcb   :  { %1935 = vmatpush2.bf16.msra.mxu1 %v7026_v46  ;;  %1883 = vmatprep.subr.bf16.mxu0 %v7031_v50  ;;  %v7118_v46 = vld [vmem:[#allocation2 + $0x7ac] ss:$16 sps:$4 sm:$0xff]   ;;  %v7113_v50 = vld [vmem:[#allocation2 + $0x5a8] ss:$16 sps:$4 sm:$0xff]  }
  0xcc   :  { %1936 = vmatprep.subr.bf16.mxu1 %v7034_v51  ;;  %v7116_v51 = vld [vmem:[#allocation2 + $0x7a8] ss:$16 sps:$4 sm:$0xff]  }
  0xce   :  { %1884 = vmatpush2.bf16.msra.mxu0 %v7029_v52  ;;  %v7121_v52 = vld [vmem:[#allocation2 + $0x58c] ss:$16 sps:$4 sm:$0xff]  }
  0xcf   :  { %1937 = vmatpush2.bf16.msra.mxu1 %v7032_v55  ;;  %1885 = vmatprep.subr.bf16.mxu0 %v7037_v56  ;;  %v7124_v55 = vld [vmem:[#allocation2 + $0x78c] ss:$16 sps:$4 sm:$0xff]   ;;  %v7119_v56 = vld [vmem:[#allocation2 + $0x588] ss:$16 sps:$4 sm:$0xff]  }
  0xd0   :  { %1938 = vmatprep.subr.bf16.mxu1 %v7040_v57  ;;  %v7122_v57 = vld [vmem:[#allocation2 + $0x788] ss:$16 sps:$4 sm:$0xff]  }
  0xd2   :  { %1886 = vmatpush2.bf16.msra.mxu0 %v7035_v59  ;;  %v7127_v59 = vld [vmem:[#allocation2 + $0x56c] ss:$16 sps:$4 sm:$0xff]  }
  0xd3   :  { %1939 = vmatpush2.bf16.msra.mxu1 %v7038_v60  ;;  %1887 = vmatprep.subr.bf16.mxu0 %v7043_v62  ;;  %v7130_v60 = vld [vmem:[#allocation2 + $0x76c] ss:$16 sps:$4 sm:$0xff]   ;;  %v7125_v62 = vld [vmem:[#allocation2 + $0x568] ss:$16 sps:$4 sm:$0xff]  }
  0xd4   :  { %1940 = vmatprep.subr.bf16.mxu1 %v7046_v1  ;;  %v7128_v1 = vld [vmem:[#allocation2 + $0x768] ss:$16 sps:$4 sm:$0xff]  }
  0xd6   :  { %1888 = vmatpush2.bf16.msra.mxu0 %v7041_v2  ;;  %v7133_v2 = vld [vmem:[#allocation2 + $0x54c] ss:$16 sps:$4 sm:$0xff]  }
  0xd7   :  { %1941 = vmatpush2.bf16.msra.mxu1 %v7044_v3  ;;  %1889 = vmatprep.subr.bf16.mxu0 %v7049_v5  ;;  %v7136_v3 = vld [vmem:[#allocation2 + $0x74c] ss:$16 sps:$4 sm:$0xff]   ;;  %v7131_v5 = vld [vmem:[#allocation2 + $0x548] ss:$16 sps:$4 sm:$0xff]  }
  0xd8   :  { %1942 = vmatprep.subr.bf16.mxu1 %v7052_v6  ;;  %v7134_v6 = vld [vmem:[#allocation2 + $0x748] ss:$16 sps:$4 sm:$0xff]  }
  0xda   :  { %1890 = vmatpush2.bf16.msra.mxu0 %v7047_v8  ;;  %v7139_v8 = vld [vmem:[#allocation2 + $0x52c] ss:$16 sps:$4 sm:$0xff]  }
  0xdb   :  { %1943 = vmatpush2.bf16.msra.mxu1 %v7050_v9  ;;  %1965 = vmatprep.subr.bf16.mxu0 %v7055_v10  ;;  %v7142_v9 = vld [vmem:[#allocation2 + $0x72c] ss:$16 sps:$4 sm:$0xff]   ;;  %v7137_v10 = vld [vmem:[#allocation2 + $0x528] ss:$16 sps:$4 sm:$0xff]  }
  0xdc   :  { %2018 = vmatprep.subr.bf16.mxu1 %v7058_v11  ;;  %v7140_v11 = vld [vmem:[#allocation2 + $0x728] ss:$16 sps:$4 sm:$0xff]  }
  0xdd   :  { %1892 = vmatmul.mubr.bf16.vlgmr.msra.gmra.mxu0 %v7588_v12  ;;  %v7073_v12 = vld [vmem:[#allocation2 + $0x48c] ss:$16 sps:$4 sm:$0xff]  }
  0xde   :  { %1945 = vmatmul.mubr.bf16.vlgmr.msra.gmra.mxu1 %v7590_v13  ;;  %1966 = vmatpush1.bf16.msra.mxu0 %v7053_v14  ;;  %v7076_v13 = vld [vmem:[#allocation2 + $0x68c] ss:$16 sps:$4 sm:$0xff]  }
  0xdf   :  { %2019 = vmatpush1.bf16.msra.mxu1 %v7056_v15  ;;  %1967 = vmatprep.subr.bf16.mxu0 %v7061_v16  ;;  %v7145_v14 = vld [vmem:[#allocation2 + $0x50c] ss:$16 sps:$4 sm:$0xff]   ;;  %v7143_v16 = vld [vmem:[#allocation2 + $0x508] ss:$16 sps:$4 sm:$0xff]  }
  0xe0   :  { %2020 = vmatprep.subr.bf16.mxu1 %v7064_v17  ;;  %1901 = vmatprep.mubr.bf16.mxu0 %v7603_v37  ;;  %v7079_v37 = vld [vmem:[#allocation2 + $0x46c] ss:$16 sps:$4 sm:$0xff]   ;;  %v7146_v17 = vld [vmem:[#allocation2 + $0x708] ss:$16 sps:$4 sm:$0xff]  }
  0xe1   :  { %1954 = vmatprep.mubr.bf16.mxu1 %v7614_v41  ;;  %v7082_v41 = vld [vmem:[#allocation2 + $0x66c] ss:$16 sps:$4 sm:$0xff]  }
  0xe2   :  { %1968 = vmatpush1.bf16.msra.mxu0 %v7059_v18  ;;  %v7148_v15 = vld [vmem:[#allocation2 + $0x70c] ss:$16 sps:$4 sm:$0xff]  }
  0xe3   :  { %2021 = vmatpush1.bf16.msra.mxu1 %v7062_v19  ;;  %1969 = vmatprep.subr.bf16.mxu0 %v7067_v20 }
  0xe4   :  { %2022 = vmatprep.subr.bf16.mxu1 %v7070_v21 }
  0xe5   :  { %1902 = vmatmul.mubr.bf16.gmra.mxu0 %v7616_v42  ;;  %v7085_v42 = vld [vmem:[#allocation2 + $0x44c] ss:$16 sps:$4 sm:$0xff]  }
  0xe6   :  { %1955 = vmatmul.mubr.bf16.gmra.mxu1 %v7625_v47  ;;  %1970 = vmatpush1.bf16.msra.mxu0 %v7065_v22  ;;  %v7088_v47 = vld [vmem:[#allocation2 + $0x64c] ss:$16 sps:$4 sm:$0xff]  }
  0xe7   :  { %2023 = vmatpush1.bf16.msra.mxu1 %v7068_v23  ;;  %1971 = vmatprep.subr.bf16.mxu0 %v7073_v12 }
  0xe8   :  { %2024 = vmatprep.subr.bf16.mxu1 %v7076_v13  ;;  %1997 = vmatprep.mubr.bf16.mxu0 %v7642_v63  ;;  %v7089_v63 = vld [vmem:[#allocation2 + $0x428] ss:$16 sps:$4 sm:$0xff]  }
  0xe9   :  { %2050 = vmatprep.mubr.bf16.mxu1 %v7644_v0  ;;  %v7092_v0 = vld [vmem:[#allocation2 + $0x628] ss:$16 sps:$4 sm:$0xff]  }
  0xea   :  { %1972 = vmatpush1.bf16.msra.mxu0 %v7071_v24 }
  0xeb   :  { %2025 = vmatpush1.bf16.msra.mxu1 %v7074_v53  ;;  %1973 = vmatprep.subr.bf16.mxu0 %v7079_v37 }
  0xec   :  { %2026 = vmatprep.subr.bf16.mxu1 %v7082_v41 }
  0xee   :  { %1974 = vmatpush1.bf16.msra.mxu0 %v7077_v54 }
  0xef   :  { %2027 = vmatpush1.bf16.msra.mxu1 %v7080_v25  ;;  %1975 = vmatprep.subr.bf16.mxu0 %v7085_v42 }
  0xf0   :  { %2028 = vmatprep.subr.bf16.mxu1 %v7088_v47 }
  0xf2   :  { %1976 = vmatpush1.bf16.msra.mxu0 %v7083_v26 }
  0xf3   :  { %2029 = vmatpush1.bf16.msra.mxu1 %v7086_v27  ;;  %1977 = vmatprep.subr.bf16.mxu0 %v7091_v28 }
  0xf4   :  { %2030 = vmatprep.subr.bf16.mxu1 %v7094_v29 }
  0xf6   :  { %1978 = vmatpush1.bf16.msra.mxu0 %v7089_v63 }
  0xf7   :  { %2031 = vmatpush1.bf16.msra.mxu1 %v7092_v0  ;;  %1979 = vmatprep.subr.bf16.mxu0 %v7097_v30 }
  0xf8   :  { %2032 = vmatprep.subr.bf16.mxu1 %v7100_v31 }
  0xfa   :  { %1980 = vmatpush1.bf16.msra.mxu0 %v7095_v32 }
  0xfb   :  { %2033 = vmatpush1.bf16.msra.mxu1 %v7098_v33  ;;  %1981 = vmatprep.subr.bf16.mxu0 %v7103_v34 }
  0xfc   :  { %2034 = vmatprep.subr.bf16.mxu1 %v7106_v35 }
  0xfe   :  { %1982 = vmatpush2.bf16.msra.mxu0 %v7101_v36 }
  0xff   :  { %2035 = vmatpush2.bf16.msra.mxu1 %v7104_v38  ;;  %1983 = vmatprep.subr.bf16.mxu0 %v7109_v39 }
 0x100   :  { %2036 = vmatprep.subr.bf16.mxu1 %v7112_v40 }
 0x102   :  { %1984 = vmatpush2.bf16.msra.mxu0 %v7107_v43 }
 0x103   :  { %2037 = vmatpush2.bf16.msra.mxu1 %v7110_v44  ;;  %1985 = vmatprep.subr.bf16.mxu0 %v7115_v45 }
 0x104   :  { %2038 = vmatprep.subr.bf16.mxu1 %v7118_v46 }
 0x106   :  { %1986 = vmatpush2.bf16.msra.mxu0 %v7113_v50 }
 0x107   :  { %2039 = vmatpush2.bf16.msra.mxu1 %v7116_v51  ;;  %1987 = vmatprep.subr.bf16.mxu0 %v7121_v52 }
 0x108   :  { %2040 = vmatprep.subr.bf16.mxu1 %v7124_v55 }
 0x10a   :  { %1988 = vmatpush2.bf16.msra.mxu0 %v7119_v56 }
 0x10b   :  { %2041 = vmatpush2.bf16.msra.mxu1 %v7122_v57  ;;  %1989 = vmatprep.subr.bf16.mxu0 %v7127_v59 }
 0x10c   :  { %2042 = vmatprep.subr.bf16.mxu1 %v7130_v60 }
 0x10e   :  { %1990 = vmatpush2.bf16.msra.mxu0 %v7125_v62 }
 0x10f   :  { %2043 = vmatpush2.bf16.msra.mxu1 %v7128_v1  ;;  %1991 = vmatprep.subr.bf16.mxu0 %v7133_v2 }
 0x110   :  { %2044 = vmatprep.subr.bf16.mxu1 %v7136_v3 }
 0x112   :  { %1992 = vmatpush2.bf16.msra.mxu0 %v7131_v5 }
 0x113   :  { %2045 = vmatpush2.bf16.msra.mxu1 %v7134_v6  ;;  %1993 = vmatprep.subr.bf16.mxu0 %v7139_v8 }
 0x114   :  { %2046 = vmatprep.subr.bf16.mxu1 %v7142_v9 }
 0x116   :  { %1994 = vmatpush2.bf16.msra.mxu0 %v7137_v10 }
 0x117   :  { %2047 = vmatpush2.bf16.msra.mxu1 %v7140_v11  ;;  %1995 = vmatprep.subr.bf16.mxu0 %v7145_v14 }
 0x118   :  { %2048 = vmatprep.subr.bf16.mxu1 %v7148_v15 }
 0x11a   :  { %1996 = vmatpush2.bf16.msra.mxu0 %v7143_v16 }
 0x11b   :  { %2049 = vmatpush2.bf16.msra.mxu1 %v7146_v17 }
 0x11d   :  { %1998 = vmatmul.mubr.bf16.vlgmr.msra.gmra.mxu0 %v7666_v48  ;;  %v1681_v18 = vpop.f32.mrf.mxu0 }
 0x11e   :  { %2051 = vmatmul.mubr.bf16.vlgmr.msra.gmra.mxu1 %v7668_v49  ;;  %2007 = vmatprep.mubr.bf16.mxu0 %v7676_v58  ;;  %v1734_v19 = vpop.f32.mrf.mxu1 }
 0x11f   :  { %2060 = vmatprep.mubr.bf16.mxu1 %v7684_v61  ;;  %v1683_v20 = vpop.f32.mrf.mxu0  ;;  %v1735_v52 = vadd.f32 %v1734_v19, %v1681_v18 }
 0x120   :  { %v1736_v21 = vpop.f32.mrf.mxu1 }
 0x121   :  { %v1685_v22 = vpop.f32.mrf.mxu0  ;;  %v1737_v60 = vadd.f32 %v1736_v21, %v1683_v20 }
 0x122   :  { %v1738_v23 = vpop.f32.mrf.mxu1 }
 0x123   :  { %v1687_v12 = vpop.f32.mrf.mxu0  ;;  %v1739_v50 = vadd.f32 %v1738_v23, %v1685_v22 }
 0x124   :  { %v1740_v13 = vpop.f32.mrf.mxu1 }
 0x125   :  { %2008 = vmatmul.mubr.bf16.gmra.mxu0 %v7696_v4  ;;  %v1691_v24 = vpop.f32.mrf.mxu0  ;;  %v1741_v51 = vadd.f32 %v1740_v13, %v1687_v12 }
 0x126   :  { %2061 = vmatmul.mubr.bf16.gmra.mxu1 %v7698_v7  ;;  %v1744_v48 = vpop.f32.mrf.mxu1 }
 0x127   :  { %v1693_v53 = vpop.f32.mrf.mxu0  ;;  %v1745_v55 = vadd.f32 %v1744_v48, %v1691_v24 }
 0x128   :  { %v1746_v49 = vpop.f32.mrf.mxu1 }
 0x129   :  { %v1695_v37 = vpop.f32.mrf.mxu0  ;;  %v1747_v1 = vadd.f32 %v1746_v49, %v1693_v53 }
 0x12a   :  { %v1748_v58 = vpop.f32.mrf.mxu1 }
 0x12b   :  { %v1697_v41 = vpop.f32.mrf.mxu0  ;;  %v1749_v2 = vadd.f32 %v1748_v58, %v1695_v37 }
 0x12c   :  { %v1750_v61 = vpop.f32.mrf.mxu1 }
 0x12d   :  { %v1751_v8 = vadd.f32 %v1750_v61, %v1697_v41 }
 0x15d   :  { %v1787_v54 = vpop.f32.mrf.mxu0 }
 0x15e   :  { %v1840_v4 = vpop.f32.mrf.mxu1  ;;  %v1788_v3 = vadd.f32 %v1787_v54, %v1735_v52 }
 0x15f   :  { %v1789_v25 = vpop.f32.mrf.mxu0 }
 0x160   :  { %v1842_v7 = vpop.f32.mrf.mxu1  ;;  %v1790_v6 = vadd.f32 %v1789_v25, %v1737_v60  ;;  %v7734_v17 = vadd.f32 %v1840_v4, %v1788_v3 }
 0x161   :  { %v1791_v42 = vpop.f32.mrf.mxu0 }
 0x162   :  { %v1844_v47 = vpop.f32.mrf.mxu1  ;;  %v1792_v56 = vadd.f32 %v1791_v42, %v1739_v50  ;;  %v7738_v20 = vadd.f32 %v1842_v7, %v1790_v6  ;;  %v2109_v41 = vmul.f32 %v7734_v17, %v7734_v17 }
 0x163   :  { %v1793_v26 = vpop.f32.mrf.mxu0 }
 0x164   :  { %v1846_v27 = vpop.f32.mrf.mxu1  ;;  %v1794_v62 = vadd.f32 %v1793_v26, %v1741_v51  ;;  %v7726_v9 = vadd.f32 %v1844_v47, %v1792_v56  ;;  %v2110_v61 = vmul.f32 %v7738_v20, %v7738_v20 }
 0x165   :  { %v1797_v28 = vpop.f32.mrf.mxu0 }
 0x166   :  { %v1850_v29 = vpop.f32.mrf.mxu1  ;;  %v1798_v5 = vadd.f32 %v1797_v28, %v1745_v55  ;;  %v7732_v16 = vadd.f32 %v1846_v27, %v1794_v62  ;;  %v2073_v21 = vadd.f32 %v7726_v9, %v7734_v17  ;;  %v2113_v24 = vmul.f32 %v7726_v9, %v7726_v9 }
 0x167   :  { %v1799_v63 = vpop.f32.mrf.mxu0 }
 0x168   :  { %v1852_v0 = vpop.f32.mrf.mxu1  ;;  %v1800_v10 = vadd.f32 %v1799_v63, %v1747_v1  ;;  %v7736_v18 = vadd.f32 %v1850_v29, %v1798_v5  ;;  %v2114_v48 = vmul.f32 %v7732_v16, %v7732_v16  ;;  %v2082_v4 = vadd.f32 %v7732_v16, %v7738_v20 }
 0x169   :  { %v1801_v30 = vpop.f32.mrf.mxu0  ;;  %v2125_v27 = vadd.f32 %v2113_v24, %v2109_v41 }
 0x16a   :  { %v1854_v31 = vpop.f32.mrf.mxu1  ;;  %v1802_v11 = vadd.f32 %v1801_v30, %v1749_v2  ;;  %v7742_v22 = vadd.f32 %v1852_v0, %v1800_v10  ;;  %v2074_v53 = vadd.f32 %v2073_v21, %v7736_v18  ;;  %v2117_v54 = vmul.f32 %v7736_v18, %v7736_v18 }
 0x16b   :  { %v1803_v32 = vpop.f32.mrf.mxu0  ;;  %v2134_v28 = vadd.f32 %v2114_v48, %v2110_v61 }
 0x16c   :  { %v1856_v33 = vpop.f32.mrf.mxu1  ;;  %v1804_v19 = vadd.f32 %v1803_v32, %v1751_v8  ;;  %v7744_v23 = vadd.f32 %v1854_v31, %v1802_v11  ;;  %v2118_v25 = vmul.f32 %v7742_v22, %v7742_v22  ;;  %v2083_v0 = vadd.f32 %v2082_v4, %v7742_v22 }
 0x16d   :  { %v2126_v51 = vadd.f32 %v2125_v27, %v2117_v54 }
 0x16e   :  { %v7751_v49 = vadd.f32 %v1856_v33, %v1804_v19  ;;  %v2075_v7 = vadd.f32 %v2074_v53, %v7744_v23  ;;  %v2121_v29 = vmul.f32 %v7744_v23, %v7744_v23 }
 0x170   :  { %v2122_v30 = vmul.f32 %v7751_v49, %v7751_v49  ;;  %v2076_v55 = vrot.slane %v2075_v7, 4  ;;  %v2084_v56 = vadd.f32 %v2083_v0, %v7751_v49 }
 0x172   :  { %v2085_v8 = vrot.slane %v2084_v56, 4  ;;  %v2077_v21 = vadd.f32 %v2076_v55, %v2075_v7 }
 0x19d   :  { %v1893_v34 = vpop.f32.mrf.mxu0 }
 0x19e   :  { %v1946_v35 = vpop.f32.mrf.mxu1 }
 0x19f   :  { %v1895_v36 = vpop.f32.mrf.mxu0  ;;  %v1947_v42 = vadd.f32 %v1946_v35, %v1893_v34  ;;  %v2135_v35 = vadd.f32 %v2134_v28, %v2118_v25 }
 0x1a0   :  { %v1948_v38 = vpop.f32.mrf.mxu1 }
 0x1a1   :  { %v1897_v39 = vpop.f32.mrf.mxu0  ;;  %v1949_v31 = vadd.f32 %v1948_v38, %v1895_v36  ;;  %v2136_v38 = vadd.f32 %v2135_v35, %v2122_v30 }
 0x1a2   :  { %v1950_v40 = vpop.f32.mrf.mxu1 }
 0x1a3   :  { %v1899_v43 = vpop.f32.mrf.mxu0  ;;  %v1951_v63 = vadd.f32 %v1950_v40, %v1897_v39  ;;  %v2127_v39 = vadd.f32 %v2126_v51, %v2121_v29 }
 0x1a4   :  { %v1952_v44 = vpop.f32.mrf.mxu1 }
 0x1a5   :  { %v7718_v45 = vpop.f32.mrf.mxu0  ;;  %v1953_v52 = vadd.f32 %v1952_v44, %v1899_v43  ;;  %v2128_v24 = vrot.slane %v2127_v39, 4 }
 0x1a6   :  { %v7720_v46 = vpop.f32.mrf.mxu1 }
 0x1a7   :  { %v7722_v57 = vpop.f32.mrf.mxu0  ;;  %v1957_v40 = vadd.f32 %v7720_v46, %v7718_v45 }
 0x1a8   :  { %v7724_v59 = vpop.f32.mrf.mxu1 }
 0x1a9   :  { %v7728_v14 = vpop.f32.mrf.mxu0  ;;  %v1959_v10 = vadd.f32 %v7724_v59, %v7722_v57 }
 0x1aa   :  { %v7730_v15 = vpop.f32.mrf.mxu1 }
 0x1ab   :  { %v1909_v12 = vpop.f32.mrf.mxu0  ;;  %v1961_v48 = vadd.f32 %v7730_v15, %v7728_v14  ;;  %v2086_v15 = vadd.f32 %v2085_v8, %v2084_v56 }
 0x1ac   :  { %v1962_v13 = vpop.f32.mrf.mxu1 }
 0x1ad   :  { %v1963_v54 = vadd.f32 %v1962_v13, %v1909_v12  ;;  %v2087_v35 = vrot.slane %v2086_v15, 2 }
 0x1dd   :  { %v1999_v37 = vpop.f32.mrf.mxu0 }
 0x1de   :  { %v2052_v58 = vpop.f32.mrf.mxu1  ;;  %v2000_v32 = vadd.f32 %v1999_v37, %v1947_v42  ;;  %v2137_v37 = vrot.slane %v2136_v38, 4 }
 0x1df   :  { %v2001_v47 = vpop.f32.mrf.mxu0 }
 0x1e0   :  { %v2054_v26 = vpop.f32.mrf.mxu1  ;;  %v2002_v60 = vadd.f32 %v2001_v47, %v1949_v31  ;;  %v7774_v3 = vadd.f32 %v2052_v58, %v2000_v32  ;;  %v2138_v29 = vadd.f32 %v2137_v37, %v2136_v38 }
 0x1e1   :  { %v2003_v33 = vpop.f32.mrf.mxu0 }
 0x1e2   :  { %v2056_v50 = vpop.f32.mrf.mxu1  ;;  %v2004_v34 = vadd.f32 %v2003_v33, %v1951_v63  ;;  %v7780_v11 = vadd.f32 %v2054_v26, %v2002_v60  ;;  %v2111_v58 = vmul.f32 %v7774_v3, %v7774_v3 }
 0x1e3   :  { %v2005_v62 = vpop.f32.mrf.mxu0 }
 0x1e4   :  { %v2058_v1 = vpop.f32.mrf.mxu1  ;;  %v7772_v2 = vadd.f32 %v2056_v50, %v2004_v34  ;;  %v2006_v36 = vadd.f32 %v2005_v62, %v1953_v52  ;;  %v2112_v7 = vmul.f32 %v7780_v11, %v7780_v11  ;;  %v2078_v52 = vrot.slane %v2077_v21, 2 }
 0x1e5   :  { %v2009_v5 = vpop.f32.mrf.mxu0  ;;  %v2129_v34 = vadd.f32 %v2128_v24, %v2127_v39 }
 0x1e6   :  { %v2062_v43 = vpop.f32.mrf.mxu1  ;;  %v7776_v44 = vadd.f32 %v2058_v1, %v2006_v36  ;;  %v2010_v6 = vadd.f32 %v2009_v5, %v1957_v40  ;;  %v2115_v45 = vmul.f32 %v7772_v2, %v7772_v2  ;;  %v2091_v4 = vadd.f32 %v7772_v2, %v7774_v3 }
 0x1e7   :  { %v2011_v46 = vpop.f32.mrf.mxu0  ;;  %v2139_v40 = vrot.slane %v2138_v29, 2  ;;  %v2079_v8 = vadd.f32 %v2078_v52, %v2077_v21 }
 0x1e8   :  { %v2064_v19 = vpop.f32.mrf.mxu1  ;;  %v7786_v53 = vadd.f32 %v2062_v43, %v2010_v6  ;;  %v2116_v57 = vmul.f32 %v7776_v44, %v7776_v44  ;;  %v2012_v59 = vadd.f32 %v2011_v46, %v1959_v10  ;;  %v2143_v42 = vadd.f32 %v2115_v45, %v2111_v58 }
 0x1e9   :  { %v2013_v41 = vpop.f32.mrf.mxu0  ;;  %v2100_v27 = vadd.f32 %v7776_v44, %v7780_v11  ;;  %v2130_v6 = vrot.slane %v2129_v34, 2  ;;  %v2088_v10 = vadd.f32 %v2087_v35, %v2086_v15  ;;  %v2140_v24 = vadd.f32 %v2139_v40, %v2138_v29 }
 0x1ea   :  { %v2066_v61 = vpop.f32.mrf.mxu1  ;;  %v2119_v25 = vmul.f32 %v7786_v53, %v7786_v53  ;;  %v2014_v14 = vadd.f32 %v2013_v41, %v1961_v48  ;;  %v7798_v47 = vadd.f32 %v2064_v19, %v2012_v59  ;;  %v2092_v12 = vadd.f32 %v2091_v4, %v7786_v53 }
 0x1eb   :  { %v2015_v26 = vpop.f32.mrf.mxu0  ;;  %v2152_v63 = vadd.f32 %v2116_v57, %v2112_v7  ;;  %v2080_v59 = vrot.slane %v2079_v8, 1  ;;  %v2089_v41 = vrot.slane %v2088_v10, 1  ;;  %v2141_v7 = vrot.slane %v2140_v24, 1 }
 0x1ec   :  { %v7803_v13 = vadd.f32 %v2066_v61, %v2014_v14  ;;  %v2016_v28 = vadd.f32 %v2015_v26, %v1963_v54  ;;  %v2144_v0 = vadd.f32 %v2143_v42, %v2119_v25  ;;  %v2120_v30 = vmul.f32 %v7798_v47, %v7798_v47  ;;  %v2068_v31 = vpop.f32.mrf.mxu1 }
 0x1ed   :  { %v2101_v32 = vadd.f32 %v2100_v27, %v7798_v47  ;;  %v2131_v61 = vadd.f32 %v2130_v6, %v2129_v34  ;;  %v2081_v27 = vadd.f32 %v2080_v59, %v2079_v8 }
 0x1ee   :  { %v2093_v33 = vadd.f32 %v2092_v12, %v7803_v13  ;;  %v2123_v50 = vmul.f32 %v7803_v13, %v7803_v13  ;;  %v7811_v51 = vadd.f32 %v2068_v31, %v2016_v28  ;;  %v2153_v55 = vadd.f32 %v2152_v63, %v2120_v30 }
 0x1ef   :  { %v2090_v12 = vadd.f32 %v2089_v41, %v2088_v10  ;;  %v2132_v29 = vrot.slane %v2131_v61, 1 }
 0x1f0   :  { %v2094_v56 = vrot.slane %v2093_v33, 4  ;;  %v2145_v60 = vadd.f32 %v2144_v0, %v2123_v50  ;;  %v2102_v62 = vadd.f32 %v2101_v32, %v7811_v51  ;;  %v2124_v1 = vmul.f32 %v7811_v51, %v7811_v51 }
 0x1f1   :  { %v2142_v0 = vadd.f32 %v2141_v7, %v2140_v24  ;;  %v2133_v52 = vadd.f32 %v2132_v29, %v2131_v61 }
 0x1f2   :  { %v2095_v36 = vadd.f32 %v2094_v56, %v2093_v33  ;;  %v2146_v38 = vrot.slane %v2145_v60, 4  ;;  %v2103_v5 = vrot.slane %v2102_v62, 4  ;;  %v2154_v43 = vadd.f32 %v2153_v55, %v2124_v1 }
 0x1f4   :  { %v2096_v45 = vrot.slane %v2095_v36, 2  ;;  %v2147_v46 = vadd.f32 %v2146_v38, %v2145_v60  ;;  %v2104_v39 = vadd.f32 %v2103_v5, %v2102_v62  ;;  %v2155_v19 = vrot.slane %v2154_v43, 4 }
 0x1f6   :  { %v2148_v48 = vrot.slane %v2147_v46, 2  ;;  %v2105_v37 = vrot.slane %v2104_v39, 2  ;;  %v2156_v58 = vadd.f32 %v2155_v19, %v2154_v43  ;;  %v2097_v57 = vadd.f32 %v2096_v45, %v2095_v36 }
 0x1f7   :  { %v7494_v19 = vmov 1966171168  }
 0x1f8   :  { %v2157_v54 = vrot.slane %v2156_v58, 2  ;;  %v2098_v4 = vrot.slane %v2097_v57, 1  ;;  %v2106_v25 = vadd.f32 %v2105_v37, %v2104_v39  ;;  %v2149_v14 = vadd.f32 %v2148_v48, %v2147_v46 }
 0x1f9   :  { %v2169_v39 = vlaneseq  ;;  %v2192_v24 = vunpack.c.l.s4 %v7494_v19 }
 0x1fa   :  { %v2099_v42 = vadd.f32 %v2098_v4, %v2097_v57  ;;  %v2107_v21 = vrot.slane %v2106_v25, 1  ;;  %v2150_v15 = vrot.slane %v2149_v14, 1  ;;  %v2158_v26 = vadd.f32 %v2157_v54, %v2156_v58  ;;  %v2071_v54 = vld [vmem:[%s10111_s2] sm:$0xf] }
 0x1fb   :  { %v2193_v48 = vunpack.c.0.s8 %v2192_v24  ;;  %v7821_v37 = vshrl.u32 %v2169_v39, 7 }
 0x1fc   :  { %v2108_v28 = vadd.f32 %v2107_v21, %v2106_v25  ;;  %v2159_v63 = vrot.slane %v2158_v26, 1  ;;  %v2161_v30 = vadd.f32 %v2099_v42, %v2081_v27  ;;  %v2151_v32 = vadd.f32 %v2150_v15, %v2149_v14 }
 0x1fd   :  { %v7824_v58 = vsub.s32 %v2193_v48, %v7821_v37  ;;  %v7831_v4 = vsub.s32 0, %v7821_v37  ;;  %v7834_v25 = vsub.s32 1, %v7821_v37  ;;  %v7837_v14 = vsub.s32 2, %v7821_v37 }
 0x1fe   :  { %v2162_v31 = vadd.f32 %v2108_v28, %v2090_v12  ;;  %v2160_v33 = vadd.f32 %v2159_v63, %v2158_v26  ;;  %v2163_v35 = vadd.f32 %v2151_v32, %v2133_v52  ;;  %v7840_v7 = vsub.s32 3, %v7821_v37  ;;  %v2072_v52 = vld [vmem:[%s10112_s3] sm:$0xf]  ;;  %s7495_s3 = smov 96  }
 0x1ff   :  { %10182 = vst [vmem:[#allocation8_spill] sm:$0xff] %v7824_v58  ;;  %10183 = vst [vmem:[#allocation9_spill] sm:$0xff] %v7831_v4  ;;  %vm3000_vm2 = vcmp.lt.s32.totalorder %v7821_v37, 1  ;;  %vm3053_vm3 = vcmp.lt.s32.totalorder %v7821_v37, 7 }
 0x200   :  { %v2165_v50 = vadd.f32 %v2162_v31, %v2161_v30  ;;  %v2164_v34 = vadd.f32 %v2160_v33, %v2142_v0  ;;  %10184 = vst [vmem:[#allocation10_spill] sm:$0xff] %v7834_v25  ;;  %10185 = vst [vmem:[#allocation11_spill] sm:$0xff] %v7837_v14 }
 0x201   :  { %10186 = vst [vmem:[#allocation12_spill] sm:$0xff] %v7840_v7 }
 0x202   :  { %2167 = vrot.lane.b32.xlu0 %v2165_v50, %s7493_s7  ;;  %v2166_v55 = vadd.f32 %v2164_v34, %v2163_v35 }
 0x206   :  { %2172 = vrot.lane.b32.xlu0 %v2166_v55, %s7493_s7 }
 0x274   :  { %v2168_v56 = vpop.permute.xlu0 %2167 }
 0x275   :  { %v2171_v60 = vadd.f32 %v2168_v56, %v2165_v50 }
 0x277   :  { %2175 = vrot.lane.b32.xlu1 %v2171_v60, %s7492_s24 }
 0x278   :  { %v2173_v62 = vpop.permute.xlu0 %2172 }
 0x279   :  { %v2174_v1 = vadd.f32 %v2173_v62, %v2166_v55 }
 0x27b   :  { %2179 = vrot.lane.b32.xlu1 %v2174_v1, %s7492_s24 }
 0x2e9   :  { %v2176_v40 = vpop.permute.xlu1 %2175 }
 0x2ea   :  { %v2178_v36 = vadd.f32 %v2176_v40, %v2171_v60 }
 0x2ec   :  { %v2182_v38 = vmul.f32 0.001953125, %v2178_v36 }
 0x2ed   :  { %v2180_v5 = vpop.permute.xlu1 %2179 }
 0x2ee   :  { %v2181_v43 = vadd.f32 %v2180_v5, %v2174_v1  ;;  %v2184_v6 = vmul.f32 %v2182_v38, %v2182_v38 }
 0x2f0   :  { %v2183_v8 = vmul.f32 0.001953125, %v2181_v43 }
 0x2f2   :  { %v2185_v10 = vsub.f32 %v2183_v8, %v2184_v6 }
 0x2f4   :  { %v2186_v45 = vmax.f32 %v2185_v10, 0.0 }
 0x2f6   :  { %v2187_v46 = vadd.f32 1e-05, %v2186_v45 }
 0x2f8   :  { %7149 = vrsqrt.f32 %v2187_v46 }
 0x305   :  { %v7150_v57 = vpop.eup %7149 }
 0x306   :  { %v2190_v59 = vcombine.low %v7150_v57, %v7150_v57 }
 0x308   :  { %v2197_v41 = vrot.slane %v2190_v59, %v7824_v58 }
 0x30a   :  { %v2198_v61 = vcombine.low %v2197_v41, %v2197_v41 }
 0x30c   :  { %v2205_v42 = vrot.slane %v2198_v61, %v7824_v58 }
 0x30e   :  { %v2207_v21 = vmul.f32 %v2205_v42, %v2071_v54 }
 0x310   :  { %v2212_v15 = vrot.slane %v2207_v21, %v7831_v4  ;;  %v2216_v26 = vrot.slane %v2207_v21, %v7834_v25  ;;  %v7846_v27 = vrot.slane %v2207_v21, %v7837_v14  ;;  %v7849_v12 = vrot.slane %v2207_v21, %v7840_v7 }
 0x312   :  { %v2229_v28 = vmul.f32 %v2212_v15, %v2182_v38  ;;  %v2230_v29 = vmul.f32 %v2216_v26, %v2182_v38  ;;  %v2231_v63 = vmul.f32 %v7846_v27, %v2182_v38  ;;  %v2232_v0 = vmul.f32 %v7849_v12, %v2182_v38 }
 0x313   :  { %v2275_v55 = vmul.f32 %v2212_v15, %v7744_v23  ;;  %v2263_v56 = vmul.f32 %v2212_v15, %v7734_v17  ;;  %v2276_v60 = vmul.f32 %v2216_v26, %v7751_v49  ;;  %v2264_v62 = vmul.f32 %v2216_v26, %v7738_v20 }
 0x314   :  { %v2237_v30 = vcombine.low %v2229_v28, %v2230_v29  ;;  %v2238_v31 = vcombine.low %v2231_v63, %v2232_v0  ;;  %v2277_v5 = vmul.f32 %v7846_v27, %v7803_v13  ;;  %v2265_v23 = vmul.f32 %v7846_v27, %v7774_v3 }
 0x315   :  { %v2278_v17 = vmul.f32 %v7849_v12, %v7811_v51  ;;  %v2266_v13 = vmul.f32 %v7849_v12, %v7780_v11  ;;  %v2268_v57 = vmul.f32 %v2216_v26, %v7732_v16  ;;  %v2267_v59 = vmul.f32 %v2212_v15, %v7726_v9 }
 0x316   :  { %v2245_v32 = vrot.slane %v2237_v30, %v7824_v58  ;;  %v2252_v33 = vrot.slane %v2238_v31, %v7824_v58  ;;  %v2270_v54 = vmul.f32 %v7849_v12, %v7776_v44  ;;  %v2269_v16 = vmul.f32 %v7846_v27, %v7772_v2 }
 0x317   :  { %v2272_v9 = vmul.f32 %v2216_v26, %v7742_v22  ;;  %v2271_v63 = vmul.f32 %v2212_v15, %v7736_v18  ;;  %v2274_v18 = vmul.f32 %v7849_v12, %v7798_v47  ;;  %v2273_v26 = vmul.f32 %v7846_v27, %v7786_v53 }
 0x318   :  { %v2253_v50 = vcombine.low %v2245_v32, %v2252_v33 }
 0x31a   :  { %v2260_v34 = vrot.slane %v2253_v50, %v7824_v58 }
 0x31c   :  { %v2262_v35 = vsub.f32 %v2072_v52, %v2260_v34 }
 0x31e   :  { %v2283_v1 = vrot.slane %v2262_v35, %v7831_v4  ;;  %v2287_v40 = vrot.slane %v2262_v35, %v7834_v25  ;;  %v2291_v36 = vrot.slane %v2262_v35, %v7837_v14  ;;  %v2295_v38 = vrot.slane %v2262_v35, %v7840_v7 }
 0x320   :  { %v7873_v49 = vadd.f32 %v2283_v1, %v2275_v55  ;;  %v7875_v20 = vadd.f32 %v2283_v1, %v2263_v56  ;;  %v7877_v43 = vadd.f32 %v2287_v40, %v2276_v60  ;;  %v7879_v6 = vadd.f32 %v2287_v40, %v2264_v62 }
 0x321   :  { %v7881_v8 = vadd.f32 %v2291_v36, %v2277_v5  ;;  %v7883_v10 = vadd.f32 %v2291_v36, %v2265_v23  ;;  %v7890_v46 = vadd.f32 %v2295_v38, %v2278_v17  ;;  %v7893_v24 = vadd.f32 %v2295_v38, %v2266_v13 }
 0x322   :  { %v6440_v3 = vmul.f32 -1.442695, %v7873_v49  ;;  %v6428_v45 = vmul.f32 -1.442695, %v7875_v20  ;;  %v6441_v51 = vmul.f32 -1.442695, %v7877_v43  ;;  %v7900_v61 = vadd.f32 %v2287_v40, %v2268_v57 }
 0x323   :  { %v6429_v19 = vmul.f32 -1.442695, %v7879_v6  ;;  %v6442_v48 = vmul.f32 -1.442695, %v7881_v8  ;;  %v6430_v11 = vmul.f32 -1.442695, %v7883_v10  ;;  %v7905_v21 = vadd.f32 %v2283_v1, %v2267_v59 }
 0x324   :  { %7151 = vpow2.f32 %v6440_v3  ;;  %v6443_v41 = vmul.f32 -1.442695, %v7890_v46  ;;  %v6431_v42 = vmul.f32 -1.442695, %v7893_v24  ;;  %v7909_v28 = vadd.f32 %v2295_v38, %v2270_v54 }
 0x325   :  { %7153 = vpow2.f32 %v6428_v45  ;;  %v7912_v29 = vadd.f32 %v2291_v36, %v2269_v16  ;;  %v6433_v44 = vmul.f32 -1.442695, %v7900_v61  ;;  %v7916_v0 = vadd.f32 %v2287_v40, %v2272_v9 }
 0x326   :  { %7155 = vpow2.f32 %v6441_v51  ;;  %v6432_v30 = vmul.f32 -1.442695, %v7905_v21  ;;  %v7919_v31 = vadd.f32 %v2283_v1, %v2271_v63  ;;  %v6435_v2 = vmul.f32 -1.442695, %v7909_v28 }
 0x327   :  { %7157 = vpow2.f32 %v6429_v19  ;;  %v6434_v32 = vmul.f32 -1.442695, %v7912_v29  ;;  %v6437_v22 = vmul.f32 -1.442695, %v7916_v0  ;;  %v7929_v33 = vadd.f32 %v2295_v38, %v2274_v18 }
 0x328   :  { %7159 = vpow2.f32 %v6442_v48  ;;  %v6436_v15 = vmul.f32 -1.442695, %v7919_v31  ;;  %v7931_v52 = vadd.f32 %v2291_v36, %v2273_v26 }
 0x329   :  { %7161 = vpow2.f32 %v6430_v11  ;;  %v6439_v60 = vmul.f32 -1.442695, %v7929_v33 }
 0x32a   :  { %7163 = vpow2.f32 %v6443_v41  ;;  %v6438_v27 = vmul.f32 -1.442695, %v7931_v52 }
 0x32b   :  { %7165 = vpow2.f32 %v6431_v42 }
 0x32c   :  { %7167 = vpow2.f32 %v6433_v44 }
 0x32d   :  { %7169 = vpow2.f32 %v6432_v30 }
 0x32e   :  { %7171 = vpow2.f32 %v6435_v2 }
 0x32f   :  { %7173 = vpow2.f32 %v6434_v32 }
 0x330   :  { %7175 = vpow2.f32 %v6437_v22 }
 0x331   :  { %v7152_v50 = vpop.eup %7151  ;;  %7177 = vpow2.f32 %v6436_v15 }
 0x332   :  { %v7154_v34 = vpop.eup %7153  ;;  %v2376_v35 = vadd.f32 1.0, %v7152_v50 }
 0x333   :  { %v7156_v55 = vpop.eup %7155  ;;  %v2364_v56 = vadd.f32 1.0, %v7154_v34 }
 0x334   :  { %v7158_v47 = vpop.eup %7157  ;;  %7179 = vrcp.f32 %v2376_v35  ;;  %v2377_v12 = vadd.f32 1.0, %v7156_v55 }
 0x335   :  { %v7160_v62 = vpop.eup %7159  ;;  %7181 = vrcp.f32 %v2364_v56  ;;  %v2365_v53 = vadd.f32 1.0, %v7158_v47 }
 0x336   :  { %v7162_v1 = vpop.eup %7161  ;;  %7183 = vrcp.f32 %v2377_v12  ;;  %v2378_v40 = vadd.f32 1.0, %v7160_v62 }
 0x337   :  { %v7164_v36 = vpop.eup %7163  ;;  %7185 = vrcp.f32 %v2365_v53  ;;  %v2366_v38 = vadd.f32 1.0, %v7162_v1 }
 0x338   :  { %v7166_v5 = vpop.eup %7165  ;;  %7187 = vpow2.f32 %v6439_v60  ;;  %v2379_v23 = vadd.f32 1.0, %v7164_v36 }
 0x339   :  { %7189 = vpow2.f32 %v6438_v27  ;;  %v7168_v17 = vpop.eup %7167  ;;  %v2367_v13 = vadd.f32 1.0, %v7166_v5 }
 0x33a   :  { %7191 = vrcp.f32 %v2378_v40  ;;  %v7170_v3 = vpop.eup %7169  ;;  %v2369_v19 = vadd.f32 1.0, %v7168_v17 }
 0x33b   :  { %7193 = vrcp.f32 %v2366_v38  ;;  %v7172_v45 = vpop.eup %7171  ;;  %v2368_v57 = vadd.f32 1.0, %v7170_v3  ;;  %v6446_v38 = vld [vmem:[%s10113_s4 + $0x3] ss:$8 sm:$0xf] }
 0x33c   :  { %v7174_v51 = vpop.eup %7173  ;;  %7195 = vrcp.f32 %v2379_v23  ;;  %v2371_v42 = vadd.f32 1.0, %v7172_v45  ;;  %v6449_v23 = vld [vmem:[%s10113_s4 + $0x6] ss:$8 sm:$0xf] }
 0x33d   :  { %v7176_v48 = vpop.eup %7175  ;;  %7197 = vrcp.f32 %v2367_v13  ;;  %v2370_v63 = vadd.f32 1.0, %v7174_v51 }
 0x33e   :  { %v7178_v11 = vpop.eup %7177  ;;  %7199 = vrcp.f32 %v2369_v19  ;;  %v2373_v32 = vadd.f32 1.0, %v7176_v48 }
 0x33f   :  { %7201 = vrcp.f32 %v2368_v57  ;;  %v2372_v18 = vadd.f32 1.0, %v7178_v11  ;;  %v8077_v57 = vand.u32 127, %v2169_v39 }
 0x340   :  { %7203 = vrcp.f32 %v2371_v42 }
 0x341   :  { %v7180_v59 = vpop.eup %7179  ;;  %7205 = vrcp.f32 %v2370_v63  ;;  %v8095_v63 = vrot.slane %v6449_v23, %v7834_v25  ;;  %vm2177_vm0 = vcmp.lt.s32.totalorder %v8077_v57, 32  ;;  %vm2508_vm1 = vcmp.lt.s32.totalorder %v8077_v57, 96 }
 0x342   :  { %v7182_v41 = vpop.eup %7181  ;;  %v7936_v54 = vmul.f32 %v7180_v59, %v7873_v49  ;;  %7207 = vrcp.f32 %v2373_v32 }
 0x343   :  { %v7184_v16 = vpop.eup %7183  ;;  %v7939_v9 = vmul.f32 %v7182_v41, %v7875_v20  ;;  %7209 = vrcp.f32 %v2372_v18  ;;  %v8116_v18 = vrot.slane %v6446_v38, %v7840_v7 }
 0x344   :  { %v7186_v44 = vpop.eup %7185  ;;  %2434 = vrot.lane.b32.xlu1 %v7936_v54, %s7492_s24  ;;  %v7946_v49 = vmul.f32 %v7184_v16, %v7877_v43  ;;  %v8092_v16 = vrot.slane %v6446_v38, %v7834_v25 }
 0x345   :  { %v7188_v30 = vpop.eup %7187  ;;  %2428 = vrot.lane.b32.xlu0 %v7939_v9, %s7492_s24  ;;  %v7949_v20 = vmul.f32 %v7186_v44, %v7879_v6  ;;  %v8101_v44 = vrot.slane %v6446_v38, %v7837_v14 }
 0x346   :  { %v7190_v2 = vpop.eup %7189  ;;  %v2375_v43 = vadd.f32 1.0, %v7188_v30  ;;  %v8104_v30 = vrot.slane %v6449_v23, %v7837_v14 }
 0x347   :  { %v7192_v22 = vpop.eup %7191  ;;  %v2374_v6 = vadd.f32 1.0, %v7190_v2 }
 0x348   :  { %v7194_v15 = vpop.eup %7193  ;;  %2442 = vrot.lane.b32.xlu1 %v7946_v49, %s7492_s24  ;;  %v7956_v26 = vmul.f32 %v7192_v22, %v7881_v8  ;;  %7211 = vrcp.f32 %v2375_v43  ;;  %v8113_v22 = vrot.slane %v6446_v38, %v7831_v4  ;;  %v8122_v43 = vrot.slane %v6449_v23, %v7840_v7 }
 0x349   :  { %2436 = vrot.lane.b32.xlu0 %v7949_v20, %s7492_s24  ;;  %v7196_v50 = vpop.eup %7195  ;;  %v7959_v34 = vmul.f32 %v7194_v15, %v7883_v10  ;;  %7213 = vrcp.f32 %v2374_v6  ;;  %v8119_v15 = vrot.slane %v6449_v23, %v7831_v4 }
 0x34a   :  { %v7198_v35 = vpop.eup %7197  ;;  %v7966_v55 = vmul.f32 %v7196_v50, %v7890_v46 }
 0x34b   :  { %v7200_v8 = vpop.eup %7199  ;;  %v7969_v56 = vmul.f32 %v7198_v35, %v7893_v24 }
 0x34c   :  { %2450 = vrot.lane.b32.xlu1 %v7956_v26, %s7492_s24  ;;  %v7202_v10 = vpop.eup %7201  ;;  %v7976_v47 = vmul.f32 %v7200_v8, %v7900_v61 }
 0x34d   :  { %2444 = vrot.lane.b32.xlu0 %v7959_v34, %s7492_s24  ;;  %v7204_v12 = vpop.eup %7203  ;;  %v7979_v46 = vmul.f32 %v7202_v10, %v7905_v21 }
 0x34e   :  { %v7206_v60 = vpop.eup %7205  ;;  %v7986_v24 = vmul.f32 %v7204_v12, %v7909_v28 }
 0x34f   :  { %v7208_v62 = vpop.eup %7207  ;;  %v7989_v53 = vmul.f32 %v7206_v60, %v7912_v29 }
 0x350   :  { %2458 = vrot.lane.b32.xlu1 %v7966_v55, %s7492_s24  ;;  %v7210_v61 = vpop.eup %7209  ;;  %v7996_v21 = vmul.f32 %v7208_v62, %v7916_v0  ;;  %v6444_v0 = vld [vmem:[%s10113_s4 + $0x1] ss:$8 sm:$0xf] }
 0x351   :  { %2452 = vrot.lane.b32.xlu0 %v7969_v56, %s7492_s24  ;;  %v7999_v1 = vmul.f32 %v7210_v61, %v7919_v31  ;;  %v6447_v31 = vld [vmem:[%s10113_s4 + $0x4] ss:$8 sm:$0xf]  ;;  %v8044_v36 = vrot.slane %v6444_v0, %v7834_v25  ;;  %v8059_v13 = vrot.slane %v6444_v0, %v7837_v14  ;;  %v8068_v51 = vrot.slane %v6444_v0, %v7831_v4 }
 0x352   :  { %v8050_v5 = vrot.slane %v6447_v31, %v7834_v25  ;;  %v8062_v3 = vrot.slane %v6447_v31, %v7837_v14  ;;  %v8071_v19 = vrot.slane %v6444_v0, %v7840_v7  ;;  %v8074_v48 = vrot.slane %v6447_v31, %v7831_v4 }
 0x353   :  { %v8080_v11 = vrot.slane %v6447_v31, %v7840_v7  ;;  %v8126_v50 = vmul.f32 %v8044_v36, %v7946_v49  ;;  %v8134_v35 = vmul.f32 %v8068_v51, %v7936_v54  ;;  %v8146_v12 = vmul.f32 %v8044_v36, %v7949_v20 }
 0x354   :  { %2438 = vrot.lane.b32.xlu1 %v7976_v47, %s7492_s24  ;;  %v8130_v6 = vmul.f32 %v8050_v5, %v7946_v49  ;;  %v8138_v8 = vmul.f32 %v8074_v48, %v7936_v54  ;;  %v8150_v60 = vmul.f32 %v8050_v5, %v7949_v20  ;;  %v8159_v61 = vmul.f32 %v8059_v13, %v7956_v26 }
 0x355   :  { %2430 = vrot.lane.b32.xlu0 %v7979_v46, %s7492_s24  ;;  %v7212_v27 = vpop.eup %7211  ;;  %v8183_v31 = vmul.f32 %v8071_v19, %v7966_v55  ;;  %v8203_v38 = vmul.f32 %v8080_v11, %v7969_v56 }
 0x356   :  { %v7214_v28 = vpop.eup %7213  ;;  %v8006_v29 = vmul.f32 %v7212_v27, %v7929_v33  ;;  %v6450_v33 = vld [vmem:[%s10113_s4 + $0x7] ss:$8 sm:$0xf] }
 0x357   :  { %v8009_v40 = vmul.f32 %v7214_v28, %v7931_v52  ;;  %v2525_v52 = vld [vmem:[%s10113_s4] ss:$8 sm:$0xf]  ;;  %v8056_v17 = vrot.slane %v6450_v33, %v7834_v25  ;;  %v8065_v45 = vrot.slane %v6450_v33, %v7837_v14  ;;  %v8083_v59 = vrot.slane %v6450_v33, %v7831_v4  ;;  %10188 = vst [vmem:[#allocation14_spill] sm:$0xff] %v8203_v38 }
 0x358   :  { %2454 = vrot.lane.b32.xlu1 %v7986_v24, %s7492_s24  ;;  %v8086_v41 = vrot.slane %v6450_v33, %v7840_v7  ;;  %v8089_v42 = vrot.slane %v2525_v52, %v7834_v25  ;;  %v8098_v39 = vrot.slane %v2525_v52, %v7837_v14  ;;  %v8107_v2 = vrot.slane %v2525_v52, %v7831_v4 }
 0x359   :  { %2446 = vrot.lane.b32.xlu0 %v7989_v53, %s7492_s24  ;;  %v8110_v32 = vrot.slane %v2525_v52, %v7840_v7  ;;  %v8142_v10 = vmul.f32 %v8056_v17, %v7946_v49  ;;  %v8154_v62 = vmul.f32 %v8056_v17, %v7949_v20  ;;  %v8167_v27 = vmul.f32 %v8065_v45, %v7956_v26 }
 0x35a   :  { %v8171_v28 = vmul.f32 %v8059_v13, %v7959_v34  ;;  %v8179_v0 = vmul.f32 %v8065_v45, %v7959_v34  ;;  %v8191_v33 = vmul.f32 %v8086_v41, %v7966_v55  ;;  %v8195_v52 = vmul.f32 %v8083_v59, %v7936_v54 }
 0x35b   :  { %v8207_v23 = vmul.f32 %v8086_v41, %v7969_v56  ;;  %v8219_v58 = vmul.f32 %v8083_v59, %v7939_v9  ;;  %v8225_v38 = vmul.f32 %v8044_v36, %v7976_v47 }
 0x35c   :  { %2440 = vrot.lane.b32.xlu1 %v7996_v21, %s7492_s24 }
 0x35d   :  { %2432 = vrot.lane.b32.xlu0 %v7999_v1, %s7492_s24  ;;  %10189 = vst [vmem:[#allocation15_spill] sm:$0xff] %v8207_v23  ;;  %10191 = vst [vmem:[#allocation17_spill] sm:$0xff] %v8219_v58  ;;  %v8233_v23 = vmul.f32 %v8056_v17, %v7976_v47  ;;  %v8243_v58 = vmul.f32 %v8074_v48, %v7979_v46 }
 0x35e   :  { %10192 = vst [vmem:[#allocation18_spill] sm:$0xff] %v8225_v38  ;;  %v8247_v38 = vmul.f32 %v8083_v59, %v7979_v46 }
 0x35f   :  { %10194 = vst [vmem:[#allocation20_spill] sm:$0xff] %v8233_v23  ;;  %v8263_v23 = vmul.f32 %v8080_v11, %v7986_v24 }
 0x360   :  { %2456 = vrot.lane.b32.xlu1 %v8006_v29, %s7492_s24  ;;  %10196 = vst [vmem:[#allocation22_spill] sm:$0xff] %v8247_v38  ;;  %v8271_v38 = vmul.f32 %v8086_v41, %v7986_v24 }
 0x361   :  { %2448 = vrot.lane.b32.xlu0 %v8009_v40, %s7492_s24  ;;  %10200 = vst [vmem:[#allocation26_spill] sm:$0xff] %v8263_v23 }
 0x362   :  { %10202 = vst [vmem:[#allocation28_spill] sm:$0xff] %v8271_v38  ;;  %v6451_v38 = vld [vmem:[%s10113_s4 + $0x20] ss:$8 sm:$0xf] }
 0x364   :  { %2482 = vrot.lane.b32.xlu1 %v7936_v54, %s7495_s3  ;;  %v8215_v54 = vmul.f32 %v8074_v48, %v7939_v9 }
 0x365   :  { %2476 = vrot.lane.b32.xlu0 %v7939_v9, %s7495_s3 }
 0x366   :  { %10190 = vst [vmem:[#allocation16_spill] sm:$0xff] %v8215_v54  ;;  %v8237_v54 = vmul.f32 %v8068_v51, %v7979_v46 }
 0x368   :  { %2490 = vrot.lane.b32.xlu1 %v7946_v49, %s7495_s3  ;;  %v8163_v49 = vmul.f32 %v8062_v3, %v7956_v26  ;;  %10195 = vst [vmem:[#allocation21_spill] sm:$0xff] %v8237_v54  ;;  %v8259_v54 = vmul.f32 %v8062_v3, %v7989_v53 }
 0x369   :  { %2484 = vrot.lane.b32.xlu0 %v7949_v20, %s7495_s3  ;;  %v8175_v20 = vmul.f32 %v8062_v3, %v7959_v34 }
 0x36a   :  { %10199 = vst [vmem:[#allocation25_spill] sm:$0xff] %v8259_v54  ;;  %v6448_v54 = vld [vmem:[%s10113_s4 + $0x5] ss:$8 sm:$0xf] }
 0x36c   :  { %2498 = vrot.lane.b32.xlu1 %v7956_v26, %s7495_s3  ;;  %v8187_v26 = vmul.f32 %v8080_v11, %v7966_v55 }
 0x36d   :  { %2492 = vrot.lane.b32.xlu0 %v7959_v34, %s7495_s3  ;;  %v8199_v34 = vmul.f32 %v8071_v19, %v7969_v56 }
 0x36f   :  { %10187 = vst [vmem:[#allocation13_spill] sm:$0xff] %v8199_v34 }
 0x370   :  { %2506 = vrot.lane.b32.xlu1 %v7966_v55, %s7495_s3  ;;  %v8211_v55 = vmul.f32 %v8068_v51, %v7939_v9 }
 0x371   :  { %2500 = vrot.lane.b32.xlu0 %v7969_v56, %s7495_s3  ;;  %v8229_v56 = vmul.f32 %v8050_v5, %v7976_v47 }
 0x373   :  { %10193 = vst [vmem:[#allocation19_spill] sm:$0xff] %v8229_v56  ;;  %v8251_v56 = vmul.f32 %v8059_v13, %v7989_v53 }
 0x374   :  { %2486 = vrot.lane.b32.xlu1 %v7976_v47, %s7495_s3  ;;  %v8255_v47 = vmul.f32 %v8071_v19, %v7986_v24 }
 0x375   :  { %2478 = vrot.lane.b32.xlu0 %v7979_v46, %s7495_s3  ;;  %10197 = vst [vmem:[#allocation23_spill] sm:$0xff] %v8251_v56  ;;  %v8267_v46 = vmul.f32 %v8065_v45, %v7989_v53  ;;  %v8281_v56 = vmul.f32 %v8044_v36, %v7996_v21  ;;  %v8299_v36 = vmul.f32 %v8068_v51, %v7999_v1 }
 0x376   :  { %10198 = vst [vmem:[#allocation24_spill] sm:$0xff] %v8255_v47  ;;  %v6445_v47 = vld [vmem:[%s10113_s4 + $0x2] ss:$8 sm:$0xf]  ;;  %v8319_v51 = vmul.f32 %v8062_v3, %v8009_v40  ;;  %v8340_v3 = vrot.slane %v6451_v38, %v7831_v4 }
 0x377   :  { %10201 = vst [vmem:[#allocation27_spill] sm:$0xff] %v8267_v46  ;;  %v8295_v46 = vadd.s32 24, %v7821_v37 }
 0x378   :  { %2502 = vrot.lane.b32.xlu1 %v7986_v24, %s7495_s3  ;;  %v8289_v24 = vmul.f32 %v8056_v17, %v7996_v21  ;;  %v8311_v17 = vmul.f32 %v8059_v13, %v8009_v40  ;;  %10208 = vst [vmem:[#allocation34_spill] sm:$0xff] %v8319_v51  ;;  %v8331_v13 = vmul.f32 %v8086_v41, %v8006_v29  ;;  %10214 = vst [vmem:[#allocation40_spill] sm:$0xff] %v8340_v3 }
 0x379   :  { %2494 = vrot.lane.b32.xlu0 %v7989_v53, %s7495_s3  ;;  %v8285_v53 = vmul.f32 %v8050_v5, %v7996_v21  ;;  %10205 = vst [vmem:[#allocation31_spill] sm:$0xff] %v8295_v46  ;;  %v8303_v5 = vmul.f32 %v8074_v48, %v7999_v1  ;;  %v8323_v48 = vmul.f32 %v8080_v11, %v8006_v29 }
 0x37a   :  { %10204 = vst [vmem:[#allocation30_spill] sm:$0xff] %v8289_v24  ;;  %10206 = vst [vmem:[#allocation32_spill] sm:$0xff] %v8311_v17  ;;  %v8369_v46 = vrot.slane %v6445_v47, %v7840_v7  ;;  %v8379_v51 = vrot.slane %v6448_v54, %v7840_v7 }
 0x37b   :  { %10203 = vst [vmem:[#allocation29_spill] sm:$0xff] %v8285_v53  ;;  %v8315_v53 = vmul.f32 %v8071_v19, %v8006_v29  ;;  %10209 = vst [vmem:[#allocation35_spill] sm:$0xff] %v8323_v48  ;;  %v8337_v19 = vrot.slane %v6448_v54, %v7831_v4  ;;  %v8372_v48 = vrot.slane %v6448_v54, %v7837_v14 }
 0x37c   :  { %2488 = vrot.lane.b32.xlu1 %v7996_v21, %s7495_s3  ;;  %v8307_v21 = vmul.f32 %v8083_v59, %v7999_v1  ;;  %10211 = vst [vmem:[#allocation37_spill] sm:$0xff] %v8331_v13  ;;  %v8334_v59 = vrot.slane %v6445_v47, %v7831_v4  ;;  %v8357_v4 = vadd.s32 8, %v7821_v37  ;;  %10221 = vst [vmem:[#allocation47_spill] sm:$0xff] %v8369_v46 }
 0x37d   :  { %2480 = vrot.lane.b32.xlu0 %v7999_v1, %s7495_s3  ;;  %10207 = vst [vmem:[#allocation33_spill] sm:$0xff] %v8315_v53  ;;  %v8327_v1 = vmul.f32 %v8065_v45, %v8009_v40  ;;  %10213 = vst [vmem:[#allocation39_spill] sm:$0xff] %v8337_v19  ;;  %v8354_v19 = vrot.slane %v6448_v54, %v7834_v25  ;;  %v8363_v45 = vrot.slane %v6451_v38, %v7834_v25 }
 0x37e   :  { %10212 = vst [vmem:[#allocation38_spill] sm:$0xff] %v8334_v59  ;;  %10217 = vst [vmem:[#allocation43_spill] sm:$0xff] %v8357_v4  ;;  %v8386_v46 = vrot.slane %v6451_v38, %v7837_v14  ;;  %v8390_v53 = vrot.slane %v6451_v38, %v7840_v7 }
 0x37f   :  { %10210 = vst [vmem:[#allocation36_spill] sm:$0xff] %v8327_v1  ;;  %10216 = vst [vmem:[#allocation42_spill] sm:$0xff] %v8354_v19  ;;  %v8360_v1 = vadd.s32 16, %v7821_v37 }
 0x380   :  { %2504 = vrot.lane.b32.xlu1 %v8006_v29, %s7495_s3  ;;  %v8348_v29 = vrot.slane %v6445_v47, %v7834_v25  ;;  %10219 = vst [vmem:[#allocation45_spill] sm:$0xff] %v8363_v45  ;;  %10222 = vst [vmem:[#allocation48_spill] sm:$0xff] %v8372_v48 }
 0x381   :  { %2496 = vrot.lane.b32.xlu0 %v8009_v40, %s7495_s3  ;;  %10218 = vst [vmem:[#allocation44_spill] sm:$0xff] %v8360_v1  ;;  %10223 = vst [vmem:[#allocation49_spill] sm:$0xff] %v8379_v51  ;;  %v10230_v1 = vld [vmem:[#allocation14_spill] sm:$0xff] }
 0x382   :  { %10215 = vst [vmem:[#allocation41_spill] sm:$0xff] %v8348_v29  ;;  %v8366_v29 = vrot.slane %v6445_v47, %v7837_v14  ;;  %10224 = vst [vmem:[#allocation50_spill] sm:$0xff] %v8386_v46 }
 0x384   :  { %10220 = vst [vmem:[#allocation46_spill] sm:$0xff] %v8366_v29 }
 0x3b6   :  { %v8221_v34 = vpop.permute.xlu1 %2434 }
 0x3b7   :  { %v8239_v9 = vpop.permute.xlu0 %2428 }
 0x3ba   :  { %v2443_v23 = vpop.permute.xlu1 %2442 }
 0x3bb   :  { %v2437_v24 = vpop.permute.xlu0 %2436  ;;  %v2471_v11 = vsel %vm2177_vm0, %v8221_v34, %v2443_v23 }
 0x3bc   :  { %v2468_v41 = vsel %vm2177_vm0, %v8239_v9, %v2437_v24  ;;  %v2560_v19 = vmul.f32 %v8089_v42, %v2471_v11  ;;  %v2709_v3 = vmul.f32 %v8092_v16, %v2471_v11  ;;  %v2858_v25 = vmul.f32 %v8095_v63, %v2471_v11 }
 0x3bd   :  { %v2548_v29 = vmul.f32 %v8089_v42, %v2468_v41  ;;  %v2697_v48 = vmul.f32 %v8092_v16, %v2468_v41  ;;  %v2846_v11 = vmul.f32 %v8095_v63, %v2468_v41 }
 0x3be   :  { %v2451_v13 = vpop.permute.xlu1 %2450  ;;  %v8400_v46 = vadd.f32 %v8126_v50, %v2560_v19  ;;  %v8403_v38 = vadd.f32 %v8130_v6, %v2709_v3  ;;  %v8408_v41 = vadd.f32 %v8142_v10, %v2858_v25 }
 0x3bf   :  { %v2445_v40 = vpop.permute.xlu0 %2444  ;;  %v2467_v59 = vsel %vm2177_vm0, %v2443_v23, %v2451_v13  ;;  %v8411_v7 = vadd.f32 %v8146_v12, %v2548_v29  ;;  %v8416_v50 = vadd.f32 %v8150_v60, %v2697_v48  ;;  %v8424_v10 = vadd.f32 %v8154_v62, %v2846_v11 }
 0x3c0   :  { %v2464_v47 = vsel %vm2177_vm0, %v2437_v24, %v2445_v40  ;;  %v2561_v51 = vmul.f32 %v8098_v39, %v2467_v59  ;;  %v2710_v17 = vmul.f32 %v8101_v44, %v2467_v59  ;;  %v2859_v23 = vmul.f32 %v8104_v30, %v2467_v59 }
 0x3c1   :  { %v2549_v54 = vmul.f32 %v8098_v39, %v2464_v47  ;;  %v2698_v4 = vmul.f32 %v8101_v44, %v2464_v47 }
 0x3c2   :  { %v2459_v45 = vpop.permute.xlu1 %2458  ;;  %v8427_v12 = vadd.f32 %v8159_v61, %v2561_v51  ;;  %v8430_v3 = vadd.f32 %v8163_v49, %v2710_v17  ;;  %v8434_v29 = vadd.f32 %v8167_v27, %v2859_v23 }
 0x3c3   :  { %v2463_v24 = vsel %vm2177_vm0, %v2451_v13, %v2459_v45  ;;  %v2453_v14 = vpop.permute.xlu0 %2452  ;;  %v2847_v13 = vmul.f32 %v8104_v30, %v2464_v47  ;;  %v2475_v6 = vsel %vm2177_vm0, %v2459_v45, %v8221_v34  ;;  %v8437_v34 = vadd.f32 %v8171_v28, %v2549_v54 }
 0x3c4   :  { %v2562_v59 = vmul.f32 %v8110_v32, %v2463_v24  ;;  %v2711_v19 = vmul.f32 %v8116_v18, %v2463_v24  ;;  %v2860_v60 = vmul.f32 %v8122_v43, %v2463_v24  ;;  %v2460_v45 = vsel %vm2177_vm0, %v2445_v40, %v2453_v14 }
 0x3c5   :  { %v2472_v62 = vsel %vm2177_vm0, %v2453_v14, %v8239_v9  ;;  %v8445_v61 = vadd.f32 %v8175_v20, %v2698_v4  ;;  %v8448_v49 = vadd.f32 %v8179_v0, %v2847_v13  ;;  %v2559_v17 = vmul.f32 %v8107_v2, %v2475_v6 }
 0x3c6   :  { %v2439_v25 = vpop.permute.xlu1 %2438  ;;  %v2708_v27 = vmul.f32 %v8113_v22, %v2475_v6  ;;  %v8453_v28 = vadd.f32 %v8183_v31, %v2562_v59  ;;  %v8456_v51 = vadd.f32 %v8187_v26, %v2711_v19  ;;  %v2857_v40 = vmul.f32 %v8119_v15, %v2475_v6 }
 0x3c7   :  { %v2431_v48 = vpop.permute.xlu0 %2430  ;;  %10225 = vst [vmem:[#allocation51_spill] sm:$0xff] %v8445_v61  ;;  %v8462_v20 = vadd.f32 %v8191_v33, %v2860_v60  ;;  %v2547_v0 = vmul.f32 %v8107_v2, %v2472_v62  ;;  %v2550_v9 = vmul.f32 %v8110_v32, %v2460_v45  ;;  %v2696_v47 = vmul.f32 %v8113_v22, %v2472_v62 }
 0x3c8   :  { %10226 = vst [vmem:[#allocation52_spill] sm:$0xff] %v8456_v51  ;;  %v2469_v14 = vsel %vm2177_vm0, %v2431_v48, %v2439_v25  ;;  %v2699_v23 = vmul.f32 %v8116_v18, %v2460_v45  ;;  %v2845_v26 = vmul.f32 %v8119_v15, %v2472_v62  ;;  %v2848_v54 = vmul.f32 %v8122_v43, %v2460_v45 }
 0x3c9   :  { %v8473_v24 = vadd.f32 %v8134_v35, %v2559_v17  ;;  %v8476_v33 = vadd.f32 %v8138_v8, %v2708_v27  ;;  %v2552_v13 = vmul.f32 %v8089_v42, %v2469_v14  ;;  %v2701_v6 = vmul.f32 %v8092_v16, %v2469_v14  ;;  %v10227_v8 = vld [vmem:[#allocation13_spill] sm:$0xff] }
 0x3ca   :  { %v2455_v4 = vpop.permute.xlu1 %2454  ;;  %v8481_v59 = vadd.f32 %v8195_v52, %v2857_v40  ;;  %v2850_v19 = vmul.f32 %v8095_v63, %v2469_v14  ;;  %v8488_v35 = vadd.f32 %v8211_v55, %v2547_v0  ;;  %v8491_v62 = vadd.f32 %v10227_v8, %v2550_v9  ;;  %v10229_v40 = vld [vmem:[#allocation16_spill] sm:$0xff]  ;;  %v10233_v55 = vld [vmem:[#allocation15_spill] sm:$0xff]  ;;  %v10234_v9 = vld [vmem:[#allocation18_spill] sm:$0xff] }
 0x3cb   :  { %v2447_v31 = vpop.permute.xlu0 %2446  ;;  %v2473_v11 = vsel %vm2177_vm0, %v2455_v4, %v2431_v48  ;;  %v8497_v14 = vadd.f32 %v10229_v40, %v2696_v47  ;;  %v8500_v51 = vadd.f32 %v10230_v1, %v2699_v23  ;;  %v8506_v0 = vadd.f32 %v10233_v55, %v2848_v54  ;;  %v10238_v1 = vld [vmem:[#allocation20_spill] sm:$0xff] }
 0x3cc   :  { %v2551_v60 = vmul.f32 %v8107_v2, %v2473_v11  ;;  %v2465_v48 = vsel %vm2177_vm0, %v2439_v25, %v2447_v31  ;;  %10228 = vst [vmem:[#allocation13_spill] sm:$0xff] %v8491_v62  ;;  %v2700_v17 = vmul.f32 %v8113_v22, %v2473_v11  ;;  %v2461_v52 = vsel %vm2177_vm0, %v2447_v31, %v2455_v4  ;;  %v10232_v25 = vld [vmem:[#allocation17_spill] sm:$0xff]  ;;  %v10236_v62 = vld [vmem:[#allocation19_spill] sm:$0xff] }
 0x3cd   :  { %10231 = vst [vmem:[#allocation16_spill] sm:$0xff] %v8500_v51  ;;  %v8503_v61 = vadd.f32 %v10232_v25, %v2845_v26  ;;  %v8510_v8 = vadd.f32 %v10234_v9, %v2552_v13  ;;  %v8513_v4 = vadd.f32 %v10236_v62, %v2701_v6  ;;  %v2849_v47 = vmul.f32 %v8119_v15, %v2473_v11  ;;  %v10240_v26 = vld [vmem:[#allocation21_spill] sm:$0xff] }
 0x3ce   :  { %v2441_v45 = vpop.permute.xlu1 %2440  ;;  %v2553_v31 = vmul.f32 %v8098_v39, %v2465_v48  ;;  %v8518_v23 = vadd.f32 %v10238_v1, %v2850_v19  ;;  %v8521_v40 = vadd.f32 %v10240_v26, %v2551_v60  ;;  %v2554_v54 = vmul.f32 %v8110_v32, %v2461_v52 }
 0x3cf   :  { %v2433_v27 = vpop.permute.xlu0 %2432  ;;  %10235 = vst [vmem:[#allocation14_spill] sm:$0xff] %v8510_v8  ;;  %10237 = vst [vmem:[#allocation17_spill] sm:$0xff] %v8513_v4  ;;  %v8527_v55 = vadd.f32 %v8243_v58, %v2700_v17  ;;  %v2702_v6 = vmul.f32 %v8101_v44, %v2465_v48  ;;  %v2703_v11 = vmul.f32 %v8116_v18, %v2461_v52  ;;  %v10242_v58 = vld [vmem:[#allocation22_spill] sm:$0xff] }
 0x3d0   :  { %10239 = vst [vmem:[#allocation15_spill] sm:$0xff] %v8518_v23  ;;  %v2470_v25 = vsel %vm2177_vm0, %v2433_v27, %v2441_v45  ;;  %v2851_v62 = vmul.f32 %v8104_v30, %v2465_v48  ;;  %v2852_v9 = vmul.f32 %v8122_v43, %v2461_v52  ;;  %v8540_v17 = vadd.f32 %v10242_v58, %v2849_v47  ;;  %v10243_v23 = vld [vmem:[#allocation23_spill] sm:$0xff]  ;;  %v10244_v52 = vld [vmem:[#allocation24_spill] sm:$0xff]  ;;  %v10245_v47 = vld [vmem:[#allocation25_spill] sm:$0xff] }
 0x3d1   :  { %10241 = vst [vmem:[#allocation18_spill] sm:$0xff] %v8527_v55  ;;  %v8543_v4 = vadd.f32 %v10243_v23, %v2553_v31  ;;  %v2556_v48 = vmul.f32 %v8089_v42, %v2470_v25  ;;  %v2705_v8 = vmul.f32 %v8092_v16, %v2470_v25  ;;  %v8548_v55 = vadd.f32 %v10244_v52, %v2554_v54  ;;  %v10246_v54 = vld [vmem:[#allocation26_spill] sm:$0xff] }
 0x3d2   :  { %v2457_v13 = vpop.permute.xlu1 %2456  ;;  %v8564_v58 = vadd.f32 %v10246_v54, %v2703_v11  ;;  %v10259_v54 = vld [vmem:[#allocation33_spill] sm:$0xff] }
 0x3d3   :  { %v2449_v19 = vpop.permute.xlu0 %2448  ;;  %v2474_v60 = vsel %vm2177_vm0, %v2457_v13, %v2433_v27  ;;  %v2854_v27 = vmul.f32 %v8095_v63, %v2470_v25  ;;  %v10247_v63 = vld [vmem:[#allocation27_spill] sm:$0xff] }
 0x3d4   :  { %v2462_v1 = vsel %vm2177_vm0, %v2449_v19, %v2457_v13  ;;  %v2466_v26 = vsel %vm2177_vm0, %v2441_v45, %v2449_v19  ;;  %v2555_v13 = vmul.f32 %v8107_v2, %v2474_v60  ;;  %v2704_v51 = vmul.f32 %v8113_v22, %v2474_v60  ;;  %v10248_v22 = vld [vmem:[#allocation28_spill] sm:$0xff] }
 0x3d5   :  { %v8556_v19 = vadd.f32 %v10245_v47, %v2702_v6  ;;  %v2853_v31 = vmul.f32 %v8119_v15, %v2474_v60  ;;  %v2557_v42 = vmul.f32 %v8098_v39, %v2466_v26  ;;  %v2558_v16 = vmul.f32 %v8110_v32, %v2462_v1  ;;  %v10250_v32 = vld [vmem:[#allocation29_spill] sm:$0xff] }
 0x3d6   :  { %v8553_v45 = vpop.permute.xlu1 %2482  ;;  %v8567_v2 = vadd.f32 %v10247_v63, %v2851_v62  ;;  %v8570_v25 = vadd.f32 %v10248_v22, %v2852_v9  ;;  %v2706_v6 = vmul.f32 %v8101_v44, %v2466_v26  ;;  %v8576_v39 = vadd.f32 %v8281_v56, %v2556_v48  ;;  %v10255_v44 = vld [vmem:[#allocation30_spill] sm:$0xff] }
 0x3d7   :  { %v8561_v23 = vpop.permute.xlu0 %2476  ;;  %v8579_v15 = vadd.f32 %v10250_v32, %v2705_v8  ;;  %v2707_v11 = vmul.f32 %v8116_v18, %v2462_v1  ;;  %v2855_v62 = vmul.f32 %v8104_v30, %v2466_v26  ;;  %v10252_v60 = vand.u32 15, %v7821_v37  ;;  %v10257_v26 = vld [vmem:[#allocation32_spill] sm:$0xff] }
 0x3d8   :  { %10249 = vst [vmem:[#allocation19_spill] sm:$0xff] %v8576_v39  ;;  %v8590_v52 = vadd.f32 %v10255_v44, %v2854_v27  ;;  %v8593_v47 = vadd.f32 %v8299_v36, %v2555_v13  ;;  %v8596_v56 = vadd.f32 %v8303_v5, %v2704_v51  ;;  %v2856_v8 = vmul.f32 %v8122_v43, %v2462_v1  ;;  %v10260_v13 = vld [vmem:[#allocation34_spill] sm:$0xff]  ;;  %v10263_v1 = vld [vmem:[#allocation40_spill] sm:$0xff] }
 0x3d9   :  { %10251 = vst [vmem:[#allocation20_spill] sm:$0xff] %v8579_v15  ;;  %vm8585_vm4 = vcmp.gt.s32.totalorder %v10252_v60, 0  ;;  %v8600_v30 = vadd.f32 %v8307_v21, %v2853_v31  ;;  %v8603_v48 = vadd.f32 %v10257_v26, %v2557_v42  ;;  %v8606_v63 = vadd.f32 %v10259_v54, %v2558_v16  ;;  %v10262_v51 = vld [vmem:[#allocation38_spill] sm:$0xff]  ;;  %v10264_v31 = vld [vmem:[#allocation35_spill] sm:$0xff]  ;;  %v10266_v16 = vld [vmem:[#allocation36_spill] sm:$0xff] }
 0x3da   :  { %10256 = vst [vmem:[#allocation21_spill] sm:$0xff] %v8590_v52  ;;  %v2491_v18 = vpop.permute.xlu1 %2490  ;;  %v8612_v5 = vadd.f32 %v10260_v13, %v2706_v6  ;;  %v8620_v42 = vadd.f32 %v10264_v31, %v2707_v11  ;;  %v8623_v32 = vadd.f32 %v10266_v16, %v2855_v62  ;;  %v10268_v6 = vld [vmem:[#allocation37_spill] sm:$0xff]  ;;  %v10272_v52 = vld [vmem:[#allocation39_spill] sm:$0xff] }
 0x3db   :  { %10258 = vst [vmem:[#allocation22_spill] sm:$0xff] %v8603_v48  ;;  %v2520_v36 = vsel %vm2508_vm1, %v8553_v45, %v2491_v18  ;;  %v2485_v27 = vpop.permute.xlu0 %2484  ;;  %v8628_v26 = vadd.f32 %v10268_v6, %v2856_v8  ;;  %v10273_v62 = vld [vmem:[#allocation31_spill] sm:$0xff] }
 0x3dc   :  { %10261 = vst [vmem:[#allocation23_spill] sm:$0xff] %v8612_v5  ;;  %v2653_v43 = vmul.f32 %v10262_v51, %v2520_v36  ;;  %v2951_v22 = vmul.f32 %v10263_v1, %v2520_v36  ;;  %v2517_v21 = vsel %vm2508_vm1, %v8561_v23, %v2485_v27  ;;  %10265 = vst [vmem:[#allocation24_spill] sm:$0xff] %v8620_v42  ;;  %v10274_v16 = vand.u32 15, %v10273_v62  ;;  %v10278_v62 = vld [vmem:[#allocation42_spill] sm:$0xff] }
 0x3dd   :  { %10267 = vst [vmem:[#allocation25_spill] sm:$0xff] %v8623_v32  ;;  %v2641_v60 = vmul.f32 %v10262_v51, %v2517_v21  ;;  %v2939_v44 = vmul.f32 %v10263_v1, %v2517_v21  ;;  %10269 = vst [vmem:[#allocation26_spill] sm:$0xff] %v8628_v26  ;;  %v2790_v5 = vmul.f32 %v10272_v52, %v2517_v21  ;;  %v10277_v21 = vld [vmem:[#allocation41_spill] sm:$0xff] }
 0x3de   :  { %v8631_v54 = vadd.f32 %v2653_v43, %v8473_v24  ;;  %v8634_v13 = vadd.f32 %v2951_v22, %v8481_v59  ;;  %v2499_v11 = vpop.permute.xlu1 %2498  ;;  %v2802_v31 = vmul.f32 %v10272_v52, %v2520_v36  ;;  %vm8640_vm5 = vcmp.lt.s32.totalorder %v10274_v16, 15 }
 0x3df   :  { %v8645_v8 = vadd.f32 %v2641_v60, %v8488_v35  ;;  %v8648_v24 = vadd.f32 %v2939_v44, %v8503_v61  ;;  %v2516_v59 = vsel %vm2508_vm1, %v2491_v18, %v2499_v11  ;;  %v2493_v43 = vpop.permute.xlu0 %2492  ;;  %v10279_v60 = vld [vmem:[#allocation45_spill] sm:$0xff]  ;;  %v2806_v18 = vadd.f32 %v2790_v5, %v8497_v14 }
 0x3e0   :  { %10270 = vst [vmem:[#allocation27_spill] sm:$0xff] %v8631_v54  ;;  %10271 = vst [vmem:[#allocation28_spill] sm:$0xff] %v8634_v13  ;;  %v2654_v6 = vmul.f32 %v10277_v21, %v2516_v59  ;;  %v2803_v16 = vmul.f32 %v10278_v62, %v2516_v59  ;;  %v2952_v48 = vmul.f32 %v10279_v60, %v2516_v59  ;;  %v10281_v26 = vrot.slane %v8631_v54, 7 }
 0x3e1   :  { %v10145_v15 = vrot.slane %v8645_v8, 7  ;;  %v10147_v35 = vrot.slane %v8648_v24, 1  ;;  %v2513_v61 = vsel %vm2508_vm1, %v2485_v27, %v2493_v43  ;;  %v10282_v27 = vrot.slane %v8634_v13, 1 }
 0x3e2   :  { %v8663_v44 = vadd.f32 %v2654_v6, %v8400_v46  ;;  %v2642_v36 = vmul.f32 %v10277_v21, %v2513_v61  ;;  %v2791_v22 = vmul.f32 %v10278_v62, %v2513_v61  ;;  %v2507_v39 = vpop.permute.xlu1 %2506  ;;  %v8682_v14 = vadd.f32 %v2952_v48, %v8408_v41 }
 0x3e3   :  { %v3013_v59 = vsel %vm3000_vm2, %v10281_v26, %v10145_v15  ;;  %v8679_v46 = vsel %vm3053_vm3, %v10282_v27, %v10147_v35  ;;  %v2940_v5 = vmul.f32 %v10279_v60, %v2513_v61  ;;  %v8686_v6 = vadd.f32 %v2802_v31, %v8476_v33  ;;  %v2501_v33 = vpop.permute.xlu0 %2500 }
 0x3e4   :  { %10280 = vst [vmem:[#allocation29_spill] sm:$0xff] %v8663_v44  ;;  %10283 = vst [vmem:[#allocation30_spill] sm:$0xff] %v8679_v46  ;;  %v3017_v54 = vsel %vm8585_vm4, %v3013_v59, 0.0  ;;  %v10149_v26 = vrot.slane %v8663_v44, 7  ;;  %v8692_v15 = vadd.f32 %v2642_v36, %v8411_v7  ;;  %v8697_v27 = vadd.f32 %v2803_v16, %v8403_v38  ;;  %v10287_v36 = vld [vmem:[#allocation46_spill] sm:$0xff]  ;;  %v10302_v46 = vld [vmem:[#allocation16_spill] sm:$0xff] }
 0x3e5   :  { %10284 = vst [vmem:[#allocation32_spill] sm:$0xff] %v8682_v14  ;;  %10285 = vst [vmem:[#allocation33_spill] sm:$0xff] %v8686_v6  ;;  %v8694_v13 = vadd.f32 %v3017_v54, %v2806_v18  ;;  %v8701_v48 = vadd.f32 %v2940_v5, %v8424_v10  ;;  %v2807_v31 = vadd.f32 %v2791_v22, %v8416_v50  ;;  %v10288_v10 = vld [vmem:[#allocation47_spill] sm:$0xff]  ;;  %v10289_v5 = vld [vmem:[#allocation48_spill] sm:$0xff] }
 0x3e6   :  { %10286 = vst [vmem:[#allocation34_spill] sm:$0xff] %v8697_v27  ;;  %v10150_v61 = vrot.slane %v8692_v15, 7  ;;  %v2512_v59 = vsel %vm2508_vm1, %v2499_v11, %v2507_v39  ;;  %v2524_v7 = vsel %vm2508_vm1, %v2507_v39, %v8553_v45  ;;  %v8710_v54 = vpop.permute.xlu1 %2486  ;;  %v10290_v11 = vld [vmem:[#allocation50_spill] sm:$0xff]  ;;  %v2509_v39 = vsel %vm2508_vm1, %v2493_v43, %v2501_v33 }
 0x3e7   :  { %v10152_v38 = vrot.slane %v8701_v48, 1  ;;  %v2655_v16 = vmul.f32 %v10287_v36, %v2512_v59  ;;  %v2656_v18 = vmul.f32 %v10288_v10, %v2524_v7  ;;  %v2804_v35 = vmul.f32 %v10289_v5, %v2512_v59 }
 0x3e8   :  { %v3014_v50 = vsel %vm3000_vm2, %v10149_v26, %v10150_v61  ;;  %v2953_v22 = vmul.f32 %v10290_v11, %v2512_v59  ;;  %v2954_v45 = vmul.f32 %v8390_v53, %v2524_v7  ;;  %v10291_v27 = vrot.slane %v8682_v14, 1  ;;  %v10294_v14 = vld [vmem:[#allocation49_spill] sm:$0xff] }
 0x3e9   :  { %v3018_v41 = vsel %vm8585_vm4, %v3014_v50, 0.0  ;;  %v8737_v26 = vadd.f32 %v2655_v16, %v8427_v12  ;;  %v8740_v59 = vadd.f32 %v2656_v18, %v8453_v28  ;;  %v2805_v6 = vmul.f32 %v10294_v14, %v2524_v7  ;;  %v10298_v16 = vld [vmem:[#allocation51_spill] sm:$0xff] }
 0x3ea   :  { %v8734_v44 = vsel %vm3053_vm3, %v10291_v27, %v10152_v38  ;;  %v8748_v61 = vadd.f32 %v3018_v41, %v2807_v31  ;;  %v8752_v27 = vadd.f32 %v2804_v35, %v8430_v3  ;;  %v8755_v12 = vadd.f32 %v2953_v22, %v8434_v29  ;;  %v2479_v3 = vpop.permute.xlu0 %2478  ;;  %v2503_v35 = vpop.permute.xlu1 %2502 }
 0x3eb   :  { %10292 = vst [vmem:[#allocation38_spill] sm:$0xff] %v8734_v44  ;;  %10293 = vst [vmem:[#allocation40_spill] sm:$0xff] %v8737_v26  ;;  %v8758_v28 = vadd.f32 %v2954_v45, %v8462_v20  ;;  %v2521_v18 = vsel %vm2508_vm1, %v2501_v33, %v8561_v23  ;;  %v2643_v41 = vmul.f32 %v10287_v36, %v2509_v39  ;;  %v10301_v44 = vld [vmem:[#allocation52_spill] sm:$0xff]  ;;  %v10303_v42 = vrot.slane %v8740_v59, 7 }
 0x3ec   :  { %10295 = vst [vmem:[#allocation35_spill] sm:$0xff] %v8752_v27  ;;  %10296 = vst [vmem:[#allocation36_spill] sm:$0xff] %v8755_v12  ;;  %v2792_v31 = vmul.f32 %v10289_v5, %v2509_v39  ;;  %v2941_v7 = vmul.f32 %v10290_v11, %v2509_v39  ;;  %v2644_v45 = vmul.f32 %v10288_v10, %v2521_v18  ;;  %v10297_v39 = vld [vmem:[#allocation13_spill] sm:$0xff] }
 0x3ed   :  { %v8772_v50 = vadd.f32 %v2643_v41, %v8437_v34  ;;  %v2793_v23 = vmul.f32 %v10294_v14, %v2521_v18  ;;  %v2942_v33 = vmul.f32 %v8390_v53, %v2521_v18  ;;  %v2518_v20 = vsel %vm2508_vm1, %v2479_v3, %v8710_v54 }
 0x3ee   :  { %v8777_v43 = vadd.f32 %v2941_v7, %v8448_v49  ;;  %v2660_v38 = vadd.f32 %v2644_v45, %v10297_v39  ;;  %v2808_v29 = vadd.f32 %v2792_v31, %v10298_v16  ;;  %v2522_v22 = vsel %vm2508_vm1, %v2503_v35, %v2479_v3  ;;  %v8836_v9 = vpop.permute.xlu1 %2488 }
 0x3ef   :  { %v2958_v34 = vadd.f32 %v2942_v33, %v8506_v0  ;;  %v10156_v41 = vrot.slane %v8772_v50, 7  ;;  %v2645_v49 = vmul.f32 %v10262_v51, %v2518_v20  ;;  %v2794_v45 = vmul.f32 %v10272_v52, %v2518_v20 }
 0x3f0   :  { %v10157_v18 = vrot.slane %v8777_v43, 1  ;;  %v2987_v7 = vrot.slane %v2660_v38, 7  ;;  %v2943_v16 = vmul.f32 %v10263_v1, %v2518_v20  ;;  %v2648_v31 = vmul.f32 %v10288_v10, %v2522_v22 }
 0x3f1   :  { %v10299_v39 = vrot.slane %v8737_v26, 7  ;;  %v3040_v3 = vrot.slane %v2958_v34, 1  ;;  %v10300_v33 = vrot.slane %v8755_v12, 1  ;;  %v8808_v20 = vadd.f32 %v2645_v49, %v8521_v40  ;;  %v10305_v49 = vld [vmem:[#allocation18_spill] sm:$0xff] }
 0x3f2   :  { %v8811_v27 = vadd.f32 %v2805_v6, %v10301_v44  ;;  %v2809_v26 = vadd.f32 %v2793_v23, %v10302_v46  ;;  %v3016_v34 = vsel %vm3000_vm2, %v10303_v42, %v2987_v7  ;;  %v10304_v40 = vrot.slane %v8758_v28, 1 }
 0x3f3   :  { %v3015_v0 = vsel %vm3000_vm2, %v10299_v39, %v10156_v41  ;;  %v8805_v38 = vsel %vm3053_vm3, %v10300_v33, %v10157_v18  ;;  %v2495_v41 = vpop.permute.xlu0 %2494  ;;  %v3020_v33 = vsel %vm8585_vm4, %v3016_v34, 0.0  ;;  %v8829_v46 = vadd.f32 %v2943_v16, %v8540_v17 }
 0x3f4   :  { %v3019_v39 = vsel %vm8585_vm4, %v3015_v0, 0.0  ;;  %v8826_v44 = vsel %vm3053_vm3, %v10304_v40, %v3040_v3  ;;  %v3089_v23 = vadd.f32 %v3020_v33, %v2809_v26  ;;  %v2810_v42 = vadd.f32 %v2794_v45, %v10305_v49 }
 0x3f5   :  { %v3088_v6 = vadd.f32 %v3019_v39, %v2808_v29  ;;  %v2988_v18 = vrot.slane %v8808_v20, 7  ;;  %v8834_v0 = vadd.f32 %v2648_v31, %v8548_v55  ;;  %v3041_v34 = vrot.slane %v8829_v46, 1 }
 0x3f6   :  { %v2797_v12 = vmul.f32 %v10294_v14, %v2522_v22  ;;  %v2946_v40 = vmul.f32 %v8390_v53, %v2522_v22  ;;  %v2510_v17 = vsel %vm2508_vm1, %v2495_v41, %v2503_v35  ;;  %v10306_v26 = vrot.slane %v8645_v8, 7 }
 0x3f7   :  { %v10159_v55 = vrot.slane %v8834_v0, 7  ;;  %v2514_v45 = vsel %vm2508_vm1, %v8710_v54, %v2495_v41  ;;  %v2647_v16 = vmul.f32 %v10287_v36, %v2510_v17  ;;  %v10307_v22 = vrot.slane %v8648_v24, 1  ;;  %v2481_v49 = vpop.permute.xlu0 %2480 }
 0x3f8   :  { %v3009_v29 = vsel %vm3000_vm2, %v10306_v26, %v2988_v18  ;;  %v2813_v8 = vadd.f32 %v2797_v12, %v8564_v58  ;;  %v8864_v39 = vadd.f32 %v2946_v40, %v8570_v25  ;;  %v2646_v24 = vmul.f32 %v10277_v21, %v2514_v45  ;;  %v10308_v40 = vld [vmem:[#allocation14_spill] sm:$0xff]  ;;  %v10314_v12 = vld [vmem:[#allocation15_spill] sm:$0xff] }
 0x3f9   :  { %v3062_v35 = vsel %vm3053_vm3, %v10307_v22, %v3041_v34  ;;  %v8860_v31 = vadd.f32 %v3009_v29, %v2810_v42  ;;  %v3012_v54 = vsel %vm3000_vm2, %v2987_v7, %v10159_v55  ;;  %v8875_v41 = vadd.f32 %v2647_v16, %v8543_v4  ;;  %v2505_v29 = vpop.permute.xlu1 %2504 }
 0x3fa   :  { %v8867_v33 = vadd.f32 %v8694_v13, %v3062_v35  ;;  %v10160_v42 = vrot.slane %v8864_v39, 1  ;;  %v8878_v58 = vadd.f32 %v3012_v54, %v2813_v8  ;;  %v2795_v25 = vmul.f32 %v10278_v62, %v2514_v45  ;;  %v10309_v35 = vld [vmem:[#allocation17_spill] sm:$0xff] }
 0x3fb   :  { %v2796_v13 = vmul.f32 %v10289_v5, %v2510_v17  ;;  %v8886_v7 = vadd.f32 %v2646_v24, %v10308_v40  ;;  %v2944_v26 = vmul.f32 %v10279_v60, %v2514_v45  ;;  %v2945_v4 = vmul.f32 %v10290_v11, %v2510_v17  ;;  %v10310_v24 = vld [vmem:[#allocation44_spill] sm:$0xff] }
 0x3fc   :  { %v3065_v22 = vsel %vm3053_vm3, %v3040_v3, %v10160_v42  ;;  %v2811_v8 = vadd.f32 %v2795_v25, %v10309_v35  ;;  %v10161_v54 = vrot.slane %v8875_v41, 7  ;;  %v10311_v40 = vand.u32 15, %v10310_v24  ;;  %v10315_v42 = vld [vmem:[#allocation43_spill] sm:$0xff] }
 0x3fd   :  { %v8905_v17 = vadd.f32 %v3089_v23, %v3065_v22  ;;  %v8908_v55 = vadd.f32 %v2944_v26, %v10314_v12  ;;  %v8911_v16 = vadd.f32 %v2945_v4, %v8567_v2  ;;  %v2989_v3 = vrot.slane %v8886_v7, 7  ;;  %v2497_v22 = vpop.permute.xlu0 %2496 }
 0x3fe   :  { %vm8901_vm6 = vcmp.gt.s32.totalorder %v10311_v40, 0  ;;  %v10316_v25 = vand.u32 15, %v10315_v42  ;;  %v2812_v24 = vadd.f32 %v2796_v13, %v8556_v19  ;;  %v10319_v23 = vrot.slane %v8772_v50, 7 }
 0x3ff   :  { %v2519_v2 = vsel %vm2508_vm1, %v2481_v49, %v8836_v9  ;;  %v2523_v42 = vsel %vm2508_vm1, %v2505_v29, %v2481_v49  ;;  %v8934_v26 = vmul.f32 %v8867_v33, %v8867_v33  ;;  %v10320_v19 = vrot.slane %v8692_v15, 7 }
 0x400   :  { %vm8916_vm7 = vcmp.lt.s32.totalorder %v10316_v25, 15  ;;  %v3011_v12 = vsel %vm3000_vm2, %v10319_v23, %v10161_v54  ;;  %v3042_v13 = vrot.slane %v8908_v55, 1  ;;  %v3043_v4 = vrot.slane %v8911_v16, 1 }
 0x401   :  { %v3010_v50 = vsel %vm3000_vm2, %v10320_v19, %v2989_v3  ;;  %v8946_v25 = vadd.f32 %v3011_v12, %v2812_v24  ;;  %v2649_v49 = vmul.f32 %v10262_v51, %v2519_v2  ;;  %v2798_v23 = vmul.f32 %v10272_v52, %v2519_v2 }
 0x402   :  { %v8944_v40 = vadd.f32 %v3010_v50, %v2811_v8  ;;  %v10321_v15 = vrot.slane %v8701_v48, 1  ;;  %v10322_v54 = vrot.slane %v8777_v43, 1  ;;  %v2947_v24 = vmul.f32 %v10263_v1, %v2519_v2  ;;  %v10323_v2 = vld [vmem:[#allocation24_spill] sm:$0xff] }
 0x403   :  { %v2652_v51 = vmul.f32 %v10288_v10, %v2523_v42  ;;  %v2665_v48 = vadd.f32 %v2649_v49, %v8593_v47  ;;  %v2511_v50 = vsel %vm2508_vm1, %v2497_v22, %v2505_v29  ;;  %v2950_v1 = vmul.f32 %v8390_v53, %v2523_v42  ;;  %v10324_v49 = vld [vmem:[#allocation26_spill] sm:$0xff] }
 0x404   :  { %v3063_v19 = vsel %vm3053_vm3, %v10321_v15, %v3042_v13  ;;  %v3064_v8 = vsel %vm3053_vm3, %v10322_v54, %v3043_v4  ;;  %v2963_v15 = vadd.f32 %v2947_v24, %v8600_v30  ;;  %v2801_v54 = vmul.f32 %v10294_v14, %v2523_v42  ;;  %v10325_v14 = vld [vmem:[#allocation27_spill] sm:$0xff] }
 0x405   :  { %v8965_v52 = vadd.f32 %v8748_v61, %v3063_v19  ;;  %v8967_v12 = vadd.f32 %v3088_v6, %v3064_v8  ;;  %v2668_v43 = vadd.f32 %v2652_v51, %v8606_v63  ;;  %v8978_v10 = vmul.f32 %v8905_v17, %v8905_v17  ;;  %v10329_v51 = vld [vmem:[#allocation33_spill] sm:$0xff] }
 0x406   :  { %v2814_v61 = vadd.f32 %v2798_v23, %v8596_v56  ;;  %v2992_v6 = vrot.slane %v2665_v48, 7  ;;  %v2515_v47 = vsel %vm2508_vm1, %v8836_v9, %v2497_v22  ;;  %v3045_v29 = vrot.slane %v2963_v15, 1  ;;  %v10327_v22 = vld [vmem:[#allocation28_spill] sm:$0xff] }
 0x407   :  { %v2817_v30 = vadd.f32 %v2801_v54, %v10323_v2  ;;  %v2966_v63 = vadd.f32 %v2950_v1, %v10324_v49  ;;  %v2995_v19 = vrot.slane %v2668_v43, 7  ;;  %v10326_v8 = vrot.slane %v10325_v14, 7 }
 0x408   :  { %v3005_v56 = vsel %vm3000_vm2, %v2988_v18, %v2992_v6  ;;  %v2650_v42 = vmul.f32 %v10277_v21, %v2515_v47  ;;  %v2651_v57 = vmul.f32 %v10287_v36, %v2511_v50  ;;  %v10328_v23 = vrot.slane %v10327_v22, 1 }
 0x409   :  { %v3001_v53 = vsel %vm3000_vm2, %v2992_v6, %v10326_v8  ;;  %v3025_v9 = vsel %vm8901_vm6, %v3005_v56, 0.0  ;;  %v3058_v20 = vsel %vm3053_vm3, %v3041_v34, %v3045_v29  ;;  %v10330_v36 = vrot.slane %v8740_v59, 7  ;;  %v10332_v34 = vld [vmem:[#allocation30_spill] sm:$0xff] }
 0x40a   :  { %v3054_v24 = vsel %vm3053_vm3, %v3045_v29, %v10328_v23  ;;  %v3098_v48 = vadd.f32 %v3001_v53, %v10329_v51  ;;  %v3074_v21 = vsel %vm8916_vm7, %v3058_v20, 0.0  ;;  %v3094_v18 = vadd.f32 %v3025_v9, %v2814_v61  ;;  %v10336_v53 = vld [vmem:[#allocation19_spill] sm:$0xff] }
 0x40b   :  { %v3004_v15 = vsel %vm3000_vm2, %v2995_v19, %v10330_v36  ;;  %v10331_v43 = vrot.slane %v8834_v0, 7  ;;  %v9018_v46 = vadd.f32 %v8860_v31, %v3074_v21  ;;  %v10333_v1 = vsel %vm8640_vm5, %v10332_v34, 0.0  ;;  %v10339_v36 = vld [vmem:[#allocation20_spill] sm:$0xff] }
 0x40c   :  { %v9024_v6 = vadd.f32 %v3098_v48, %v10333_v1  ;;  %v3048_v61 = vrot.slane %v2966_v63, 1  ;;  %v9030_v29 = vmul.f32 %v8965_v52, %v8965_v52  ;;  %v9032_v0 = vadd.f32 %v3094_v18, %v3054_v24  ;;  %v10342_v1 = vld [vmem:[#allocation25_spill] sm:$0xff] }
 0x40d   :  { %v3008_v54 = vsel %vm3000_vm2, %v10331_v43, %v2995_v19  ;;  %v3101_v31 = vadd.f32 %v3004_v15, %v8811_v27  ;;  %v3120_v49 = vadd.f32 %v9018_v46, %v8867_v33  ;;  %v10334_v19 = vrot.slane %v8758_v28, 1  ;;  %v10340_v43 = vld [vmem:[#allocation23_spill] sm:$0xff] }
 0x40e   :  { %v3028_v59 = vsel %vm8901_vm6, %v3008_v54, 0.0  ;;  %v10335_v8 = vrot.slane %v8864_v39, 1  ;;  %v2666_v56 = vadd.f32 %v2650_v42, %v10336_v53  ;;  %v10337_v28 = vsel %vm8640_vm5, %v8826_v44, 0.0  ;;  %v10338_v42 = vld [vmem:[#allocation22_spill] sm:$0xff]  ;;  %v10341_v54 = vld [vmem:[#allocation21_spill] sm:$0xff] }
 0x40f   :  { %v3097_v2 = vadd.f32 %v3028_v59, %v2817_v30  ;;  %v3057_v14 = vsel %vm3053_vm3, %v3048_v61, %v10334_v19  ;;  %v9048_v30 = vmul.f32 %v8967_v12, %v8967_v12  ;;  %v9058_v22 = vadd.f32 %v3101_v31, %v10337_v28  ;;  %v10345_v31 = vld [vmem:[#allocation40_spill] sm:$0xff] }
 0x410   :  { %v3061_v63 = vsel %vm3053_vm3, %v10335_v8, %v3048_v61  ;;  %v3121_v39 = vadd.f32 %v3120_v49, %v9032_v0  ;;  %v2667_v24 = vadd.f32 %v2651_v57, %v10338_v42  ;;  %v2799_v20 = vmul.f32 %v10278_v62, %v2515_v47 }
 0x411   :  { %v3077_v27 = vsel %vm8916_vm7, %v3061_v63, 0.0  ;;  %v9052_v9 = vadd.f32 %v3097_v2, %v3057_v14  ;;  %v3160_v51 = vmul.f32 %v9018_v46, %v9018_v46  ;;  %v2800_v48 = vmul.f32 %v10289_v5, %v2511_v50 }
 0x412   :  { %v9062_v23 = vadd.f32 %v8878_v58, %v3077_v27  ;;  %v2948_v21 = vmul.f32 %v10279_v60, %v2515_v47  ;;  %v2949_v44 = vmul.f32 %v10290_v11, %v2511_v50  ;;  %v3164_v18 = vmul.f32 %v9032_v0, %v9032_v0  ;;  %v10343_v47 = vld [vmem:[#allocation29_spill] sm:$0xff]  ;;  %v10348_v27 = vld [vmem:[#allocation34_spill] sm:$0xff] }
 0x413   :  { %v2815_v15 = vadd.f32 %v2799_v20, %v10339_v36  ;;  %v2993_v57 = vrot.slane %v2666_v56, 7  ;;  %v2816_v62 = vadd.f32 %v2800_v48, %v10340_v43  ;;  %v2994_v5 = vrot.slane %v2667_v24, 7  ;;  %v10351_v48 = vld [vmem:[#allocation35_spill] sm:$0xff] }
 0x414   :  { %v3147_v58 = vadd.f32 %v9062_v23, %v8905_v17  ;;  %v2964_v34 = vadd.f32 %v2948_v21, %v10341_v54  ;;  %v2965_v59 = vadd.f32 %v2949_v44, %v10342_v1  ;;  %v10344_v11 = vrot.slane %v10343_v47, 7  ;;  %v10352_v44 = vld [vmem:[#allocation36_spill] sm:$0xff] }
 0x415   :  { %v3006_v61 = vsel %vm3000_vm2, %v2989_v3, %v2993_v57  ;;  %v3122_v2 = vadd.f32 %v3121_v39, %v9024_v6  ;;  %v10346_v49 = vrot.slane %v10345_v31, 7  ;;  %v10347_v14 = vrot.slane %v8875_v41, 7  ;;  %v10349_v39 = vld [vmem:[#allocation32_spill] sm:$0xff] }
 0x416   :  { %v3148_v60 = vadd.f32 %v3147_v58, %v9052_v9  ;;  %v3002_v50 = vsel %vm3000_vm2, %v2993_v57, %v10344_v11  ;;  %v3026_v63 = vsel %vm8901_vm6, %v3006_v61, 0.0  ;;  %v3046_v53 = vrot.slane %v2964_v34, 1 }
 0x417   :  { %v3003_v19 = vsel %vm3000_vm2, %v2994_v5, %v10346_v49  ;;  %v3007_v8 = vsel %vm3000_vm2, %v10347_v14, %v2994_v5  ;;  %v3047_v3 = vrot.slane %v2965_v59, 1  ;;  %v3095_v56 = vadd.f32 %v3026_v63, %v2815_v15 }
 0x418   :  { %v3027_v7 = vsel %vm8901_vm6, %v3007_v8, 0.0  ;;  %v3099_v28 = vadd.f32 %v3002_v50, %v10348_v27  ;;  %v10350_v42 = vrot.slane %v10349_v39, 1  ;;  %v3059_v41 = vsel %vm3053_vm3, %v3042_v13, %v3046_v53 }
 0x419   :  { %v3096_v20 = vadd.f32 %v3027_v7, %v2816_v62  ;;  %v3100_v21 = vadd.f32 %v3003_v19, %v10351_v48  ;;  %v10353_v45 = vrot.slane %v10352_v44, 1  ;;  %v3060_v36 = vsel %vm3053_vm3, %v3043_v4, %v3047_v3  ;;  %v10354_v62 = vld [vmem:[#allocation38_spill] sm:$0xff] }
 0x41a   :  { %v3055_v24 = vsel %vm3053_vm3, %v3046_v53, %v10350_v42  ;;  %v3075_v15 = vsel %vm8916_vm7, %v3059_v41, 0.0  ;;  %v3076_v13 = vsel %vm8916_vm7, %v3060_v36, 0.0  ;;  %v10355_v16 = vsel %vm8640_vm5, %v10354_v62, 0.0 }
 0x41b   :  { %v3056_v58 = vsel %vm3053_vm3, %v3047_v3, %v10353_v45  ;;  %v9121_v55 = vadd.f32 %v3095_v56, %v3055_v24  ;;  %v9126_v57 = vadd.f32 %v8944_v40, %v3075_v15  ;;  %v9134_v54 = vadd.f32 %v3099_v28, %v10355_v16 }
 0x41c   :  { %v9128_v43 = vadd.f32 %v3096_v20, %v3056_v58  ;;  %v3167_v4 = vmul.f32 %v9052_v9, %v9052_v9  ;;  %v9139_v34 = vadd.f32 %v8946_v25, %v3076_v13  ;;  %v10356_v35 = vsel %vm8640_vm5, %v8805_v38, 0.0 }
 0x41d   :  { %v9145_v40 = vadd.f32 %v3100_v21, %v10356_v35  ;;  %v3123_v1 = vrot.slane %v3122_v2, 4  ;;  %v3163_v59 = vmul.f32 %v9062_v23, %v9062_v23  ;;  %v3129_v5 = vadd.f32 %v9126_v57, %v8965_v52 }
 0x41e   :  { %v3161_v47 = vmul.f32 %v9126_v57, %v9126_v57  ;;  %v3149_v11 = vadd.f32 %v3148_v60, %v9058_v22  ;;  %v3138_v25 = vadd.f32 %v9139_v34, %v8967_v12  ;;  %v3162_v32 = vmul.f32 %v9139_v34, %v9139_v34 }
 0x41f   :  { %v3165_v38 = vmul.f32 %v9121_v55, %v9121_v55  ;;  %v3124_v50 = vadd.f32 %v3123_v1, %v3122_v2  ;;  %v3130_v61 = vadd.f32 %v3129_v5, %v9121_v55  ;;  %v3166_v31 = vmul.f32 %v9128_v43, %v9128_v43 }
 0x420   :  { %v3150_v49 = vrot.slane %v3149_v11, 4  ;;  %v3168_v19 = vmul.f32 %v9024_v6, %v9024_v6  ;;  %v3139_v60 = vadd.f32 %v3138_v25, %v9128_v43  ;;  %v3169_v14 = vmul.f32 %v9134_v54, %v9134_v54 }
 0x421   :  { %v3170_v8 = vmul.f32 %v9145_v40, %v9145_v40  ;;  %v3172_v63 = vadd.f32 %v3160_v51, %v8934_v26  ;;  %v3131_v2 = vadd.f32 %v3130_v61, %v9134_v54  ;;  %v3181_v7 = vadd.f32 %v3161_v47, %v9030_v29 }
 0x422   :  { %v3151_v53 = vadd.f32 %v3150_v49, %v3149_v11  ;;  %v3190_v3 = vadd.f32 %v3162_v32, %v9048_v30  ;;  %v3125_v56 = vrot.slane %v3124_v50, 2  ;;  %v3140_v27 = vadd.f32 %v3139_v60, %v9145_v40 }
 0x423   :  { %v3173_v28 = vadd.f32 %v3172_v63, %v3164_v18  ;;  %v3199_v39 = vadd.f32 %v3163_v59, %v8978_v10  ;;  %v3132_v42 = vrot.slane %v3131_v2, 4  ;;  %v3182_v41 = vadd.f32 %v3181_v7, %v3165_v38 }
 0x424   :  { %v3152_v24 = vrot.slane %v3151_v53, 2  ;;  %v3191_v20 = vadd.f32 %v3190_v3, %v3166_v31  ;;  %v3141_v48 = vrot.slane %v3140_v27, 4  ;;  %v3171_v26 = vmul.f32 %v9058_v22, %v9058_v22 }
 0x425   :  { %v3174_v51 = vadd.f32 %v3173_v28, %v3168_v19  ;;  %v3200_v21 = vadd.f32 %v3199_v39, %v3167_v4  ;;  %v3133_v44 = vadd.f32 %v3132_v42, %v3131_v2  ;;  %v3183_v45 = vadd.f32 %v3182_v41, %v3169_v14 }
 0x426   :  { %v3153_v29 = vadd.f32 %v3152_v24, %v3151_v53  ;;  %v3192_v30 = vadd.f32 %v3191_v20, %v3170_v8  ;;  %v3126_v58 = vadd.f32 %v3125_v56, %v3124_v50  ;;  %v3142_v36 = vadd.f32 %v3141_v48, %v3140_v27 }
 0x427   :  { %v3175_v15 = vrot.slane %v3174_v51, 4  ;;  %v3201_v18 = vadd.f32 %v3200_v21, %v3171_v26  ;;  %v3134_v13 = vrot.slane %v3133_v44, 2  ;;  %v3184_v62 = vrot.slane %v3183_v45, 4 }
 0x428   :  { %v3154_v10 = vrot.slane %v3153_v29, 1  ;;  %v3193_v16 = vrot.slane %v3192_v30, 4  ;;  %v3143_v35 = vrot.slane %v3142_v36, 2  ;;  %v3127_v25 = vrot.slane %v3126_v58, 1 }
 0x429   :  { %v3176_v1 = vadd.f32 %v3175_v15, %v3174_v51  ;;  %v3202_v59 = vrot.slane %v3201_v18, 4  ;;  %v3135_v5 = vadd.f32 %v3134_v13, %v3133_v44  ;;  %v3185_v47 = vadd.f32 %v3184_v62, %v3183_v45  ;;  %v3536_v15 = vld [vmem:[#allocation4 + $0x1c0] sm:$0xff] }
 0x42a   :  { %v3194_v11 = vadd.f32 %v3193_v16, %v3192_v30  ;;  %v3144_v4 = vadd.f32 %v3143_v35, %v3142_v36  ;;  %v3155_v31 = vadd.f32 %v3154_v10, %v3153_v29  ;;  %v3128_v53 = vadd.f32 %v3127_v25, %v3126_v58  ;;  %v3664_v13 = vld [vmem:[#allocation4 + $0x5c0] sm:$0xff] }
 0x42b   :  { %v3177_v32 = vrot.slane %v3176_v1, 2  ;;  %v3203_v38 = vadd.f32 %v3202_v59, %v3201_v18  ;;  %v3136_v61 = vrot.slane %v3135_v5, 1  ;;  %v3186_v50 = vrot.slane %v3185_v47, 2  ;;  %v3540_v18 = vld [vmem:[#allocation4 + $0x1e0] sm:$0xff] }
 0x42c   :  { %v3195_v49 = vrot.slane %v3194_v11, 2  ;;  %v3145_v19 = vrot.slane %v3144_v4, 1  ;;  %v6525_v10 = vcombine.high %v3536_v15, %v3540_v18  ;;  %v3668_v62 = vld [vmem:[#allocation4 + $0x5e0] sm:$0xff]  ;;  %v6524_v16 = vcombine.low %v3536_v15, %v3540_v18 }
 0x42d   :  { %v3178_v60 = vadd.f32 %v3177_v32, %v3176_v1  ;;  %v3204_v14 = vrot.slane %v3203_v38, 2  ;;  %v3137_v8 = vadd.f32 %v3136_v61, %v3135_v5  ;;  %v3187_v63 = vadd.f32 %v3186_v50, %v3185_v47  ;;  %v3528_v59 = vld [vmem:[#allocation4 + $0x180] sm:$0xff] }
 0x42e   :  { %v3196_v2 = vadd.f32 %v3195_v49, %v3194_v11  ;;  %v3146_v7 = vadd.f32 %v3145_v19, %v3144_v4  ;;  %v6652_v35 = vcombine.low %v3664_v13, %v3668_v62  ;;  %v6653_v1 = vcombine.high %v3664_v13, %v3668_v62  ;;  %5016 = vmatprep.subr.bf16.mxu0 %v6525_v10  ;;  %v3532_v5 = vld [vmem:[#allocation4 + $0x1a0] sm:$0xff] }
 0x42f   :  { %v3179_v3 = vrot.slane %v3178_v60, 1  ;;  %v3205_v56 = vadd.f32 %v3204_v14, %v3203_v38  ;;  %v3209_v27 = vadd.f32 %v3155_v31, %v3137_v8  ;;  %v3188_v28 = vrot.slane %v3187_v63, 1  ;;  %5017 = vmatpush1.bf16.msra.mxu0 %v6524_v16  ;;  %v3656_v47 = vld [vmem:[#allocation4 + $0x580] sm:$0xff] }
 0x430   :  { %v3197_v39 = vrot.slane %v3196_v2, 1  ;;  %v3208_v42 = vadd.f32 %v3146_v7, %v3128_v53  ;;  %5069 = vmatprep.subr.bf16.mxu1 %v6653_v1  ;;  %v6517_v11 = vcombine.high %v3528_v59, %v3532_v5  ;;  %v3660_v25 = vld [vmem:[#allocation4 + $0x5a0] sm:$0xff]  ;;  %v6516_v4 = vcombine.low %v3528_v59, %v3532_v5 }
 0x431   :  { %v3206_v24 = vrot.slane %v3205_v56, 1  ;;  %v3180_v41 = vadd.f32 %v3179_v3, %v3178_v60  ;;  %v3189_v20 = vadd.f32 %v3188_v28, %v3187_v63  ;;  %5070 = vmatpush1.bf16.msra.mxu1 %v6652_v35  ;;  %v6644_v32 = vcombine.low %v3656_v47, %v3660_v25  ;;  %v3520_v61 = vld [vmem:[#allocation4 + $0x140] sm:$0xff] }
 0x432   :  { %v3198_v48 = vadd.f32 %v3197_v39, %v3196_v2  ;;  %v3212_v26 = vadd.f32 %v3209_v27, %v3208_v42  ;;  %v6645_v38 = vcombine.high %v3656_v47, %v3660_v25  ;;  %5018 = vmatprep.subr.bf16.mxu0 %v6517_v11  ;;  %v3524_v31 = vld [vmem:[#allocation4 + $0x160] sm:$0xff] }
 0x433   :  { %v3207_v51 = vadd.f32 %v3206_v24, %v3205_v56  ;;  %5019 = vmatpush1.bf16.msra.mxu0 %v6516_v4  ;;  %v3648_v50 = vld [vmem:[#allocation4 + $0x540] sm:$0xff]  ;;  %v6509_v49 = vcombine.high %v3520_v61, %v3524_v31  ;;  %v6508_v60 = vcombine.low %v3520_v61, %v3524_v31 }
 0x434   :  { %v3210_v21 = vadd.f32 %v3198_v48, %v3180_v41  ;;  %3214 = vrot.lane.b32.xlu0 %v3212_v26, %s7493_s7  ;;  %5071 = vmatprep.subr.bf16.mxu1 %v6645_v38  ;;  %v3652_v19 = vld [vmem:[#allocation4 + $0x560] sm:$0xff] }
 0x435   :  { %v3211_v44 = vadd.f32 %v3207_v51, %v3189_v20  ;;  %5072 = vmatpush1.bf16.msra.mxu1 %v6644_v32  ;;  %v6636_v14 = vcombine.low %v3648_v50, %v3652_v19  ;;  %v6637_v8 = vcombine.high %v3648_v50, %v3652_v19  ;;  %5020 = vmatprep.subr.bf16.mxu0 %v6509_v49  ;;  %v3512_v63 = vld [vmem:[#allocation4 + $0x100] sm:$0xff] }
 0x436   :  { %v3516_v2 = vld [vmem:[#allocation4 + $0x120] sm:$0xff] }
 0x437   :  { %v3213_v29 = vadd.f32 %v3211_v44, %v3210_v21  ;;  %5073 = vmatprep.subr.bf16.mxu1 %v6637_v8  ;;  %5021 = vmatpush1.bf16.msra.mxu0 %v6508_v60  ;;  %v3640_v53 = vld [vmem:[#allocation4 + $0x500] sm:$0xff]  ;;  %v6500_v7 = vcombine.low %v3512_v63, %v3516_v2  ;;  %v6501_v3 = vcombine.high %v3512_v63, %v3516_v2 }
 0x438   :  { %v3644_v56 = vld [vmem:[#allocation4 + $0x520] sm:$0xff] }
 0x439   :  { %3217 = vrot.lane.b32.xlu1 %v3213_v29, %s7493_s7  ;;  %5074 = vmatpush1.bf16.msra.mxu1 %v6636_v14  ;;  %v3504_v27 = vld [vmem:[#allocation4 + $0xc0] sm:$0xff]  ;;  %v6628_v39 = vcombine.low %v3640_v53, %v3644_v56  ;;  %v6629_v42 = vcombine.high %v3640_v53, %v3644_v56 }
 0x43a   :  { %v3508_v28 = vld [vmem:[#allocation4 + $0xe0] sm:$0xff]  ;;  %5022 = vmatprep.subr.bf16.mxu0 %v6501_v3 }
 0x43b   :  { %v6493_v24 = vcombine.high %v3504_v27, %v3508_v28  ;;  %v3632_v41 = vld [vmem:[#allocation4 + $0x4c0] sm:$0xff]  ;;  %5075 = vmatprep.subr.bf16.mxu1 %v6629_v42  ;;  %5023 = vmatpush1.bf16.msra.mxu0 %v6500_v7 }
 0x43c   :  { %v3636_v20 = vld [vmem:[#allocation4 + $0x4e0] sm:$0xff] }
 0x43d   :  { %v3496_v48 = vld [vmem:[#allocation4 + $0x80] sm:$0xff]  ;;  %5076 = vmatpush1.bf16.msra.mxu1 %v6628_v39  ;;  %5024 = vmatprep.subr.bf16.mxu0 %v6493_v24 }
 0x43e   :  { %v3500_v51 = vld [vmem:[#allocation4 + $0xa0] sm:$0xff] }
 0x43f   :  { %v3624_v21 = vld [vmem:[#allocation4 + $0x480] sm:$0xff]  ;;  %v6484_v16 = vcombine.low %v3496_v48, %v3500_v51 }
 0x440   :  { %v3628_v44 = vld [vmem:[#allocation4 + $0x4a0] sm:$0xff] }
 0x441   :  { %v6613_v15 = vcombine.high %v3624_v21, %v3628_v44  ;;  %v3488_v18 = vld [vmem:[#allocation4 + $0x40] sm:$0xff]  ;;  %v6612_v35 = vcombine.low %v3624_v21, %v3628_v44 }
 0x442   :  { %v3492_v13 = vld [vmem:[#allocation4 + $0x60] sm:$0xff] }
 0x443   :  { %v3616_v10 = vld [vmem:[#allocation4 + $0x440] sm:$0xff]  ;;  %v6477_v1 = vcombine.high %v3488_v18, %v3492_v13  ;;  %v6476_v4 = vcombine.low %v3488_v18, %v3492_v13 }
 0x444   :  { %v3620_v62 = vld [vmem:[#allocation4 + $0x460] sm:$0xff] }
 0x445   :  { %v6605_v59 = vcombine.high %v3616_v10, %v3620_v62  ;;  %v3480_v5 = vld [vmem:[#allocation4] sm:$0xff]  ;;  %v6604_v32 = vcombine.low %v3616_v10, %v3620_v62 }
 0x446   :  { %v3484_v47 = vld [vmem:[#allocation4 + $0x20] sm:$0xff] }
 0x447   :  { %v3608_v11 = vld [vmem:[#allocation4 + $0x400] sm:$0xff]  ;;  %v6469_v38 = vcombine.high %v3480_v5, %v3484_v47  ;;  %v6468_v60 = vcombine.low %v3480_v5, %v3484_v47 }
 0x448   :  { %v3612_v25 = vld [vmem:[#allocation4 + $0x420] sm:$0xff] }
 0x449   :  { %v6597_v61 = vcombine.high %v3608_v11, %v3612_v25  ;;  %v3600_v31 = vld [vmem:[#allocation4 + $0x3c0] sm:$0xff]  ;;  %v6596_v14 = vcombine.low %v3608_v11, %v3612_v25 }
 0x44a   :  { %v3604_v50 = vld [vmem:[#allocation4 + $0x3e0] sm:$0xff] }
 0x44b   :  { %v3728_v49 = vld [vmem:[#allocation4 + $0x7c0] sm:$0xff]  ;;  %v6589_v8 = vcombine.high %v3600_v31, %v3604_v50  ;;  %v6588_v56 = vcombine.low %v3600_v31, %v3604_v50 }
 0x44c   :  { %v3732_v19 = vld [vmem:[#allocation4 + $0x7e0] sm:$0xff] }
 0x44d   :  { %v6717_v63 = vcombine.high %v3728_v49, %v3732_v19  ;;  %v3592_v2 = vld [vmem:[#allocation4 + $0x380] sm:$0xff] }
 0x44e   :  { %v3596_v53 = vld [vmem:[#allocation4 + $0x3a0] sm:$0xff] }
 0x44f   :  { %v3720_v7 = vld [vmem:[#allocation4 + $0x780] sm:$0xff] }
 0x450   :  { %v3724_v3 = vld [vmem:[#allocation4 + $0x7a0] sm:$0xff] }
 0x451   :  { %v6709_v39 = vcombine.high %v3720_v7, %v3724_v3  ;;  %v3584_v42 = vld [vmem:[#allocation4 + $0x340] sm:$0xff] }
 0x452   :  { %v3588_v24 = vld [vmem:[#allocation4 + $0x360] sm:$0xff] }
 0x453   :  { %v3576_v44 = vld [vmem:[#allocation4 + $0x300] sm:$0xff] }
 0x454   :  { %v3568_v62 = vld [vmem:[#allocation4 + $0x2c0] sm:$0xff] }
 0x455   :  { %v3560_v25 = vld [vmem:[#allocation4 + $0x280] sm:$0xff] }
 0x4a6   :  { %v3215_v45 = vpop.permute.xlu0 %3214 }
 0x4a7   :  { %v9180_v30 = vadd.f32 %v3215_v45, %v3212_v26  ;;  %v6621_v26 = vcombine.high %v3632_v41, %v3636_v20  ;;  %v6620_v45 = vcombine.low %v3632_v41, %v3636_v20  ;;  %v3712_v41 = vld [vmem:[#allocation4 + $0x740] sm:$0xff] }
 0x4a8   :  { %v3716_v20 = vld [vmem:[#allocation4 + $0x760] sm:$0xff] }
 0x4a9   :  { %3220 = vrot.lane.b32.xlu0 %v9180_v30, %s7492_s24  ;;  %5077 = vmatprep.subr.bf16.mxu1 %v6621_v26  ;;  %v6708_v26 = vcombine.low %v3720_v7, %v3724_v3  ;;  %v6701_v21 = vcombine.high %v3712_v41, %v3716_v20  ;;  %v6700_v18 = vcombine.low %v3712_v41, %v3716_v20  ;;  %v3544_v3 = vld [vmem:[#allocation4 + $0x200] sm:$0xff] }
 0x4aa   :  { %5078 = vmatpush1.bf16.msra.mxu1 %v6620_v45  ;;  %v3704_v45 = vld [vmem:[#allocation4 + $0x700] sm:$0xff] }
 0x4ab   :  { %v3218_v58 = vpop.permute.xlu1 %3217  ;;  %5079 = vmatprep.subr.bf16.mxu1 %v6613_v15  ;;  %v6572_v15 = vcombine.low %v3584_v42, %v3588_v24 }
 0x4ac   :  { %v9184_v36 = vadd.f32 %v3218_v58, %v3213_v29  ;;  %v6492_v29 = vcombine.low %v3504_v27, %v3508_v28  ;;  %v6485_v58 = vcombine.high %v3496_v48, %v3500_v51  ;;  %v6716_v27 = vcombine.low %v3728_v49, %v3732_v19  ;;  %v3552_v19 = vld [vmem:[#allocation4 + $0x240] sm:$0xff] }
 0x4ad   :  { %v6581_v28 = vcombine.high %v3592_v2, %v3596_v53  ;;  %v6580_v48 = vcombine.low %v3592_v2, %v3596_v53  ;;  %v6573_v51 = vcombine.high %v3584_v42, %v3588_v24 }
 0x4ae   :  { %3223 = vrot.lane.b32.xlu1 %v9184_v36, %s7492_s24  ;;  %5025 = vmatpush1.bf16.msra.mxu0 %v6492_v29  ;;  %v3580_v29 = vld [vmem:[#allocation4 + $0x320] sm:$0xff] }
 0x4af   :  { %5026 = vmatprep.subr.bf16.mxu0 %v6485_v58  ;;  %5080 = vmatpush1.bf16.msra.mxu1 %v6612_v35  ;;  %v3708_v58 = vld [vmem:[#allocation4 + $0x720] sm:$0xff]  ;;  %v6565_v13 = vcombine.high %v3576_v44, %v3580_v29 }
 0x4b0   :  { %5081 = vmatprep.subr.bf16.mxu1 %v6605_v59  ;;  %v6693_v10 = vcombine.high %v3704_v45, %v3708_v58  ;;  %v3696_v35 = vld [vmem:[#allocation4 + $0x6c0] sm:$0xff]  ;;  %v6564_v59 = vcombine.low %v3576_v44, %v3580_v29  ;;  %v6692_v5 = vcombine.low %v3704_v45, %v3708_v58  ;;  %v9196_v29 = vld [vmem:[#allocation4 + $0x5e8] sm:$0xff] }
 0x4b2   :  { %5027 = vmatpush1.bf16.msra.mxu0 %v6484_v16  ;;  %v3572_v16 = vld [vmem:[#allocation4 + $0x2e0] sm:$0xff] }
 0x4b3   :  { %5028 = vmatprep.subr.bf16.mxu0 %v6477_v1  ;;  %5082 = vmatpush1.bf16.msra.mxu1 %v6604_v32  ;;  %v3700_v1 = vld [vmem:[#allocation4 + $0x6e0] sm:$0xff]  ;;  %v6557_v47 = vcombine.high %v3568_v62, %v3572_v16 }
 0x4b4   :  { %5083 = vmatprep.subr.bf16.mxu1 %v6597_v61  ;;  %v6685_v11 = vcombine.high %v3696_v35, %v3700_v1  ;;  %v3688_v32 = vld [vmem:[#allocation4 + $0x680] sm:$0xff]  ;;  %v6556_v61 = vcombine.low %v3568_v62, %v3572_v16  ;;  %v6684_v31 = vcombine.low %v3696_v35, %v3700_v1 }
 0x4b6   :  { %5029 = vmatpush1.bf16.msra.mxu0 %v6476_v4  ;;  %v3564_v4 = vld [vmem:[#allocation4 + $0x2a0] sm:$0xff] }
 0x4b7   :  { %5030 = vmatprep.subr.bf16.mxu0 %v6469_v38  ;;  %5084 = vmatpush1.bf16.msra.mxu1 %v6596_v14  ;;  %v3692_v38 = vld [vmem:[#allocation4 + $0x6a0] sm:$0xff]  ;;  %v6549_v50 = vcombine.high %v3560_v25, %v3564_v4 }
 0x4b8   :  { %5085 = vmatprep.subr.bf16.mxu1 %v6717_v63  ;;  %v6677_v49 = vcombine.high %v3688_v32, %v3692_v38  ;;  %v3680_v14 = vld [vmem:[#allocation4 + $0x640] sm:$0xff]  ;;  %v6548_v63 = vcombine.low %v3560_v25, %v3564_v4  ;;  %v6676_v2 = vcombine.low %v3688_v32, %v3692_v38 }
 0x4b9   :  { %v10357_v4 = vld [vmem:[#allocation8_spill] sm:$0xff] }
 0x4ba   :  { %5031 = vmatpush1.bf16.msra.mxu0 %v6468_v60  ;;  %v3556_v60 = vld [vmem:[#allocation4 + $0x260] sm:$0xff] }
 0x4bb   :  { %5032 = vmatprep.subr.bf16.mxu0 %v6589_v8  ;;  %5086 = vmatpush2.bf16.msra.mxu1 %v6716_v27  ;;  %v3684_v8 = vld [vmem:[#allocation4 + $0x660] sm:$0xff]  ;;  %v6541_v53 = vcombine.high %v3552_v19, %v3556_v60 }
 0x4bc   :  { %5087 = vmatprep.subr.bf16.mxu1 %v6709_v39  ;;  %v6669_v7 = vcombine.high %v3680_v14, %v3684_v8  ;;  %v3672_v27 = vld [vmem:[#allocation4 + $0x600] sm:$0xff]  ;;  %v6540_v39 = vcombine.low %v3552_v19, %v3556_v60  ;;  %v6668_v42 = vcombine.low %v3680_v14, %v3684_v8  ;;  %v10360_v60 = vld [vmem:[#allocation11_spill] sm:$0xff] }
 0x4bd   :  { %v10361_v8 = vld [vmem:[#allocation12_spill] sm:$0xff] }
 0x4be   :  { %5033 = vmatpush2.bf16.msra.mxu0 %v6588_v56  ;;  %v3548_v56 = vld [vmem:[#allocation4 + $0x220] sm:$0xff] }
 0x4bf   :  { %5034 = vmatprep.subr.bf16.mxu0 %v6581_v28  ;;  %5088 = vmatpush2.bf16.msra.mxu1 %v6708_v26  ;;  %v3676_v28 = vld [vmem:[#allocation4 + $0x620] sm:$0xff]  ;;  %v6533_v24 = vcombine.high %v3544_v3, %v3548_v56  ;;  %v6532_v20 = vcombine.low %v3544_v3, %v3548_v56  ;;  %v9188_v26 = vld [vmem:[#allocation4 + $0x1c8] sm:$0xff] }
 0x4c0   :  { %5089 = vmatprep.subr.bf16.mxu1 %v6701_v21  ;;  %v6661_v41 = vcombine.high %v3672_v27, %v3676_v28  ;;  %v9192_v21 = vld [vmem:[#allocation4 + $0x5c8] sm:$0xff] }
 0x4c1   :  { %v6654_v58 = vcombine.low %v9192_v21, %v9196_v29 }
 0x4c2   :  { %5035 = vmatpush2.bf16.msra.mxu0 %v6580_v48  ;;  %v6660_v48 = vcombine.low %v3672_v27, %v3676_v28 }
 0x4c3   :  { %5036 = vmatprep.subr.bf16.mxu0 %v6573_v51  ;;  %5090 = vmatpush2.bf16.msra.mxu1 %v6700_v18  ;;  %v9190_v51 = vld [vmem:[#allocation4 + $0x1e8] sm:$0xff] }
 0x4c4   :  { %5091 = vmatprep.subr.bf16.mxu1 %v6693_v10  ;;  %v6527_v44 = vcombine.high %v9188_v26, %v9190_v51  ;;  %v6526_v45 = vcombine.low %v9188_v26, %v9190_v51 }
 0x4c6   :  { %5037 = vmatpush2.bf16.msra.mxu0 %v6572_v15  ;;  %v6655_v15 = vcombine.high %v9192_v21, %v9196_v29  ;;  %v3641_v29 = vld [vmem:[#allocation4 + $0x508] sm:$0xff] }
 0x4c7   :  { %5038 = vmatprep.subr.bf16.mxu0 %v6565_v13  ;;  %5092 = vmatpush2.bf16.msra.mxu1 %v6692_v5 }
 0x4c8   :  { %5093 = vmatprep.subr.bf16.mxu1 %v6685_v11 }
 0x4ca   :  { %5039 = vmatpush2.bf16.msra.mxu0 %v6564_v59 }
 0x4cb   :  { %5040 = vmatprep.subr.bf16.mxu0 %v6557_v47  ;;  %5094 = vmatpush2.bf16.msra.mxu1 %v6684_v31 }
 0x4cc   :  { %5095 = vmatprep.subr.bf16.mxu1 %v6677_v49  ;;  %v10359_v49 = vld [vmem:[#allocation10_spill] sm:$0xff] }
 0x4ce   :  { %5041 = vmatpush2.bf16.msra.mxu0 %v6556_v61  ;;  %v3118_v61 = vld [vmem:[%s10114_s5] sm:$0xf] }
 0x4cf   :  { %5042 = vmatprep.subr.bf16.mxu0 %v6549_v50  ;;  %5096 = vmatpush2.bf16.msra.mxu1 %v6676_v2  ;;  %v10358_v50 = vld [vmem:[#allocation9_spill] sm:$0xff] }
 0x4d0   :  { %5097 = vmatprep.subr.bf16.mxu1 %v6669_v7 }
 0x4d2   :  { %5043 = vmatpush2.bf16.msra.mxu0 %v6548_v63 }
 0x4d3   :  { %5044 = vmatprep.subr.bf16.mxu0 %v6541_v53  ;;  %5098 = vmatpush2.bf16.msra.mxu1 %v6668_v42 }
 0x4d4   :  { %5099 = vmatprep.subr.bf16.mxu1 %v6661_v41 }
 0x4d6   :  { %5045 = vmatpush2.bf16.msra.mxu0 %v6540_v39 }
 0x4d7   :  { %5046 = vmatprep.subr.bf16.mxu0 %v6533_v24  ;;  %5100 = vmatpush2.bf16.msra.mxu1 %v6660_v48  ;;  %v3119_v24 = vld [vmem:[%s10115_s6] sm:$0xf] }
 0x4d8   :  { %5175 = vmatprep.subr.bf16.mxu1 %v6655_v15 }
 0x4da   :  { %5047 = vmatpush2.bf16.msra.mxu0 %v6532_v20 }
 0x4db   :  { %5122 = vmatprep.subr.bf16.mxu0 %v6527_v44 }
 0x51b   :  { %v3221_v18 = vpop.permute.xlu0 %3220 }
 0x51c   :  { %v3222_v13 = vadd.f32 %v3221_v18, %v9180_v30 }
 0x51e   :  { %v3226_v10 = vmul.f32 0.001953125, %v3222_v13 }
 0x520   :  { %v3224_v62 = vpop.permute.xlu1 %3223  ;;  %v3228_v35 = vmul.f32 %v3226_v10, %v3226_v10 }
 0x521   :  { %v3225_v16 = vadd.f32 %v3224_v62, %v9184_v36 }
 0x523   :  { %v3227_v1 = vmul.f32 0.001953125, %v3225_v16 }
 0x525   :  { %v3229_v59 = vsub.f32 %v3227_v1, %v3228_v35 }
 0x527   :  { %v3230_v5 = vmax.f32 %v3229_v59, 0.0 }
 0x529   :  { %v3231_v47 = vadd.f32 1e-05, %v3230_v5 }
 0x52b   :  { %7215 = vrsqrt.f32 %v3231_v47 }
 0x538   :  { %v7216_v11 = vpop.eup %7215 }
 0x539   :  { %v3234_v25 = vcombine.low %v7216_v11, %v7216_v11 }
 0x53b   :  { %v3241_v32 = vrot.slane %v3234_v25, %v10357_v4 }
 0x53d   :  { %v3242_v38 = vcombine.low %v3241_v32, %v3241_v32 }
 0x53f   :  { %v3249_v30 = vrot.slane %v3242_v38, %v10357_v4 }
 0x541   :  { %v3251_v31 = vmul.f32 %v3249_v30, %v3118_v61 }
 0x543   :  { %v3256_v36 = vrot.slane %v3251_v31, %v10358_v50  ;;  %v3260_v19 = vrot.slane %v3251_v31, %v10359_v49  ;;  %v9214_v14 = vrot.slane %v3251_v31, %v10360_v60  ;;  %v3268_v63 = vrot.slane %v3251_v31, %v10361_v8 }
 0x545   :  { %v3273_v2 = vmul.f32 %v3256_v36, %v3226_v10  ;;  %v3274_v53 = vmul.f32 %v3260_v19, %v3226_v10  ;;  %v3275_v7 = vmul.f32 %v9214_v14, %v3226_v10  ;;  %v3276_v3 = vmul.f32 %v3268_v63, %v3226_v10 }
 0x546   :  { %v3308_v48 = vmul.f32 %v3260_v19, %v8965_v52  ;;  %v3312_v44 = vmul.f32 %v3260_v19, %v9126_v57  ;;  %v3310_v15 = vmul.f32 %v3268_v63, %v8905_v17  ;;  %v3314_v18 = vmul.f32 %v3268_v63, %v9062_v23 }
 0x547   :  { %v3281_v56 = vcombine.low %v3273_v2, %v3274_v53  ;;  %v3282_v27 = vcombine.low %v3275_v7, %v3276_v3  ;;  %v3307_v35 = vmul.f32 %v3256_v36, %v8867_v33  ;;  %v3311_v1 = vmul.f32 %v3256_v36, %v9018_v46 }
 0x548   :  { %v3309_v52 = vmul.f32 %v9214_v14, %v8967_v12  ;;  %v3313_v33 = vmul.f32 %v9214_v14, %v9139_v34  ;;  %v3316_v46 = vmul.f32 %v3260_v19, %v9121_v55  ;;  %v3320_v30 = vmul.f32 %v3260_v19, %v9134_v54 }
 0x549   :  { %v3289_v28 = vrot.slane %v3281_v56, %v10357_v4  ;;  %v3296_v39 = vrot.slane %v3282_v27, %v10357_v4  ;;  %v3318_v55 = vmul.f32 %v3268_v63, %v9052_v9  ;;  %v3322_v7 = vmul.f32 %v3268_v63, %v9058_v22 }
 0x54a   :  { %v3315_v54 = vmul.f32 %v3256_v36, %v9032_v0  ;;  %v3319_v9 = vmul.f32 %v3256_v36, %v9024_v6  ;;  %v3317_v22 = vmul.f32 %v9214_v14, %v9128_v43  ;;  %v3321_v0 = vmul.f32 %v9214_v14, %v9145_v40 }
 0x54b   :  { %v3297_v42 = vcombine.low %v3289_v28, %v3296_v39 }
 0x54d   :  { %v3304_v41 = vrot.slane %v3297_v42, %v10357_v4 }
 0x54f   :  { %v3306_v20 = vsub.f32 %v3119_v24, %v3304_v41 }
 0x551   :  { %v3331_v13 = vrot.slane %v3306_v20, %v10359_v49  ;;  %v3339_v10 = vrot.slane %v3306_v20, %v10361_v8  ;;  %v3327_v62 = vrot.slane %v3306_v20, %v10358_v50  ;;  %v3335_v16 = vrot.slane %v3306_v20, %v10360_v60 }
 0x553   :  { %v9236_v57 = vadd.f32 %v3331_v13, %v3308_v48  ;;  %v9238_v17 = vadd.f32 %v3331_v13, %v3312_v44  ;;  %v9240_v23 = vadd.f32 %v3339_v10, %v3310_v15  ;;  %v9242_v59 = vadd.f32 %v3339_v10, %v3314_v18 }
 0x554   :  { %v9244_v5 = vadd.f32 %v3327_v62, %v3307_v35  ;;  %v9246_v47 = vadd.f32 %v3327_v62, %v3311_v1  ;;  %v9254_v32 = vadd.f32 %v3335_v16, %v3309_v52  ;;  %v9257_v61 = vadd.f32 %v3335_v16, %v3313_v33 }
 0x555   :  { %v6453_v11 = vmul.f32 -1.442695, %v9236_v57  ;;  %v6457_v12 = vmul.f32 -1.442695, %v9238_v17  ;;  %v6455_v25 = vmul.f32 -1.442695, %v9240_v23  ;;  %v9261_v34 = vadd.f32 %v3331_v13, %v3316_v46 }
 0x556   :  { %v6459_v38 = vmul.f32 -1.442695, %v9242_v59  ;;  %v6452_v31 = vmul.f32 -1.442695, %v9244_v5  ;;  %v6456_v2 = vmul.f32 -1.442695, %v9246_v47  ;;  %v9265_v53 = vadd.f32 %v3331_v13, %v3320_v30 }
 0x557   :  { %7217 = vpow2.f32 %v6453_v11  ;;  %v6454_v3 = vmul.f32 -1.442695, %v9254_v32  ;;  %v9269_v56 = vadd.f32 %v3339_v10, %v3318_v55  ;;  %v6458_v19 = vmul.f32 -1.442695, %v9257_v61 }
 0x558   :  { %7219 = vpow2.f32 %v6457_v12  ;;  %v9273_v27 = vadd.f32 %v3339_v10, %v3322_v7  ;;  %v6461_v28 = vmul.f32 -1.442695, %v9261_v34  ;;  %v9277_v39 = vadd.f32 %v3327_v62, %v3315_v54 }
 0x559   :  { %7221 = vpow2.f32 %v6455_v25  ;;  %v6465_v63 = vmul.f32 -1.442695, %v9265_v53  ;;  %v9282_v42 = vadd.f32 %v3327_v62, %v3319_v9  ;;  %v6463_v24 = vmul.f32 -1.442695, %v9269_v56 }
 0x55a   :  { %7223 = vpow2.f32 %v6459_v38  ;;  %v9287_v6 = vadd.f32 %v3335_v16, %v3317_v22  ;;  %v6467_v36 = vmul.f32 -1.442695, %v9273_v27  ;;  %v9290_v41 = vadd.f32 %v3335_v16, %v3321_v0 }
 0x55b   :  { %7225 = vpow2.f32 %v6452_v31  ;;  %v6460_v43 = vmul.f32 -1.442695, %v9277_v39  ;;  %v6464_v20 = vmul.f32 -1.442695, %v9282_v42 }
 0x55c   :  { %7227 = vpow2.f32 %v6456_v2  ;;  %v6462_v48 = vmul.f32 -1.442695, %v9287_v6  ;;  %v6466_v40 = vmul.f32 -1.442695, %v9290_v41 }
 0x55d   :  { %7229 = vpow2.f32 %v6454_v3 }
 0x55e   :  { %7231 = vpow2.f32 %v6458_v19 }
 0x55f   :  { %7233 = vpow2.f32 %v6461_v28 }
 0x560   :  { %7235 = vpow2.f32 %v6465_v63 }
 0x561   :  { %7237 = vpow2.f32 %v6463_v24 }
 0x562   :  { %7239 = vpow2.f32 %v6467_v36 }
 0x563   :  { %7241 = vpow2.f32 %v6460_v43 }
 0x564   :  { %v7218_v14 = vpop.eup %7217  ;;  %7243 = vpow2.f32 %v6464_v20 }
 0x565   :  { %v7220_v44 = vpop.eup %7219  ;;  %v3409_v15 = vadd.f32 1.0, %v7218_v14  ;;  %7245 = vpow2.f32 %v6462_v48 }
 0x566   :  { %v7222_v18 = vpop.eup %7221  ;;  %v3413_v13 = vadd.f32 1.0, %v7220_v44  ;;  %7247 = vpow2.f32 %v6466_v40 }
 0x567   :  { %v7224_v10 = vpop.eup %7223  ;;  %7249 = vrcp.f32 %v3409_v15  ;;  %v3411_v62 = vadd.f32 1.0, %v7222_v18 }
 0x568   :  { %v7226_v16 = vpop.eup %7225  ;;  %7251 = vrcp.f32 %v3413_v13  ;;  %v3415_v35 = vadd.f32 1.0, %v7224_v10 }
 0x569   :  { %v7228_v1 = vpop.eup %7227  ;;  %7253 = vrcp.f32 %v3411_v62  ;;  %v3408_v52 = vadd.f32 1.0, %v7226_v16 }
 0x56a   :  { %v7230_v33 = vpop.eup %7229  ;;  %7255 = vrcp.f32 %v3415_v35  ;;  %v3412_v46 = vadd.f32 1.0, %v7228_v1  ;;  %v3529_v35 = vld [vmem:[#allocation4 + $0x188] sm:$0xff] }
 0x56b   :  { %v7232_v11 = vpop.eup %7231  ;;  %7257 = vrcp.f32 %v3408_v52  ;;  %v3410_v12 = vadd.f32 1.0, %v7230_v33  ;;  %v3533_v1 = vld [vmem:[#allocation4 + $0x1a8] sm:$0xff] }
 0x56c   :  { %v7234_v25 = vpop.eup %7233  ;;  %7259 = vrcp.f32 %v3412_v46  ;;  %v3414_v38 = vadd.f32 1.0, %v7232_v11  ;;  %v3657_v46 = vld [vmem:[#allocation4 + $0x588] sm:$0xff] }
 0x56d   :  { %v7236_v30 = vpop.eup %7235  ;;  %7261 = vrcp.f32 %v3410_v12  ;;  %v3417_v31 = vadd.f32 1.0, %v7234_v25  ;;  %v3661_v11 = vld [vmem:[#allocation4 + $0x5a8] sm:$0xff]  ;;  %v6519_v25 = vcombine.high %v3529_v35, %v3533_v1 }
 0x56e   :  { %v7238_v55 = vpop.eup %7237  ;;  %7263 = vrcp.f32 %v3414_v38  ;;  %v3421_v2 = vadd.f32 1.0, %v7236_v30  ;;  %v6646_v26 = vcombine.low %v3657_v46, %v3661_v11 }
 0x56f   :  { %v7240_v7 = vpop.eup %7239  ;;  %7265 = vrcp.f32 %v3417_v31  ;;  %v3419_v3 = vadd.f32 1.0, %v7238_v55  ;;  %v3521_v31 = vld [vmem:[#allocation4 + $0x148] sm:$0xff] }
 0x570   :  { %v7242_v54 = vpop.eup %7241  ;;  %7267 = vrcp.f32 %v3421_v2  ;;  %v3423_v19 = vadd.f32 1.0, %v7240_v7  ;;  %v3525_v55 = vld [vmem:[#allocation4 + $0x168] sm:$0xff]  ;;  %v6647_v7 = vcombine.high %v3657_v46, %v3661_v11 }
 0x571   :  { %v7244_v9 = vpop.eup %7243  ;;  %7269 = vrcp.f32 %v3419_v3  ;;  %v3416_v28 = vadd.f32 1.0, %v7242_v54  ;;  %v6518_v54 = vcombine.low %v3529_v35, %v3533_v1  ;;  %v3497_v35 = vld [vmem:[#allocation4 + $0x88] sm:$0xff] }
 0x572   :  { %v7246_v22 = vpop.eup %7245  ;;  %7271 = vrcp.f32 %v3423_v19  ;;  %v3420_v63 = vadd.f32 1.0, %v7244_v9  ;;  %v3649_v19 = vld [vmem:[#allocation4 + $0x548] sm:$0xff] }
 0x573   :  { %v7248_v0 = vpop.eup %7247  ;;  %7273 = vrcp.f32 %v3416_v28  ;;  %v3418_v24 = vadd.f32 1.0, %v7246_v22  ;;  %v3501_v1 = vld [vmem:[#allocation4 + $0xa8] sm:$0xff] }
 0x574   :  { %v7250_v36 = vpop.eup %7249  ;;  %7275 = vrcp.f32 %v3420_v63  ;;  %v3422_v43 = vadd.f32 1.0, %v7248_v0  ;;  %v6487_v46 = vcombine.high %v3497_v35, %v3501_v1 }
 0x575   :  { %v7252_v20 = vpop.eup %7251  ;;  %v3457_v48 = vmul.f32 %v7250_v36, %v9236_v57  ;;  %7277 = vrcp.f32 %v3418_v24 }
 0x576   :  { %v7254_v40 = vpop.eup %7253  ;;  %v3461_v14 = vmul.f32 %v7252_v20, %v9238_v17  ;;  %7279 = vrcp.f32 %v3422_v43  ;;  %v6510_v20 = vcombine.low %v3521_v31, %v3525_v55 }
 0x577   :  { %v7256_v44 = vpop.eup %7255  ;;  %v3459_v15 = vmul.f32 %v7254_v40, %v9240_v23 }
 0x578   :  { %v7258_v18 = vpop.eup %7257  ;;  %v9299_v13 = vpack.c.bf16 %v3461_v14, %v3457_v48  ;;  %v3463_v10 = vmul.f32 %v7256_v44, %v9242_v59  ;;  %v3505_v44 = vld [vmem:[#allocation4 + $0xc8] sm:$0xff] }
 0x579   :  { %v7260_v62 = vpop.eup %7259  ;;  %v3456_v16 = vmul.f32 %v7258_v18, %v9244_v5 }
 0x57a   :  { %v7262_v52 = vpop.eup %7261  ;;  %5048 = vmatprep.mubr.bf16.mxu0 %v9299_v13  ;;  %v9304_v57 = vpack.c.bf16 %v3463_v10, %v3459_v15  ;;  %v3460_v17 = vmul.f32 %v7260_v62, %v9246_v47  ;;  %v3509_v15 = vld [vmem:[#allocation4 + $0xe8] sm:$0xff] }
 0x57b   :  { %v7264_v33 = vpop.eup %7263  ;;  %v3458_v23 = vmul.f32 %v7262_v52, %v9254_v32  ;;  %v3633_v10 = vld [vmem:[#allocation4 + $0x4c8] sm:$0xff] }
 0x57c   :  { %v7266_v12 = vpop.eup %7265  ;;  %5101 = vmatprep.mubr.bf16.mxu1 %v9304_v57  ;;  %v9309_v59 = vpack.c.bf16 %v3460_v17, %v3456_v16  ;;  %v3462_v5 = vmul.f32 %v7264_v33, %v9257_v61  ;;  %v3637_v62 = vld [vmem:[#allocation4 + $0x4e8] sm:$0xff]  ;;  %v6494_v17 = vcombine.low %v3505_v44, %v3509_v15 }
 0x57d   :  { %v7268_v38 = vpop.eup %7267  ;;  %v3465_v30 = vmul.f32 %v7266_v12, %v9261_v34  ;;  %v3653_v34 = vld [vmem:[#allocation4 + $0x568] sm:$0xff]  ;;  %v6623_v52 = vcombine.high %v3633_v10, %v3637_v62  ;;  %v6622_v11 = vcombine.low %v3633_v10, %v3637_v62 }
 0x57e   :  { %v7270_v2 = vpop.eup %7269  ;;  %5049 = vmatmul.mubr.bf16.vlgmr.msra.gmra.mxu0 %v9309_v59  ;;  %v9314_v47 = vpack.c.bf16 %v3462_v5, %v3458_v23  ;;  %v3469_v32 = vmul.f32 %v7268_v38, %v9265_v53  ;;  %v6511_v53 = vcombine.high %v3521_v31, %v3525_v55  ;;  %v6639_v36 = vcombine.high %v3649_v19, %v3653_v34  ;;  %v3625_v33 = vld [vmem:[#allocation4 + $0x488] sm:$0xff] }
 0x57f   :  { %v7272_v3 = vpop.eup %7271  ;;  %5123 = vmatpush1.bf16.msra.mxu0 %v6526_v45  ;;  %v3467_v61 = vmul.f32 %v7270_v2, %v9269_v56  ;;  %v3513_v45 = vld [vmem:[#allocation4 + $0x108] sm:$0xff]  ;;  %v6638_v14 = vcombine.low %v3649_v19, %v3653_v34  ;;  %v6486_v38 = vcombine.low %v3497_v35, %v3501_v1 }
 0x580   :  { %v7274_v9 = vpop.eup %7273  ;;  %5102 = vmatmul.mubr.bf16.vlgmr.msra.gmra.mxu1 %v9314_v47  ;;  %v9322_v28 = vpack.c.bf16 %v3469_v32, %v3465_v30  ;;  %v3471_v22 = vmul.f32 %v7272_v3, %v9273_v27  ;;  %5124 = vmatprep.subr.bf16.mxu0 %v6519_v25  ;;  %v3517_v56 = vld [vmem:[#allocation4 + $0x128] sm:$0xff] }
 0x581   :  { %v7276_v63 = vpop.eup %7275  ;;  %5176 = vmatpush1.bf16.msra.mxu1 %v6654_v58  ;;  %v3464_v51 = vmul.f32 %v7274_v9, %v9277_v39  ;;  %v3645_v58 = vld [vmem:[#allocation4 + $0x528] sm:$0xff]  ;;  %v6503_v40 = vcombine.high %v3513_v45, %v3517_v56  ;;  %v6502_v18 = vcombine.low %v3513_v45, %v3517_v56 }
 0x582   :  { %v7278_v0 = vpop.eup %7277  ;;  %5058 = vmatprep.mubr.bf16.mxu0 %v9322_v28  ;;  %v9330_v24 = vpack.c.bf16 %v3471_v22, %v3467_v61  ;;  %5177 = vmatprep.subr.bf16.mxu1 %v6647_v7  ;;  %v3468_v27 = vmul.f32 %v7276_v63, %v9282_v42  ;;  %v6630_v16 = vcombine.low %v3641_v29, %v3645_v58  ;;  %v3629_v23 = vld [vmem:[#allocation4 + $0x4a8] sm:$0xff] }
 0x583   :  { %v7280_v43 = vpop.eup %7279  ;;  %5125 = vmatpush1.bf16.msra.mxu0 %v6518_v54  ;;  %v3466_v21 = vmul.f32 %v7278_v0, %v9287_v6  ;;  %v6631_v6 = vcombine.high %v3641_v29, %v3645_v58  ;;  %v3489_v12 = vld [vmem:[#allocation4 + $0x48] sm:$0xff]  ;;  %v6615_v25 = vcombine.high %v3625_v33, %v3629_v23  ;;  %v6614_v2 = vcombine.low %v3625_v33, %v3629_v23 }
 0x584   :  { %5111 = vmatprep.mubr.bf16.mxu1 %v9330_v24  ;;  %5126 = vmatprep.subr.bf16.mxu0 %v6511_v53  ;;  %v9335_v39 = vpack.c.bf16 %v3468_v27, %v3464_v51  ;;  %v3470_v48 = vmul.f32 %v7280_v43, %v9290_v41  ;;  %v6495_v41 = vcombine.high %v3505_v44, %v3509_v15  ;;  %v3493_v5 = vld [vmem:[#allocation4 + $0x68] sm:$0xff] }
 0x585   :  { %5178 = vmatpush1.bf16.msra.mxu1 %v6646_v26  ;;  %v3617_v30 = vld [vmem:[#allocation4 + $0x448] sm:$0xff]  ;;  %v6479_v55 = vcombine.high %v3489_v12, %v3493_v5  ;;  %v6478_v61 = vcombine.low %v3489_v12, %v3493_v5 }
 0x586   :  { %5179 = vmatprep.subr.bf16.mxu1 %v6639_v36  ;;  %5059 = vmatmul.mubr.bf16.gmra.mxu0 %v9335_v39  ;;  %v9339_v42 = vpack.c.bf16 %v3470_v48, %v3466_v21  ;;  %v3621_v31 = vld [vmem:[#allocation4 + $0x468] sm:$0xff] }
 0x587   :  { %5127 = vmatpush1.bf16.msra.mxu0 %v6510_v20  ;;  %5154 = vmatprep.mubr.bf16.mxu0 %v9299_v13  ;;  %v3481_v32 = vld [vmem:[#allocation4 + $0x8] sm:$0xff]  ;;  %v6607_v3 = vcombine.high %v3617_v30, %v3621_v31  ;;  %v6606_v9 = vcombine.low %v3617_v30, %v3621_v31 }
 0x588   :  { %5112 = vmatmul.mubr.bf16.gmra.mxu1 %v9339_v42  ;;  %5128 = vmatprep.subr.bf16.mxu0 %v6503_v40  ;;  %v3485_v7 = vld [vmem:[#allocation4 + $0x28] sm:$0xff] }
 0x589   :  { %5180 = vmatpush1.bf16.msra.mxu1 %v6638_v14  ;;  %5207 = vmatprep.mubr.bf16.mxu1 %v9304_v57  ;;  %v3609_v54 = vld [vmem:[#allocation4 + $0x408] sm:$0xff]  ;;  %v6471_v34 = vcombine.high %v3481_v32, %v3485_v7  ;;  %v6470_v26 = vcombine.low %v3481_v32, %v3485_v7 }
 0x58a   :  { %5181 = vmatprep.subr.bf16.mxu1 %v6631_v6  ;;  %v3613_v19 = vld [vmem:[#allocation4 + $0x428] sm:$0xff] }
 0x58b   :  { %5129 = vmatpush1.bf16.msra.mxu0 %v6502_v18  ;;  %v3601_v22 = vld [vmem:[#allocation4 + $0x3c8] sm:$0xff]  ;;  %v6599_v63 = vcombine.high %v3609_v54, %v3613_v19  ;;  %v6598_v0 = vcombine.low %v3609_v54, %v3613_v19 }
 0x58c   :  { %5130 = vmatprep.subr.bf16.mxu0 %v6495_v41  ;;  %v3605_v53 = vld [vmem:[#allocation4 + $0x3e8] sm:$0xff] }
 0x58d   :  { %5182 = vmatpush1.bf16.msra.mxu1 %v6630_v16  ;;  %v3729_v51 = vld [vmem:[#allocation4 + $0x7c8] sm:$0xff]  ;;  %v6591_v56 = vcombine.high %v3601_v22, %v3605_v53  ;;  %v6590_v20 = vcombine.low %v3601_v22, %v3605_v53 }
 0x58e   :  { %5183 = vmatprep.subr.bf16.mxu1 %v6623_v52  ;;  %v3733_v45 = vld [vmem:[#allocation4 + $0x7e8] sm:$0xff] }
 0x58f   :  { %5131 = vmatpush1.bf16.msra.mxu0 %v6494_v17  ;;  %v3593_v36 = vld [vmem:[#allocation4 + $0x388] sm:$0xff]  ;;  %v6719_v43 = vcombine.high %v3729_v51, %v3733_v45  ;;  %v6718_v48 = vcombine.low %v3729_v51, %v3733_v45 }
 0x590   :  { %5132 = vmatprep.subr.bf16.mxu0 %v6487_v46  ;;  %v3597_v27 = vld [vmem:[#allocation4 + $0x3a8] sm:$0xff] }
 0x591   :  { %5184 = vmatpush1.bf16.msra.mxu1 %v6622_v11  ;;  %v3721_v21 = vld [vmem:[#allocation4 + $0x788] sm:$0xff]  ;;  %v6583_v58 = vcombine.high %v3593_v36, %v3597_v27  ;;  %v6582_v15 = vcombine.low %v3593_v36, %v3597_v27 }
 0x592   :  { %5185 = vmatprep.subr.bf16.mxu1 %v6615_v25  ;;  %v3725_v29 = vld [vmem:[#allocation4 + $0x7a8] sm:$0xff] }
 0x593   :  { %5133 = vmatpush1.bf16.msra.mxu0 %v6486_v38  ;;  %v3585_v40 = vld [vmem:[#allocation4 + $0x348] sm:$0xff]  ;;  %v6711_v44 = vcombine.high %v3721_v21, %v3725_v29  ;;  %v6710_v62 = vcombine.low %v3721_v21, %v3725_v29 }
 0x594   :  { %5134 = vmatprep.subr.bf16.mxu0 %v6479_v55  ;;  %v3589_v14 = vld [vmem:[#allocation4 + $0x368] sm:$0xff] }
 0x595   :  { %5186 = vmatpush1.bf16.msra.mxu1 %v6614_v2  ;;  %v3713_v6 = vld [vmem:[#allocation4 + $0x748] sm:$0xff]  ;;  %v6575_v10 = vcombine.high %v3585_v40, %v3589_v14  ;;  %v6574_v1 = vcombine.low %v3585_v40, %v3589_v14 }
 0x596   :  { %5187 = vmatprep.subr.bf16.mxu1 %v6607_v3  ;;  %v3717_v18 = vld [vmem:[#allocation4 + $0x768] sm:$0xff] }
 0x597   :  { %5135 = vmatpush1.bf16.msra.mxu0 %v6478_v61  ;;  %v3577_v41 = vld [vmem:[#allocation4 + $0x308] sm:$0xff]  ;;  %v6703_v35 = vcombine.high %v3713_v6, %v3717_v18  ;;  %v6702_v23 = vcombine.low %v3713_v6, %v3717_v18 }
 0x598   :  { %5136 = vmatprep.subr.bf16.mxu0 %v6471_v34  ;;  %v3581_v16 = vld [vmem:[#allocation4 + $0x328] sm:$0xff] }
 0x599   :  { %5188 = vmatpush1.bf16.msra.mxu1 %v6606_v9  ;;  %v3705_v52 = vld [vmem:[#allocation4 + $0x708] sm:$0xff]  ;;  %v6567_v33 = vcombine.high %v3577_v41, %v3581_v16  ;;  %v6566_v5 = vcombine.low %v3577_v41, %v3581_v16 }
 0x59a   :  { %5189 = vmatprep.subr.bf16.mxu1 %v6599_v63  ;;  %v3709_v17 = vld [vmem:[#allocation4 + $0x728] sm:$0xff] }
 0x59b   :  { %5137 = vmatpush1.bf16.msra.mxu0 %v6470_v26  ;;  %v3569_v46 = vld [vmem:[#allocation4 + $0x2c8] sm:$0xff]  ;;  %v6695_v12 = vcombine.high %v3705_v52, %v3709_v17  ;;  %v6694_v31 = vcombine.low %v3705_v52, %v3709_v17 }
 0x59c   :  { %5138 = vmatprep.subr.bf16.mxu0 %v6591_v56  ;;  %v3573_v11 = vld [vmem:[#allocation4 + $0x2e8] sm:$0xff] }
 0x59d   :  { %5190 = vmatpush1.bf16.msra.mxu1 %v6598_v0  ;;  %v3697_v25 = vld [vmem:[#allocation4 + $0x6c8] sm:$0xff]  ;;  %v6559_v30 = vcombine.high %v3569_v46, %v3573_v11  ;;  %v6558_v7 = vcombine.low %v3569_v46, %v3573_v11 }
 0x59e   :  { %5191 = vmatprep.subr.bf16.mxu1 %v6719_v43  ;;  %v3701_v38 = vld [vmem:[#allocation4 + $0x6e8] sm:$0xff] }
 0x59f   :  { %5139 = vmatpush2.bf16.msra.mxu0 %v6590_v20  ;;  %v3561_v55 = vld [vmem:[#allocation4 + $0x288] sm:$0xff]  ;;  %v6687_v32 = vcombine.high %v3697_v25, %v3701_v38  ;;  %v6686_v19 = vcombine.low %v3697_v25, %v3701_v38 }
 0x5a0   :  { %5140 = vmatprep.subr.bf16.mxu0 %v6583_v58  ;;  %v3565_v2 = vld [vmem:[#allocation4 + $0x2a8] sm:$0xff]  ;;  %v3538_v58 = vld [vmem:[#allocation4 + $0x1d0] sm:$0xff] }
 0x5a1   :  { %5192 = vmatpush2.bf16.msra.mxu1 %v6718_v48  ;;  %v3689_v3 = vld [vmem:[#allocation4 + $0x688] sm:$0xff]  ;;  %v6551_v54 = vcombine.high %v3561_v55, %v3565_v2  ;;  %v6550_v53 = vcombine.low %v3561_v55, %v3565_v2  ;;  %v3542_v48 = vld [vmem:[#allocation4 + $0x1f0] sm:$0xff] }
 0x5a2   :  { %5193 = vmatprep.subr.bf16.mxu1 %v6711_v44  ;;  %v3693_v61 = vld [vmem:[#allocation4 + $0x6a8] sm:$0xff]  ;;  %v3666_v44 = vld [vmem:[#allocation4 + $0x5d0] sm:$0xff]  ;;  %v6529_v6 = vcombine.high %v3538_v58, %v3542_v48  ;;  %v6528_v16 = vcombine.low %v3538_v58, %v3542_v48 }
 0x5a3   :  { %5141 = vmatpush2.bf16.msra.mxu0 %v6582_v15  ;;  %v3553_v34 = vld [vmem:[#allocation4 + $0x248] sm:$0xff]  ;;  %v6679_v22 = vcombine.high %v3689_v3, %v3693_v61  ;;  %v6678_v45 = vcombine.low %v3689_v3, %v3693_v61  ;;  %v3670_v15 = vld [vmem:[#allocation4 + $0x5f0] sm:$0xff] }
 0x5a4   :  { %5142 = vmatprep.subr.bf16.mxu0 %v6575_v10  ;;  %v3557_v9 = vld [vmem:[#allocation4 + $0x268] sm:$0xff]  ;;  %v3530_v10 = vld [vmem:[#allocation4 + $0x190] sm:$0xff]  ;;  %v6657_v41 = vcombine.high %v3666_v44, %v3670_v15  ;;  %v6656_v17 = vcombine.low %v3666_v44, %v3670_v15 }
 0x5a5   :  { %5194 = vmatpush2.bf16.msra.mxu1 %v6710_v62  ;;  %v3681_v63 = vld [vmem:[#allocation4 + $0x648] sm:$0xff]  ;;  %v6543_v51 = vcombine.high %v3553_v34, %v3557_v9  ;;  %v6542_v27 = vcombine.low %v3553_v34, %v3557_v9  ;;  %v3534_v62 = vld [vmem:[#allocation4 + $0x1b0] sm:$0xff] }
 0x5a6   :  { %5195 = vmatprep.subr.bf16.mxu1 %v6703_v35  ;;  %v3685_v26 = vld [vmem:[#allocation4 + $0x668] sm:$0xff]  ;;  %v3658_v35 = vld [vmem:[#allocation4 + $0x590] sm:$0xff]  ;;  %v6521_v52 = vcombine.high %v3530_v10, %v3534_v62  ;;  %v6520_v11 = vcombine.low %v3530_v10, %v3534_v62 }
 0x5a7   :  { %5143 = vmatpush2.bf16.msra.mxu0 %v6574_v1  ;;  %v3545_v56 = vld [vmem:[#allocation4 + $0x208] sm:$0xff]  ;;  %v6671_v36 = vcombine.high %v3681_v63, %v3685_v26  ;;  %v6670_v29 = vcombine.low %v3681_v63, %v3685_v26  ;;  %v3662_v1 = vld [vmem:[#allocation4 + $0x5b0] sm:$0xff] }
 0x5a8   :  { %5144 = vmatprep.subr.bf16.mxu0 %v6567_v33  ;;  %v3549_v0 = vld [vmem:[#allocation4 + $0x228] sm:$0xff]  ;;  %v3522_v33 = vld [vmem:[#allocation4 + $0x150] sm:$0xff]  ;;  %v6649_v46 = vcombine.high %v3658_v35, %v3662_v1  ;;  %v6648_v38 = vcombine.low %v3658_v35, %v3662_v1 }
 0x5a9   :  { %5196 = vmatpush2.bf16.msra.mxu1 %v6702_v23  ;;  %v3673_v43 = vld [vmem:[#allocation4 + $0x608] sm:$0xff]  ;;  %v6535_v21 = vcombine.high %v3545_v56, %v3549_v0  ;;  %v6534_v14 = vcombine.low %v3545_v56, %v3549_v0  ;;  %v3526_v23 = vld [vmem:[#allocation4 + $0x170] sm:$0xff] }
 0x5aa   :  { %5197 = vmatprep.subr.bf16.mxu1 %v6695_v12  ;;  %v3677_v20 = vld [vmem:[#allocation4 + $0x628] sm:$0xff]  ;;  %v3650_v12 = vld [vmem:[#allocation4 + $0x550] sm:$0xff]  ;;  %v6513_v25 = vcombine.high %v3522_v33, %v3526_v23  ;;  %v6512_v2 = vcombine.low %v3522_v33, %v3526_v23 }
 0x5ab   :  { %5145 = vmatpush2.bf16.msra.mxu0 %v6566_v5  ;;  %v6663_v40 = vcombine.high %v3673_v43, %v3677_v20  ;;  %v6662_v18 = vcombine.low %v3673_v43, %v3677_v20  ;;  %v3654_v5 = vld [vmem:[#allocation4 + $0x570] sm:$0xff] }
 0x5ac   :  { %5146 = vmatprep.subr.bf16.mxu0 %v6559_v30  ;;  %v3514_v30 = vld [vmem:[#allocation4 + $0x110] sm:$0xff]  ;;  %v6641_v55 = vcombine.high %v3650_v12, %v3654_v5  ;;  %v6640_v61 = vcombine.low %v3650_v12, %v3654_v5 }
 0x5ad   :  { %5198 = vmatpush2.bf16.msra.mxu1 %v6694_v31  ;;  %v3518_v31 = vld [vmem:[#allocation4 + $0x130] sm:$0xff] }
 0x5ae   :  { %5199 = vmatprep.subr.bf16.mxu1 %v6687_v32  ;;  %v3642_v32 = vld [vmem:[#allocation4 + $0x510] sm:$0xff]  ;;  %v6505_v3 = vcombine.high %v3514_v30, %v3518_v31  ;;  %v6504_v9 = vcombine.low %v3514_v30, %v3518_v31 }
 0x5af   :  { %5147 = vmatpush2.bf16.msra.mxu0 %v6558_v7  ;;  %v3646_v7 = vld [vmem:[#allocation4 + $0x530] sm:$0xff] }
 0x5b0   :  { %5148 = vmatprep.subr.bf16.mxu0 %v6551_v54  ;;  %v3506_v54 = vld [vmem:[#allocation4 + $0xd0] sm:$0xff]  ;;  %v6633_v34 = vcombine.high %v3642_v32, %v3646_v7  ;;  %v6632_v26 = vcombine.low %v3642_v32, %v3646_v7 }
 0x5b1   :  { %5200 = vmatpush2.bf16.msra.mxu1 %v6686_v19  ;;  %v3510_v19 = vld [vmem:[#allocation4 + $0xf0] sm:$0xff] }
 0x5b2   :  { %5201 = vmatprep.subr.bf16.mxu1 %v6679_v22  ;;  %v3634_v22 = vld [vmem:[#allocation4 + $0x4d0] sm:$0xff]  ;;  %v6497_v63 = vcombine.high %v3506_v54, %v3510_v19  ;;  %v6496_v0 = vcombine.low %v3506_v54, %v3510_v19 }
 0x5b3   :  { %5149 = vmatpush2.bf16.msra.mxu0 %v6550_v53  ;;  %v3638_v53 = vld [vmem:[#allocation4 + $0x4f0] sm:$0xff] }
 0x5b4   :  { %5150 = vmatprep.subr.bf16.mxu0 %v6543_v51  ;;  %v3498_v51 = vld [vmem:[#allocation4 + $0x90] sm:$0xff]  ;;  %v6625_v56 = vcombine.high %v3634_v22, %v3638_v53  ;;  %v6624_v20 = vcombine.low %v3634_v22, %v3638_v53 }
 0x5b5   :  { %5202 = vmatpush2.bf16.msra.mxu1 %v6678_v45  ;;  %v3502_v45 = vld [vmem:[#allocation4 + $0xb0] sm:$0xff] }
 0x5b6   :  { %5203 = vmatprep.subr.bf16.mxu1 %v6671_v36  ;;  %v3626_v36 = vld [vmem:[#allocation4 + $0x490] sm:$0xff]  ;;  %v6489_v43 = vcombine.high %v3498_v51, %v3502_v45  ;;  %v6488_v48 = vcombine.low %v3498_v51, %v3502_v45 }
 0x5b7   :  { %5151 = vmatpush2.bf16.msra.mxu0 %v6542_v27  ;;  %v3630_v27 = vld [vmem:[#allocation4 + $0x4b0] sm:$0xff] }
 0x5b8   :  { %5152 = vmatprep.subr.bf16.mxu0 %v6535_v21  ;;  %v3490_v21 = vld [vmem:[#allocation4 + $0x50] sm:$0xff]  ;;  %v6617_v58 = vcombine.high %v3626_v36, %v3630_v27  ;;  %v6616_v15 = vcombine.low %v3626_v36, %v3630_v27 }
 0x5b9   :  { %5204 = vmatpush2.bf16.msra.mxu1 %v6670_v29  ;;  %v3494_v29 = vld [vmem:[#allocation4 + $0x70] sm:$0xff] }
 0x5ba   :  { %5205 = vmatprep.subr.bf16.mxu1 %v6663_v40  ;;  %v3618_v40 = vld [vmem:[#allocation4 + $0x450] sm:$0xff]  ;;  %v6481_v44 = vcombine.high %v3490_v21, %v3494_v29  ;;  %v6480_v62 = vcombine.low %v3490_v21, %v3494_v29 }
 0x5bb   :  { %5153 = vmatpush2.bf16.msra.mxu0 %v6534_v14  ;;  %v3622_v14 = vld [vmem:[#allocation4 + $0x470] sm:$0xff] }
 0x5bc   :  { %5228 = vmatprep.subr.bf16.mxu0 %v6529_v6  ;;  %v3482_v6 = vld [vmem:[#allocation4 + $0x10] sm:$0xff]  ;;  %v6609_v10 = vcombine.high %v3618_v40, %v3622_v14  ;;  %v6608_v1 = vcombine.low %v3618_v40, %v3622_v14 }
 0x5bd   :  { %5206 = vmatpush2.bf16.msra.mxu1 %v6662_v18  ;;  %v3486_v18 = vld [vmem:[#allocation4 + $0x30] sm:$0xff] }
 0x5be   :  { %5155 = vmatmul.mubr.bf16.vlgmr.msra.gmra.mxu0 %v9309_v59  ;;  %5281 = vmatprep.subr.bf16.mxu1 %v6657_v41  ;;  %v3610_v41 = vld [vmem:[#allocation4 + $0x410] sm:$0xff]  ;;  %v6473_v35 = vcombine.high %v3482_v6, %v3486_v18  ;;  %v6472_v23 = vcombine.low %v3482_v6, %v3486_v18 }
 0x5bf   :  { %5164 = vmatprep.mubr.bf16.mxu0 %v9322_v28  ;;  %5229 = vmatpush1.bf16.msra.mxu0 %v6528_v16  ;;  %v3614_v16 = vld [vmem:[#allocation4 + $0x430] sm:$0xff] }
 0x5c0   :  { %5208 = vmatmul.mubr.bf16.vlgmr.msra.gmra.mxu1 %v9314_v47  ;;  %5230 = vmatprep.subr.bf16.mxu0 %v6521_v52  ;;  %v3602_v52 = vld [vmem:[#allocation4 + $0x3d0] sm:$0xff]  ;;  %v6601_v33 = vcombine.high %v3610_v41, %v3614_v16  ;;  %v6600_v5 = vcombine.low %v3610_v41, %v3614_v16 }
 0x5c1   :  { %5217 = vmatprep.mubr.bf16.mxu1 %v9330_v24  ;;  %5282 = vmatpush1.bf16.msra.mxu1 %v6656_v17  ;;  %v3606_v17 = vld [vmem:[#allocation4 + $0x3f0] sm:$0xff] }
 0x5c2   :  { %5283 = vmatprep.subr.bf16.mxu1 %v6649_v46  ;;  %v3730_v46 = vld [vmem:[#allocation4 + $0x7d0] sm:$0xff]  ;;  %v6593_v12 = vcombine.high %v3602_v52, %v3606_v17  ;;  %v6592_v31 = vcombine.low %v3602_v52, %v3606_v17 }
 0x5c3   :  { %5231 = vmatpush1.bf16.msra.mxu0 %v6520_v11  ;;  %v3734_v11 = vld [vmem:[#allocation4 + $0x7f0] sm:$0xff] }
 0x5c4   :  { %5232 = vmatprep.subr.bf16.mxu0 %v6513_v25  ;;  %v3594_v25 = vld [vmem:[#allocation4 + $0x390] sm:$0xff]  ;;  %v6721_v30 = vcombine.high %v3730_v46, %v3734_v11  ;;  %v6720_v7 = vcombine.low %v3730_v46, %v3734_v11 }
 0x5c5   :  { %5284 = vmatpush1.bf16.msra.mxu1 %v6648_v38  ;;  %v3598_v38 = vld [vmem:[#allocation4 + $0x3b0] sm:$0xff] }
 0x5c6   :  { %5165 = vmatmul.mubr.bf16.gmra.mxu0 %v9335_v39  ;;  %5285 = vmatprep.subr.bf16.mxu1 %v6641_v55  ;;  %v3722_v55 = vld [vmem:[#allocation4 + $0x790] sm:$0xff]  ;;  %v6585_v32 = vcombine.high %v3594_v25, %v3598_v38  ;;  %v6584_v19 = vcombine.low %v3594_v25, %v3598_v38 }
 0x5c7   :  { %5233 = vmatpush1.bf16.msra.mxu0 %v6512_v2  ;;  %5260 = vmatprep.mubr.bf16.mxu0 %v9299_v13  ;;  %v3726_v2 = vld [vmem:[#allocation4 + $0x7b0] sm:$0xff] }
 0x5c8   :  { %5218 = vmatmul.mubr.bf16.gmra.mxu1 %v9339_v42  ;;  %5234 = vmatprep.subr.bf16.mxu0 %v6505_v3  ;;  %v3586_v3 = vld [vmem:[#allocation4 + $0x350] sm:$0xff]  ;;  %v6713_v54 = vcombine.high %v3722_v55, %v3726_v2  ;;  %v6712_v53 = vcombine.low %v3722_v55, %v3726_v2 }
 0x5c9   :  { %5286 = vmatpush1.bf16.msra.mxu1 %v6640_v61  ;;  %5313 = vmatprep.mubr.bf16.mxu1 %v9304_v57  ;;  %v3590_v61 = vld [vmem:[#allocation4 + $0x370] sm:$0xff] }
 0x5ca   :  { %5287 = vmatprep.subr.bf16.mxu1 %v6633_v34  ;;  %v3714_v34 = vld [vmem:[#allocation4 + $0x750] sm:$0xff]  ;;  %v6577_v22 = vcombine.high %v3586_v3, %v3590_v61  ;;  %v6576_v45 = vcombine.low %v3586_v3, %v3590_v61 }
 0x5cb   :  { %5235 = vmatpush1.bf16.msra.mxu0 %v6504_v9  ;;  %v3718_v9 = vld [vmem:[#allocation4 + $0x770] sm:$0xff] }
 0x5cc   :  { %5236 = vmatprep.subr.bf16.mxu0 %v6497_v63  ;;  %v3578_v63 = vld [vmem:[#allocation4 + $0x310] sm:$0xff]  ;;  %v6705_v51 = vcombine.high %v3714_v34, %v3718_v9  ;;  %v6704_v27 = vcombine.low %v3714_v34, %v3718_v9 }
 0x5cd   :  { %5288 = vmatpush1.bf16.msra.mxu1 %v6632_v26  ;;  %v3582_v26 = vld [vmem:[#allocation4 + $0x330] sm:$0xff] }
 0x5ce   :  { %5289 = vmatprep.subr.bf16.mxu1 %v6625_v56  ;;  %v3706_v56 = vld [vmem:[#allocation4 + $0x710] sm:$0xff]  ;;  %v6569_v36 = vcombine.high %v3578_v63, %v3582_v26  ;;  %v6568_v29 = vcombine.low %v3578_v63, %v3582_v26 }
 0x5cf   :  { %5237 = vmatpush1.bf16.msra.mxu0 %v6496_v0  ;;  %v3710_v0 = vld [vmem:[#allocation4 + $0x730] sm:$0xff] }
 0x5d0   :  { %5238 = vmatprep.subr.bf16.mxu0 %v6489_v43  ;;  %v3570_v43 = vld [vmem:[#allocation4 + $0x2d0] sm:$0xff]  ;;  %v6697_v21 = vcombine.high %v3706_v56, %v3710_v0  ;;  %v6696_v14 = vcombine.low %v3706_v56, %v3710_v0 }
 0x5d1   :  { %5290 = vmatpush1.bf16.msra.mxu1 %v6624_v20  ;;  %v3574_v20 = vld [vmem:[#allocation4 + $0x2f0] sm:$0xff] }
 0x5d2   :  { %5291 = vmatprep.subr.bf16.mxu1 %v6617_v58  ;;  %v3698_v58 = vld [vmem:[#allocation4 + $0x6d0] sm:$0xff]  ;;  %v6561_v40 = vcombine.high %v3570_v43, %v3574_v20  ;;  %v6560_v18 = vcombine.low %v3570_v43, %v3574_v20 }
 0x5d3   :  { %5239 = vmatpush1.bf16.msra.mxu0 %v6488_v48  ;;  %v3702_v48 = vld [vmem:[#allocation4 + $0x6f0] sm:$0xff] }
 0x5d4   :  { %5240 = vmatprep.subr.bf16.mxu0 %v6481_v44  ;;  %v3562_v44 = vld [vmem:[#allocation4 + $0x290] sm:$0xff]  ;;  %v6689_v6 = vcombine.high %v3698_v58, %v3702_v48  ;;  %v6688_v16 = vcombine.low %v3698_v58, %v3702_v48 }
 0x5d5   :  { %5292 = vmatpush1.bf16.msra.mxu1 %v6616_v15  ;;  %v3566_v15 = vld [vmem:[#allocation4 + $0x2b0] sm:$0xff] }
 0x5d6   :  { %5293 = vmatprep.subr.bf16.mxu1 %v6609_v10  ;;  %v3690_v10 = vld [vmem:[#allocation4 + $0x690] sm:$0xff]  ;;  %v6553_v41 = vcombine.high %v3562_v44, %v3566_v15  ;;  %v6552_v17 = vcombine.low %v3562_v44, %v3566_v15 }
 0x5d7   :  { %5241 = vmatpush1.bf16.msra.mxu0 %v6480_v62  ;;  %v3694_v62 = vld [vmem:[#allocation4 + $0x6b0] sm:$0xff] }
 0x5d8   :  { %5242 = vmatprep.subr.bf16.mxu0 %v6473_v35  ;;  %v3554_v35 = vld [vmem:[#allocation4 + $0x250] sm:$0xff]  ;;  %v6681_v52 = vcombine.high %v3690_v10, %v3694_v62  ;;  %v6680_v11 = vcombine.low %v3690_v10, %v3694_v62 }
 0x5d9   :  { %5294 = vmatpush1.bf16.msra.mxu1 %v6608_v1  ;;  %v3558_v1 = vld [vmem:[#allocation4 + $0x270] sm:$0xff] }
 0x5da   :  { %5295 = vmatprep.subr.bf16.mxu1 %v6601_v33  ;;  %v3682_v33 = vld [vmem:[#allocation4 + $0x650] sm:$0xff]  ;;  %v6545_v46 = vcombine.high %v3554_v35, %v3558_v1  ;;  %v6544_v38 = vcombine.low %v3554_v35, %v3558_v1 }
 0x5db   :  { %5243 = vmatpush1.bf16.msra.mxu0 %v6472_v23  ;;  %v3686_v23 = vld [vmem:[#allocation4 + $0x670] sm:$0xff] }
 0x5dc   :  { %5244 = vmatprep.subr.bf16.mxu0 %v6593_v12  ;;  %v3546_v12 = vld [vmem:[#allocation4 + $0x210] sm:$0xff]  ;;  %v6673_v25 = vcombine.high %v3682_v33, %v3686_v23  ;;  %v6672_v2 = vcombine.low %v3682_v33, %v3686_v23 }
 0x5dd   :  { %5296 = vmatpush1.bf16.msra.mxu1 %v6600_v5  ;;  %v3550_v5 = vld [vmem:[#allocation4 + $0x230] sm:$0xff] }
 0x5de   :  { %5297 = vmatprep.subr.bf16.mxu1 %v6721_v30  ;;  %v3674_v30 = vld [vmem:[#allocation4 + $0x610] sm:$0xff]  ;;  %v6537_v55 = vcombine.high %v3546_v12, %v3550_v5  ;;  %v6536_v61 = vcombine.low %v3546_v12, %v3550_v5 }
 0x5df   :  { %5245 = vmatpush2.bf16.msra.mxu0 %v6592_v31  ;;  %v3678_v31 = vld [vmem:[#allocation4 + $0x630] sm:$0xff] }
 0x5e0   :  { %5246 = vmatprep.subr.bf16.mxu0 %v6585_v32  ;;  %v3539_v32 = vld [vmem:[#allocation4 + $0x1d8] sm:$0xff]  ;;  %v6665_v3 = vcombine.high %v3674_v30, %v3678_v31  ;;  %v6664_v9 = vcombine.low %v3674_v30, %v3678_v31 }
 0x5e1   :  { %5298 = vmatpush2.bf16.msra.mxu1 %v6720_v7  ;;  %v3543_v7 = vld [vmem:[#allocation4 + $0x1f8] sm:$0xff] }
 0x5e2   :  { %5299 = vmatprep.subr.bf16.mxu1 %v6713_v54  ;;  %v3667_v54 = vld [vmem:[#allocation4 + $0x5d8] sm:$0xff]  ;;  %v6531_v34 = vcombine.high %v3539_v32, %v3543_v7  ;;  %v6530_v26 = vcombine.low %v3539_v32, %v3543_v7 }
 0x5e3   :  { %5247 = vmatpush2.bf16.msra.mxu0 %v6584_v19  ;;  %v3671_v19 = vld [vmem:[#allocation4 + $0x5f8] sm:$0xff] }
 0x5e4   :  { %5248 = vmatprep.subr.bf16.mxu0 %v6577_v22  ;;  %v3531_v22 = vld [vmem:[#allocation4 + $0x198] sm:$0xff]  ;;  %v6659_v63 = vcombine.high %v3667_v54, %v3671_v19  ;;  %v6658_v0 = vcombine.low %v3667_v54, %v3671_v19 }
 0x5e5   :  { %5300 = vmatpush2.bf16.msra.mxu1 %v6712_v53  ;;  %v3535_v53 = vld [vmem:[#allocation4 + $0x1b8] sm:$0xff] }
 0x5e6   :  { %5301 = vmatprep.subr.bf16.mxu1 %v6705_v51  ;;  %v3659_v51 = vld [vmem:[#allocation4 + $0x598] sm:$0xff]  ;;  %v6523_v56 = vcombine.high %v3531_v22, %v3535_v53  ;;  %v6522_v20 = vcombine.low %v3531_v22, %v3535_v53 }
 0x5e7   :  { %5249 = vmatpush2.bf16.msra.mxu0 %v6576_v45  ;;  %v3663_v45 = vld [vmem:[#allocation4 + $0x5b8] sm:$0xff] }
 0x5e8   :  { %5250 = vmatprep.subr.bf16.mxu0 %v6569_v36  ;;  %v3523_v36 = vld [vmem:[#allocation4 + $0x158] sm:$0xff]  ;;  %v6651_v43 = vcombine.high %v3659_v51, %v3663_v45  ;;  %v6650_v48 = vcombine.low %v3659_v51, %v3663_v45 }
 0x5e9   :  { %5302 = vmatpush2.bf16.msra.mxu1 %v6704_v27  ;;  %v3527_v27 = vld [vmem:[#allocation4 + $0x178] sm:$0xff] }
 0x5ea   :  { %5303 = vmatprep.subr.bf16.mxu1 %v6697_v21  ;;  %v3651_v21 = vld [vmem:[#allocation4 + $0x558] sm:$0xff]  ;;  %v6515_v58 = vcombine.high %v3523_v36, %v3527_v27  ;;  %v6514_v15 = vcombine.low %v3523_v36, %v3527_v27 }
 0x5eb   :  { %5251 = vmatpush2.bf16.msra.mxu0 %v6568_v29  ;;  %v3655_v29 = vld [vmem:[#allocation4 + $0x578] sm:$0xff] }
 0x5ec   :  { %5252 = vmatprep.subr.bf16.mxu0 %v6561_v40  ;;  %v3515_v40 = vld [vmem:[#allocation4 + $0x118] sm:$0xff]  ;;  %v6643_v44 = vcombine.high %v3651_v21, %v3655_v29  ;;  %v6642_v62 = vcombine.low %v3651_v21, %v3655_v29 }
 0x5ed   :  { %5304 = vmatpush2.bf16.msra.mxu1 %v6696_v14  ;;  %v3519_v14 = vld [vmem:[#allocation4 + $0x138] sm:$0xff] }
 0x5ee   :  { %5305 = vmatprep.subr.bf16.mxu1 %v6689_v6  ;;  %v3643_v6 = vld [vmem:[#allocation4 + $0x518] sm:$0xff]  ;;  %v6507_v10 = vcombine.high %v3515_v40, %v3519_v14  ;;  %v6506_v1 = vcombine.low %v3515_v40, %v3519_v14 }
 0x5ef   :  { %5253 = vmatpush2.bf16.msra.mxu0 %v6560_v18  ;;  %v3647_v18 = vld [vmem:[#allocation4 + $0x538] sm:$0xff] }
 0x5f0   :  { %5254 = vmatprep.subr.bf16.mxu0 %v6553_v41  ;;  %v3507_v41 = vld [vmem:[#allocation4 + $0xd8] sm:$0xff]  ;;  %v6635_v35 = vcombine.high %v3643_v6, %v3647_v18  ;;  %v6634_v23 = vcombine.low %v3643_v6, %v3647_v18 }
 0x5f1   :  { %5306 = vmatpush2.bf16.msra.mxu1 %v6688_v16  ;;  %v3511_v16 = vld [vmem:[#allocation4 + $0xf8] sm:$0xff] }
 0x5f2   :  { %5307 = vmatprep.subr.bf16.mxu1 %v6681_v52  ;;  %v3635_v52 = vld [vmem:[#allocation4 + $0x4d8] sm:$0xff]  ;;  %v6499_v33 = vcombine.high %v3507_v41, %v3511_v16  ;;  %v6498_v5 = vcombine.low %v3507_v41, %v3511_v16 }
 0x5f3   :  { %5255 = vmatpush2.bf16.msra.mxu0 %v6552_v17  ;;  %v3639_v17 = vld [vmem:[#allocation4 + $0x4f8] sm:$0xff] }
 0x5f4   :  { %5256 = vmatprep.subr.bf16.mxu0 %v6545_v46  ;;  %v3499_v46 = vld [vmem:[#allocation4 + $0x98] sm:$0xff]  ;;  %v6627_v12 = vcombine.high %v3635_v52, %v3639_v17  ;;  %v6626_v30 = vcombine.low %v3635_v52, %v3639_v17 }
 0x5f5   :  { %5308 = vmatpush2.bf16.msra.mxu1 %v6680_v11  ;;  %v3503_v11 = vld [vmem:[#allocation4 + $0xb8] sm:$0xff] }
 0x5f6   :  { %5309 = vmatprep.subr.bf16.mxu1 %v6673_v25  ;;  %v3627_v25 = vld [vmem:[#allocation4 + $0x498] sm:$0xff]  ;;  %v6490_v32 = vcombine.low %v3499_v46, %v3503_v11 }
 0x5f7   :  { %5257 = vmatpush2.bf16.msra.mxu0 %v6544_v38  ;;  %v3631_v38 = vld [vmem:[#allocation4 + $0x4b8] sm:$0xff] }
 0x5f8   :  { %5258 = vmatprep.subr.bf16.mxu0 %v6537_v55  ;;  %v3491_v31 = vld [vmem:[#allocation4 + $0x58] sm:$0xff] }
 0x5f9   :  { %5310 = vmatpush2.bf16.msra.mxu1 %v6672_v2  ;;  %v3495_v55 = vld [vmem:[#allocation4 + $0x78] sm:$0xff]  ;;  %v6619_v2 = vcombine.high %v3627_v25, %v3631_v38 }
 0x5fa   :  { %5311 = vmatprep.subr.bf16.mxu1 %v6665_v3  ;;  %v3623_v7 = vld [vmem:[#allocation4 + $0x478] sm:$0xff]  ;;  %v6483_v3 = vcombine.high %v3491_v31, %v3495_v55 }
 0x5fb   :  { %5259 = vmatpush2.bf16.msra.mxu0 %v6536_v61  ;;  %v6618_v61 = vcombine.low %v3627_v25, %v3631_v38  ;;  %v3483_v54 = vld [vmem:[#allocation4 + $0x18] sm:$0xff] }
 0x5fc   :  { %5334 = vmatprep.subr.bf16.mxu0 %v6531_v34  ;;  %v3487_v19 = vld [vmem:[#allocation4 + $0x38] sm:$0xff] }
 0x5fd   :  { %5312 = vmatpush2.bf16.msra.mxu1 %v6664_v9  ;;  %v6482_v9 = vcombine.low %v3491_v31, %v3495_v55  ;;  %v3611_v22 = vld [vmem:[#allocation4 + $0x418] sm:$0xff] }
 0x5fe   :  { %5261 = vmatmul.mubr.bf16.vlgmr.msra.gmra.mxu0 %v9309_v59  ;;  %5387 = vmatprep.subr.bf16.mxu1 %v6659_v63  ;;  %v3615_v53 = vld [vmem:[#allocation4 + $0x438] sm:$0xff]  ;;  %v6475_v63 = vcombine.high %v3483_v54, %v3487_v19 }
 0x5ff   :  { %5270 = vmatprep.mubr.bf16.mxu0 %v9322_v28  ;;  %5335 = vmatpush1.bf16.msra.mxu0 %v6530_v26  ;;  %v3603_v51 = vld [vmem:[#allocation4 + $0x3d8] sm:$0xff] }
 0x600   :  { %5314 = vmatmul.mubr.bf16.vlgmr.msra.gmra.mxu1 %v9314_v47  ;;  %5336 = vmatprep.subr.bf16.mxu0 %v6523_v56  ;;  %v3607_v45 = vld [vmem:[#allocation4 + $0x3f8] sm:$0xff]  ;;  %v6603_v56 = vcombine.high %v3611_v22, %v3615_v53 }
 0x601   :  { %5323 = vmatprep.mubr.bf16.mxu1 %v9330_v24  ;;  %5388 = vmatpush1.bf16.msra.mxu1 %v6658_v0  ;;  %v6474_v0 = vcombine.low %v3483_v54, %v3487_v19  ;;  %v3731_v36 = vld [vmem:[#allocation4 + $0x7d8] sm:$0xff] }
 0x602   :  { %5389 = vmatprep.subr.bf16.mxu1 %v6651_v43  ;;  %v3735_v27 = vld [vmem:[#allocation4 + $0x7f8] sm:$0xff]  ;;  %v6595_v43 = vcombine.high %v3603_v51, %v3607_v45 }
 0x603   :  { %5337 = vmatpush1.bf16.msra.mxu0 %v6522_v20  ;;  %v6602_v20 = vcombine.low %v3611_v22, %v3615_v53  ;;  %v3595_v21 = vld [vmem:[#allocation4 + $0x398] sm:$0xff] }
 0x604   :  { %5338 = vmatprep.subr.bf16.mxu0 %v6515_v58  ;;  %v3599_v29 = vld [vmem:[#allocation4 + $0x3b8] sm:$0xff]  ;;  %v6723_v58 = vcombine.high %v3731_v36, %v3735_v27 }
 0x605   :  { %5390 = vmatpush1.bf16.msra.mxu1 %v6650_v48  ;;  %v6594_v48 = vcombine.low %v3603_v51, %v3607_v45  ;;  %v3723_v40 = vld [vmem:[#allocation4 + $0x798] sm:$0xff] }
 0x606   :  { %5271 = vmatmul.mubr.bf16.gmra.mxu0 %v9335_v39  ;;  %5391 = vmatprep.subr.bf16.mxu1 %v6643_v44  ;;  %v3727_v14 = vld [vmem:[#allocation4 + $0x7b8] sm:$0xff]  ;;  %v6587_v44 = vcombine.high %v3595_v21, %v3599_v29 }
 0x607   :  { %5339 = vmatpush1.bf16.msra.mxu0 %v6514_v15  ;;  %5366 = vmatprep.mubr.bf16.mxu0 %v9299_v13  ;;  %v6491_v13 = vcombine.high %v3499_v46, %v3503_v11  ;;  %v6722_v15 = vcombine.low %v3731_v36, %v3735_v27  ;;  %v3587_v6 = vld [vmem:[#allocation4 + $0x358] sm:$0xff] }
 0x608   :  { %5324 = vmatmul.mubr.bf16.gmra.mxu1 %v9339_v42  ;;  %5340 = vmatprep.subr.bf16.mxu0 %v6507_v10  ;;  %v3591_v18 = vld [vmem:[#allocation4 + $0x378] sm:$0xff]  ;;  %v6715_v10 = vcombine.high %v3723_v40, %v3727_v14 }
 0x609   :  { %5392 = vmatpush1.bf16.msra.mxu1 %v6642_v62  ;;  %5419 = vmatprep.mubr.bf16.mxu1 %v9304_v57  ;;  %v3619_v57 = vld [vmem:[#allocation4 + $0x458] sm:$0xff]  ;;  %v6586_v62 = vcombine.low %v3595_v21, %v3599_v29 }
 0x60a   :  { %5393 = vmatprep.subr.bf16.mxu1 %v6635_v35  ;;  %v6611_v34 = vcombine.high %v3619_v57, %v3623_v7  ;;  %v6610_v26 = vcombine.low %v3619_v57, %v3623_v7  ;;  %v3715_v41 = vld [vmem:[#allocation4 + $0x758] sm:$0xff]  ;;  %v6579_v35 = vcombine.high %v3587_v6, %v3591_v18 }
 0x60b   :  { %5341 = vmatpush1.bf16.msra.mxu0 %v6506_v1  ;;  %v3719_v16 = vld [vmem:[#allocation4 + $0x778] sm:$0xff]  ;;  %v6714_v1 = vcombine.low %v3723_v40, %v3727_v14 }
 0x60c   :  { %5342 = vmatprep.subr.bf16.mxu0 %v6499_v33  ;;  %v3579_v52 = vld [vmem:[#allocation4 + $0x318] sm:$0xff]  ;;  %v6707_v33 = vcombine.high %v3715_v41, %v3719_v16 }
 0x60d   :  { %5394 = vmatpush1.bf16.msra.mxu1 %v6634_v23  ;;  %v3583_v17 = vld [vmem:[#allocation4 + $0x338] sm:$0xff]  ;;  %v6578_v23 = vcombine.low %v3587_v6, %v3591_v18 }
 0x60e   :  { %5395 = vmatprep.subr.bf16.mxu1 %v6627_v12  ;;  %v3707_v46 = vld [vmem:[#allocation4 + $0x718] sm:$0xff]  ;;  %v6571_v12 = vcombine.high %v3579_v52, %v3583_v17 }
 0x60f   :  { %5343 = vmatpush1.bf16.msra.mxu0 %v6498_v5  ;;  %v3711_v11 = vld [vmem:[#allocation4 + $0x738] sm:$0xff]  ;;  %v6706_v5 = vcombine.low %v3715_v41, %v3719_v16 }
 0x610   :  { %5344 = vmatprep.subr.bf16.mxu0 %v6491_v13  ;;  %v3571_v25 = vld [vmem:[#allocation4 + $0x2d8] sm:$0xff]  ;;  %v6699_v13 = vcombine.high %v3707_v46, %v3711_v11 }
 0x611   :  { %5396 = vmatpush1.bf16.msra.mxu1 %v6626_v30  ;;  %v3575_v38 = vld [vmem:[#allocation4 + $0x2f8] sm:$0xff]  ;;  %v6570_v30 = vcombine.low %v3579_v52, %v3583_v17 }
 0x612   :  { %5397 = vmatprep.subr.bf16.mxu1 %v6619_v2  ;;  %v3699_v31 = vld [vmem:[#allocation4 + $0x6d8] sm:$0xff]  ;;  %v6563_v2 = vcombine.high %v3571_v25, %v3575_v38 }
 0x613   :  { %5345 = vmatpush1.bf16.msra.mxu0 %v6490_v32  ;;  %v3703_v55 = vld [vmem:[#allocation4 + $0x6f8] sm:$0xff]  ;;  %v6698_v32 = vcombine.low %v3707_v46, %v3711_v11 }
 0x614   :  { %5346 = vmatprep.subr.bf16.mxu0 %v6483_v3  ;;  %v3563_v57 = vld [vmem:[#allocation4 + $0x298] sm:$0xff]  ;;  %v6691_v3 = vcombine.high %v3699_v31, %v3703_v55 }
 0x615   :  { %5398 = vmatpush1.bf16.msra.mxu1 %v6618_v61  ;;  %v3567_v7 = vld [vmem:[#allocation4 + $0x2b8] sm:$0xff]  ;;  %v6562_v61 = vcombine.low %v3571_v25, %v3575_v38 }
 0x616   :  { %5399 = vmatprep.subr.bf16.mxu1 %v6611_v34  ;;  %v3691_v54 = vld [vmem:[#allocation4 + $0x698] sm:$0xff]  ;;  %v6555_v34 = vcombine.high %v3563_v57, %v3567_v7 }
 0x617   :  { %5347 = vmatpush1.bf16.msra.mxu0 %v6482_v9  ;;  %v3695_v19 = vld [vmem:[#allocation4 + $0x6b8] sm:$0xff]  ;;  %v6690_v9 = vcombine.low %v3699_v31, %v3703_v55 }
 0x618   :  { %5348 = vmatprep.subr.bf16.mxu0 %v6475_v63  ;;  %v3555_v22 = vld [vmem:[#allocation4 + $0x258] sm:$0xff]  ;;  %v6683_v63 = vcombine.high %v3691_v54, %v3695_v19 }
 0x619   :  { %5400 = vmatpush1.bf16.msra.mxu1 %v6610_v26  ;;  %v3559_v53 = vld [vmem:[#allocation4 + $0x278] sm:$0xff]  ;;  %v6554_v26 = vcombine.low %v3563_v57, %v3567_v7 }
 0x61a   :  { %5401 = vmatprep.subr.bf16.mxu1 %v6603_v56  ;;  %v3683_v51 = vld [vmem:[#allocation4 + $0x658] sm:$0xff]  ;;  %v6547_v56 = vcombine.high %v3555_v22, %v3559_v53 }
 0x61b   :  { %5349 = vmatpush1.bf16.msra.mxu0 %v6474_v0  ;;  %v3687_v45 = vld [vmem:[#allocation4 + $0x678] sm:$0xff]  ;;  %v6682_v0 = vcombine.low %v3691_v54, %v3695_v19 }
 0x61c   :  { %5350 = vmatprep.subr.bf16.mxu0 %v6595_v43  ;;  %v3547_v36 = vld [vmem:[#allocation4 + $0x218] sm:$0xff]  ;;  %v6675_v43 = vcombine.high %v3683_v51, %v3687_v45 }
 0x61d   :  { %5402 = vmatpush1.bf16.msra.mxu1 %v6602_v20  ;;  %v3551_v27 = vld [vmem:[#allocation4 + $0x238] sm:$0xff]  ;;  %v6546_v20 = vcombine.low %v3555_v22, %v3559_v53 }
 0x61e   :  { %5403 = vmatprep.subr.bf16.mxu1 %v6723_v58  ;;  %v3675_v21 = vld [vmem:[#allocation4 + $0x618] sm:$0xff]  ;;  %v6539_v58 = vcombine.high %v3547_v36, %v3551_v27  ;;  %v6538_v14 = vcombine.low %v3547_v36, %v3551_v27 }
 0x61f   :  { %5351 = vmatpush2.bf16.msra.mxu0 %v6594_v48  ;;  %v3679_v29 = vld [vmem:[#allocation4 + $0x638] sm:$0xff]  ;;  %v6674_v48 = vcombine.low %v3683_v51, %v3687_v45 }
 0x620   :  { %5352 = vmatprep.subr.bf16.mxu0 %v6587_v44  ;;  %v6667_v40 = vcombine.high %v3675_v21, %v3679_v29  ;;  %v6666_v44 = vcombine.low %v3675_v21, %v3679_v29 }
 0x621   :  { %5404 = vmatpush2.bf16.msra.mxu1 %v6722_v15 }
 0x622   :  { %5405 = vmatprep.subr.bf16.mxu1 %v6715_v10 }
 0x623   :  { %5353 = vmatpush2.bf16.msra.mxu0 %v6586_v62 }
 0x624   :  { %5354 = vmatprep.subr.bf16.mxu0 %v6579_v35 }
 0x625   :  { %5406 = vmatpush2.bf16.msra.mxu1 %v6714_v1 }
 0x626   :  { %5407 = vmatprep.subr.bf16.mxu1 %v6707_v33 }
 0x627   :  { %5355 = vmatpush2.bf16.msra.mxu0 %v6578_v23 }
 0x628   :  { %5356 = vmatprep.subr.bf16.mxu0 %v6571_v12 }
 0x629   :  { %5408 = vmatpush2.bf16.msra.mxu1 %v6706_v5 }
 0x62a   :  { %5409 = vmatprep.subr.bf16.mxu1 %v6699_v13 }
 0x62b   :  { %5357 = vmatpush2.bf16.msra.mxu0 %v6570_v30 }
 0x62c   :  { %5358 = vmatprep.subr.bf16.mxu0 %v6563_v2 }
 0x62d   :  { %5410 = vmatpush2.bf16.msra.mxu1 %v6698_v32 }
 0x62e   :  { %5411 = vmatprep.subr.bf16.mxu1 %v6691_v3 }
 0x62f   :  { %5359 = vmatpush2.bf16.msra.mxu0 %v6562_v61 }
 0x630   :  { %5360 = vmatprep.subr.bf16.mxu0 %v6555_v34 }
 0x631   :  { %5412 = vmatpush2.bf16.msra.mxu1 %v6690_v9 }
 0x632   :  { %5413 = vmatprep.subr.bf16.mxu1 %v6683_v63 }
 0x633   :  { %5361 = vmatpush2.bf16.msra.mxu0 %v6554_v26 }
 0x634   :  { %5362 = vmatprep.subr.bf16.mxu0 %v6547_v56 }
 0x635   :  { %5414 = vmatpush2.bf16.msra.mxu1 %v6682_v0 }
 0x636   :  { %5415 = vmatprep.subr.bf16.mxu1 %v6675_v43 }
 0x637   :  { %5363 = vmatpush2.bf16.msra.mxu0 %v6546_v20 }
 0x638   :  { %5364 = vmatprep.subr.bf16.mxu0 %v6539_v58 }
 0x639   :  { %5416 = vmatpush2.bf16.msra.mxu1 %v6674_v48 }
 0x63a   :  { %5417 = vmatprep.subr.bf16.mxu1 %v6667_v40 }
 0x63b   :  { %5365 = vmatpush2.bf16.msra.mxu0 %v6538_v14 }
 0x63d   :  { %5418 = vmatpush2.bf16.msra.mxu1 %v6666_v44 }
 0x63e   :  { %5367 = vmatmul.mubr.bf16.vlgmr.msra.gmra.mxu0 %v9309_v59  ;;  %v5050_v15 = vpop.f32.mrf.mxu0 }
 0x63f   :  { %5376 = vmatprep.mubr.bf16.mxu0 %v9322_v28 }
 0x640   :  { %5420 = vmatmul.mubr.bf16.vlgmr.msra.gmra.mxu1 %v9314_v47  ;;  %v5103_v6 = vpop.f32.mrf.mxu1  ;;  %v5052_v18 = vpop.f32.mrf.mxu0 }
 0x641   :  { %5429 = vmatprep.mubr.bf16.mxu1 %v9330_v24  ;;  %v9384_v57 = vadd.f32 %v5103_v6, %v5050_v15 }
 0x642   :  { %v5105_v10 = vpop.f32.mrf.mxu1  ;;  %v5054_v62 = vpop.f32.mrf.mxu0 }
 0x643   :  { %v5514_v63 = vmul.f32 %v9384_v57, %v9384_v57  ;;  %v9406_v26 = vadd.f32 %v5105_v10, %v5052_v18 }
 0x644   :  { %v5107_v41 = vpop.f32.mrf.mxu1  ;;  %v5056_v16 = vpop.f32.mrf.mxu0 }
 0x645   :  { %v9382_v32 = vadd.f32 %v5107_v41, %v5054_v62  ;;  %v5515_v48 = vmul.f32 %v9406_v26, %v9406_v26 }
 0x646   :  { %5377 = vmatmul.mubr.bf16.gmra.mxu0 %v9335_v39  ;;  %v5109_v35 = vpop.f32.mrf.mxu1  ;;  %v5060_v1 = vpop.f32.mrf.mxu0 }
 0x647   :  { %v5522_v54 = vmul.f32 %v9382_v32, %v9382_v32  ;;  %v9394_v19 = vadd.f32 %v5109_v35, %v5056_v16  ;;  %v5442_v22 = vadd.f32 %v9382_v32, %v9384_v57 }
 0x648   :  { %5430 = vmatmul.mubr.bf16.gmra.mxu1 %v9339_v42  ;;  %v5113_v59 = vpop.f32.mrf.mxu1  ;;  %v5062_v52 = vpop.f32.mrf.mxu0 }
 0x649   :  { %v9390_v61 = vadd.f32 %v5113_v59, %v5060_v1  ;;  %v5546_v0 = vadd.f32 %v5522_v54, %v5514_v63  ;;  %v5523_v36 = vmul.f32 %v9394_v19, %v9394_v19  ;;  %v5451_v20 = vadd.f32 %v9394_v19, %v9406_v26 }
 0x64a   :  { %v5115_v28 = vpop.f32.mrf.mxu1  ;;  %v5064_v17 = vpop.f32.mrf.mxu0 }
 0x64b   :  { %10362 = vst [vmem:[#allocation37_spill] sm:$0xff] %v9390_v61  ;;  %v5443_v51 = vadd.f32 %v5442_v22, %v9390_v61  ;;  %v5530_v45 = vmul.f32 %v9390_v61, %v9390_v61  ;;  %v9411_v56 = vadd.f32 %v5115_v28, %v5062_v52  ;;  %v5555_v15 = vadd.f32 %v5523_v36, %v5515_v48 }
 0x64c   :  { %v5117_v47 = vpop.f32.mrf.mxu1  ;;  %v5066_v33 = vpop.f32.mrf.mxu0 }
 0x64d   :  { %v9402_v53 = vadd.f32 %v5117_v47, %v5064_v17  ;;  %10364 = vst [vmem:[#allocation31_spill] sm:$0xff] %v9411_v56  ;;  %v5547_v40 = vadd.f32 %v5546_v0, %v5530_v45  ;;  %v5452_v14 = vadd.f32 %v5451_v20, %v9411_v56  ;;  %v5531_v44 = vmul.f32 %v9411_v56, %v9411_v56 }
 0x64e   :  { %v5119_v24 = vpop.f32.mrf.mxu1 }
 0x64f   :  { %10363 = vst [vmem:[#allocation39_spill] sm:$0xff] %v9402_v53  ;;  %v5444_v21 = vadd.f32 %v5443_v51, %v9402_v53  ;;  %v5538_v29 = vmul.f32 %v9402_v53, %v9402_v53  ;;  %v9420_v58 = vadd.f32 %v5119_v24, %v5066_v33  ;;  %v5556_v35 = vadd.f32 %v5555_v15, %v5531_v44 }
 0x651   :  { %10365 = vst [vmem:[#allocation41_spill] sm:$0xff] %v9420_v58  ;;  %v5445_v10 = vrot.slane %v5444_v21, 4  ;;  %v5548_v62 = vadd.f32 %v5547_v40, %v5538_v29  ;;  %v5453_v41 = vadd.f32 %v5452_v14, %v9420_v58  ;;  %v5539_v16 = vmul.f32 %v9420_v58, %v9420_v58 }
 0x653   :  { %v5446_v52 = vadd.f32 %v5445_v10, %v5444_v21  ;;  %v5549_v28 = vrot.slane %v5548_v62, 4  ;;  %v5454_v17 = vrot.slane %v5453_v41, 4  ;;  %v5557_v47 = vadd.f32 %v5556_v35, %v5539_v16 }
 0x655   :  { %v5447_v54 = vrot.slane %v5446_v52, 2  ;;  %v5550_v22 = vadd.f32 %v5549_v28, %v5548_v62  ;;  %v5455_v63 = vadd.f32 %v5454_v17, %v5453_v41  ;;  %v5558_v51 = vrot.slane %v5557_v47, 4 }
 0x657   :  { %v9432_v20 = vadd.f32 %v5447_v54, %v5446_v52  ;;  %v5551_v29 = vrot.slane %v5550_v22, 2  ;;  %v5456_v48 = vrot.slane %v5455_v63, 2  ;;  %v9434_v40 = vadd.f32 %v5558_v51, %v5557_v47 }
 0x67e   :  { %v9366_v23 = vpop.f32.mrf.mxu0 }
 0x680   :  { %v9368_v39 = vpop.f32.mrf.mxu1  ;;  %v9370_v42 = vpop.f32.mrf.mxu0 }
 0x681   :  { %v9438_v21 = vadd.f32 %v9368_v39, %v9366_v23  ;;  %v9455_v39 = vadd.f32 %v5551_v29, %v5550_v22 }
 0x682   :  { %v9372_v46 = vpop.f32.mrf.mxu1  ;;  %v5160_v11 = vpop.f32.mrf.mxu0 }
 0x683   :  { %v9444_v44 = vadd.f32 %v9372_v46, %v9370_v42  ;;  %v5560_v42 = vrot.slane %v9434_v40, 2  ;;  %v5516_v46 = vmul.f32 %v9438_v21, %v9438_v21 }
 0x684   :  { %v5213_v12 = vpop.f32.mrf.mxu1  ;;  %v9374_v5 = vpop.f32.mrf.mxu0 }
 0x685   :  { %v9430_v45 = vadd.f32 %v5213_v12, %v5160_v11  ;;  %v9534_v23 = vadd.f32 %v5560_v42, %v9434_v40 }
 0x686   :  { %v9376_v25 = vpop.f32.mrf.mxu1  ;;  %v5166_v38 = vpop.f32.mrf.mxu0 }
 0x687   :  { %v9448_v11 = vadd.f32 %v9376_v25, %v9374_v5  ;;  %v5524_v12 = vmul.f32 %v9430_v45, %v9430_v45 }
 0x688   :  { %v5219_v13 = vpop.f32.mrf.mxu1  ;;  %v9378_v30 = vpop.f32.mrf.mxu0 }
 0x689   :  { %v9440_v14 = vadd.f32 %v5219_v13, %v5166_v38  ;;  %v9457_v38 = vadd.f32 %v5456_v48, %v5455_v63  ;;  %v5525_v41 = vmul.f32 %v9448_v11, %v9448_v11  ;;  %v5564_v35 = vadd.f32 %v5524_v12, %v5516_v46 }
 0x68a   :  { %v9380_v31 = vpop.f32.mrf.mxu1  ;;  %v5170_v55 = vpop.f32.mrf.mxu0  ;;  %v5469_v28 = vadd.f32 %v9448_v11, %v9444_v44 }
 0x68b   :  { %10366 = vst [vmem:[#allocation42_spill] sm:$0xff] %v9440_v14  ;;  %v5532_v5 = vmul.f32 %v9440_v14, %v9440_v14  ;;  %v9476_v16 = vadd.f32 %v9380_v31, %v9378_v30 }
 0x68c   :  { %v5223_v2 = vpop.f32.mrf.mxu1  ;;  %v9386_v7 = vpop.f32.mrf.mxu0 }
 0x68d   :  { %v9452_v15 = vadd.f32 %v5223_v2, %v5170_v55  ;;  %v5517_v55 = vmul.f32 %v9444_v44, %v9444_v44  ;;  %v5460_v2 = vadd.f32 %v9430_v45, %v9438_v21  ;;  %10369 = vst [vmem:[#allocation47_spill] sm:$0xff] %v9476_v16  ;;  %v5565_v31 = vadd.f32 %v5564_v35, %v5532_v5 }
 0x68e   :  { %v9388_v3 = vpop.f32.mrf.mxu1  ;;  %v5470_v12 = vadd.f32 %v5469_v28, %v9476_v16 }
 0x68f   :  { %10367 = vst [vmem:[#allocation45_spill] sm:$0xff] %v9452_v15  ;;  %v5461_v17 = vadd.f32 %v5460_v2, %v9440_v14  ;;  %v9495_v54 = vadd.f32 %v9388_v3, %v9386_v7 }
 0x691   :  { %10372 = vst [vmem:[#allocation49_spill] sm:$0xff] %v9495_v54 }
 0x6be   :  { %v9396_v34 = vpop.f32.mrf.mxu0 }
 0x6c0   :  { %v9398_v9 = vpop.f32.mrf.mxu1  ;;  %v5264_v27 = vpop.f32.mrf.mxu0 }
 0x6c2   :  { %v5317_v43 = vpop.f32.mrf.mxu1  ;;  %v5266_v6 = vpop.f32.mrf.mxu0 }
 0x6c4   :  { %v5319_v18 = vpop.f32.mrf.mxu1  ;;  %v5268_v1 = vpop.f32.mrf.mxu0 }
 0x6c5   :  { %v9464_v25 = vadd.f32 %v5319_v18, %v5266_v6  ;;  %v5540_v6 = vmul.f32 %v9452_v15, %v9452_v15  ;;  %v9482_v18 = vadd.f32 %v9398_v9, %v9396_v34 }
 0x6c6   :  { %v5321_v59 = vpop.f32.mrf.mxu1  ;;  %v5272_v33 = vpop.f32.mrf.mxu0 }
 0x6c7   :  { %v9466_v13 = vadd.f32 %v5321_v59, %v5268_v1  ;;  %v9484_v1 = vadd.f32 %v5317_v43, %v5264_v27  ;;  %v5526_v34 = vmul.f32 %v9464_v25, %v9464_v25  ;;  %v5573_v27 = vadd.f32 %v5525_v41, %v5517_v55 }
 0x6c8   :  { %v5325_v24 = vpop.f32.mrf.mxu1  ;;  %v5274_v0 = vpop.f32.mrf.mxu0  ;;  %v5533_v43 = vmul.f32 %v9476_v16, %v9476_v16  ;;  %v5566_v63 = vadd.f32 %v5565_v31, %v5540_v6  ;;  %v5518_v7 = vmul.f32 %v9482_v18, %v9482_v18  ;;  %v5478_v51 = vadd.f32 %v9464_v25, %v9482_v18 }
 0x6c9   :  { %10368 = vst [vmem:[#allocation46_spill] sm:$0xff] %v9466_v13  ;;  %v9489_v47 = vadd.f32 %v5325_v24, %v5272_v33  ;;  %v5527_v9 = vmul.f32 %v9466_v13, %v9466_v13  ;;  %v5462_v24 = vadd.f32 %v5461_v17, %v9452_v15  ;;  %v5519_v3 = vmul.f32 %v9484_v1, %v9484_v1 }
 0x6ca   :  { %v5327_v36 = vpop.f32.mrf.mxu1  ;;  %v5276_v10 = vpop.f32.mrf.mxu0  ;;  %v5567_v28 = vrot.slane %v5566_v63, 4  ;;  %v5471_v17 = vadd.f32 %v5470_v12, %v9495_v54 }
 0x6cb   :  { %10370 = vst [vmem:[#allocation48_spill] sm:$0xff] %v9489_v47  ;;  %v9491_v30 = vadd.f32 %v5327_v36, %v5274_v0  ;;  %v5487_v0 = vadd.f32 %v9466_v13, %v9484_v1  ;;  %v5534_v36 = vmul.f32 %v9489_v47, %v9489_v47  ;;  %v5591_v46 = vadd.f32 %v5527_v9, %v5519_v3 }
 0x6cc   :  { %v5329_v62 = vpop.f32.mrf.mxu1  ;;  %v5278_v59 = vpop.f32.mrf.mxu0  ;;  %v5479_v5 = vadd.f32 %v5478_v51, %v9489_v47 }
 0x6cd   :  { %10371 = vst [vmem:[#allocation50_spill] sm:$0xff] %v9491_v30  ;;  %v9503_v22 = vadd.f32 %v5329_v62, %v5276_v10  ;;  %v5535_v29 = vmul.f32 %v9491_v30, %v9491_v30  ;;  %v5541_v10 = vmul.f32 %v9495_v54, %v9495_v54  ;;  %v5582_v62 = vadd.f32 %v5526_v34, %v5518_v7 }
 0x6ce   :  { %v5331_v52 = vpop.f32.mrf.mxu1  ;;  %v5488_v55 = vadd.f32 %v5487_v0, %v9491_v30  ;;  %v5458_v0 = vrot.slane %v9457_v38, 1 }
 0x6cf   :  { %10373 = vst [vmem:[#allocation13_spill] sm:$0xff] %v9503_v22  ;;  %v9505_v33 = vadd.f32 %v5331_v52, %v5278_v59  ;;  %v5542_v2 = vmul.f32 %v9503_v22, %v9503_v22  ;;  %v5574_v59 = vadd.f32 %v5573_v27, %v5533_v43  ;;  %v5463_v52 = vrot.slane %v5462_v24, 4 }
 0x6d0   :  { %v5583_v31 = vadd.f32 %v5582_v62, %v5534_v36  ;;  %v5592_v34 = vadd.f32 %v5591_v46, %v5535_v29  ;;  %v5480_v9 = vadd.f32 %v5479_v5, %v9503_v22  ;;  %v10375_v36 = vrot.slane %v9432_v20, 1 }
 0x6d1   :  { %10374 = vst [vmem:[#allocation51_spill] sm:$0xff] %v9505_v33  ;;  %v5543_v41 = vmul.f32 %v9505_v33, %v9505_v33  ;;  %v5489_v7 = vadd.f32 %v5488_v55, %v9505_v33  ;;  %v5575_v15 = vadd.f32 %v5574_v59, %v5541_v10  ;;  %v5464_v12 = vadd.f32 %v5463_v52, %v5462_v24 }
 0x6d2   :  { %v5584_v58 = vadd.f32 %v5583_v31, %v5542_v2  ;;  %v9539_v29 = vadd.f32 %v10375_v36, %v9432_v20  ;;  %v9541_v62 = vadd.f32 %v5567_v28, %v5566_v63  ;;  %v5472_v46 = vrot.slane %v5471_v17, 4 }
 0x6d3   :  { %v5593_v27 = vadd.f32 %v5592_v34, %v5543_v41  ;;  %v5481_v55 = vrot.slane %v5480_v9, 4  ;;  %v5490_v33 = vrot.slane %v5489_v7, 4  ;;  %v5576_v41 = vrot.slane %v5575_v15, 4 }
 0x6d4   :  { %v9551_v20 = vadd.f32 %v5458_v0, %v9457_v38  ;;  %v5585_v63 = vrot.slane %v5584_v58, 4  ;;  %v5465_v34 = vrot.slane %v5464_v12, 2 }
 0x6d5   :  { %v5594_v52 = vrot.slane %v5593_v27, 4  ;;  %v5482_v36 = vadd.f32 %v5481_v55, %v5480_v9  ;;  %v5491_v38 = vadd.f32 %v5490_v33, %v5489_v7  ;;  %v5577_v24 = vadd.f32 %v5576_v41, %v5575_v15 }
 0x6d7   :  { %v5595_v9 = vadd.f32 %v5594_v52, %v5593_v27 }
 0x6d9   :  { %v5596_v47 = vrot.slane %v5595_v9, 2 }
 0x6fe   :  { %v5368_v48 = vpop.f32.mrf.mxu0 }
 0x700   :  { %v5421_v35 = vpop.f32.mrf.mxu1  ;;  %v5370_v6 = vpop.f32.mrf.mxu0 }
 0x701   :  { %v9545_v40 = vadd.f32 %v5421_v35, %v5368_v48 }
 0x702   :  { %v5423_v3 = vpop.f32.mrf.mxu1  ;;  %v5372_v51 = vpop.f32.mrf.mxu0 }
 0x703   :  { %v9554_v28 = vadd.f32 %v5423_v3, %v5370_v6  ;;  %v5520_v0 = vmul.f32 %v9545_v40, %v9545_v40 }
 0x704   :  { %v5425_v43 = vpop.f32.mrf.mxu1  ;;  %v5374_v53 = vpop.f32.mrf.mxu0 }
 0x705   :  { %v9543_v5 = vadd.f32 %v5425_v43, %v5372_v51  ;;  %v5569_v51 = vrot.slane %v9541_v62, 2  ;;  %v5473_v43 = vadd.f32 %v5472_v46, %v5471_v17  ;;  %v5586_v46 = vadd.f32 %v5585_v63, %v5584_v58 }
 0x706   :  { %v5427_v42 = vpop.f32.mrf.mxu1  ;;  %v5378_v10 = vpop.f32.mrf.mxu0  ;;  %v5521_v33 = vmul.f32 %v9554_v28, %v9554_v28 }
 0x707   :  { %10376 = vst [vmem:[#allocation52_spill] sm:$0xff] %v9543_v5  ;;  %v9548_v59 = vadd.f32 %v5427_v42, %v5374_v53  ;;  %v5528_v48 = vmul.f32 %v9543_v5, %v9543_v5  ;;  %v5496_v2 = vadd.f32 %v9543_v5, %v9545_v40 }
 0x708   :  { %v5431_v35 = vpop.f32.mrf.mxu1  ;;  %v5380_v31 = vpop.f32.mrf.mxu0 }
 0x709   :  { %10377 = vst [vmem:[#allocation16_spill] sm:$0xff] %v9548_v59  ;;  %v9559_v53 = vadd.f32 %v5431_v35, %v5378_v10  ;;  %v5529_v6 = vmul.f32 %v9548_v59, %v9548_v59  ;;  %v5600_v7 = vadd.f32 %v5528_v48, %v5520_v0  ;;  %v5505_v35 = vadd.f32 %v9548_v59, %v9554_v28 }
 0x70a   :  { %v5433_v3 = vpop.f32.mrf.mxu1  ;;  %v5382_v42 = vpop.f32.mrf.mxu0 }
 0x70b   :  { %10378 = vst [vmem:[#allocation18_spill] sm:$0xff] %v9559_v53  ;;  %v5536_v22 = vmul.f32 %v9559_v53, %v9559_v53  ;;  %v9569_v17 = vadd.f32 %v5433_v3, %v5380_v31  ;;  %v5497_v15 = vadd.f32 %v5496_v2, %v9559_v53  ;;  %v5483_v31 = vrot.slane %v5482_v36, 2 }
 0x70c   :  { %v5435_v55 = vpop.f32.mrf.mxu1  ;;  %v5384_v10 = vpop.f32.mrf.mxu0  ;;  %v5492_v3 = vrot.slane %v5491_v38, 2  ;;  %v5609_v58 = vadd.f32 %v5529_v6, %v5521_v33  ;;  %v5474_v2 = vrot.slane %v5473_v43, 2  ;;  %v5587_v53 = vrot.slane %v5586_v46, 2 }
 0x70d   :  { %10379 = vst [vmem:[#allocation14_spill] sm:$0xff] %v9569_v17  ;;  %v5537_v41 = vmul.f32 %v9569_v17, %v9569_v17  ;;  %v9578_v54 = vadd.f32 %v5435_v55, %v5382_v42  ;;  %v5601_v27 = vadd.f32 %v5600_v7, %v5536_v22  ;;  %v5506_v52 = vadd.f32 %v5505_v35, %v9569_v17 }
 0x70e   :  { %v5437_v63 = vpop.f32.mrf.mxu1  ;;  %v5466_v6 = vadd.f32 %v5465_v34, %v5464_v12  ;;  %v5578_v33 = vrot.slane %v5577_v24, 2  ;;  %v5484_v7 = vadd.f32 %v5483_v31, %v5482_v36  ;;  %v5493_v35 = vadd.f32 %v5492_v3, %v5491_v38 }
 0x70f   :  { %10380 = vst [vmem:[#allocation17_spill] sm:$0xff] %v9578_v54  ;;  %v5498_v48 = vadd.f32 %v5497_v15, %v9578_v54  ;;  %v5544_v0 = vmul.f32 %v9578_v54, %v9578_v54  ;;  %v9584_v30 = vadd.f32 %v5437_v63, %v5384_v10  ;;  %v5610_v16 = vadd.f32 %v5609_v58, %v5537_v41 }
 0x710   :  { %v5570_v63 = vadd.f32 %v5569_v51, %v9541_v62  ;;  %v5475_v56 = vadd.f32 %v5474_v2, %v5473_v43  ;;  %v5588_v61 = vadd.f32 %v5587_v53, %v5586_v46  ;;  %v5597_v41 = vadd.f32 %v5596_v47, %v5595_v9 }
 0x711   :  { %10381 = vst [vmem:[#allocation44_spill] sm:$0xff] %v9584_v30  ;;  %v5499_v42 = vrot.slane %v5498_v48, 4  ;;  %v5602_v55 = vadd.f32 %v5601_v27, %v5544_v0  ;;  %v5507_v14 = vadd.f32 %v5506_v52, %v9584_v30  ;;  %v5545_v22 = vmul.f32 %v9584_v30, %v9584_v30 }
 0x712   :  { %v5467_v59 = vrot.slane %v5466_v6, 1  ;;  %v5579_v5 = vadd.f32 %v5578_v33, %v5577_v24  ;;  %v5485_v30 = vrot.slane %v5484_v7, 1  ;;  %v5494_v12 = vrot.slane %v5493_v35, 1 }
 0x713   :  { %v5500_v15 = vadd.f32 %v5499_v42, %v5498_v48  ;;  %v5603_v17 = vrot.slane %v5602_v55, 4  ;;  %v5508_v54 = vrot.slane %v5507_v14, 4  ;;  %v5611_v10 = vadd.f32 %v5610_v16, %v5545_v22 }
 0x714   :  { %v5476_v3 = vrot.slane %v5475_v56, 1  ;;  %v5571_v48 = vrot.slane %v5570_v63, 1  ;;  %v5589_v16 = vrot.slane %v5588_v61, 1  ;;  %v5598_v42 = vrot.slane %v5597_v41, 1 }
 0x715   :  { %v5501_v58 = vrot.slane %v5500_v15, 2  ;;  %v5604_v27 = vadd.f32 %v5603_v17, %v5602_v55  ;;  %v5509_v0 = vadd.f32 %v5508_v54, %v5507_v14  ;;  %v5612_v52 = vrot.slane %v5611_v10, 4 }
 0x716   :  { %v5468_v53 = vadd.f32 %v5467_v59, %v5466_v6  ;;  %v5486_v17 = vadd.f32 %v5485_v30, %v5484_v7  ;;  %v5495_v14 = vadd.f32 %v5494_v12, %v5493_v35  ;;  %v5580_v54 = vrot.slane %v5579_v5, 1 }
 0x717   :  { %v5502_v34 = vadd.f32 %v5501_v58, %v5500_v15  ;;  %v5605_v36 = vrot.slane %v5604_v27, 2  ;;  %v5510_v38 = vrot.slane %v5509_v0, 2  ;;  %v5613_v31 = vadd.f32 %v5612_v52, %v5611_v10 }
 0x718   :  { %v5477_v55 = vadd.f32 %v5476_v3, %v5475_v56  ;;  %v5572_v22 = vadd.f32 %v5571_v48, %v5570_v63  ;;  %v5590_v33 = vadd.f32 %v5589_v16, %v5588_v61  ;;  %v5599_v15 = vadd.f32 %v5598_v42, %v5597_v41 }
 0x719   :  { %v5503_v62 = vrot.slane %v5502_v34, 1  ;;  %v5606_v51 = vadd.f32 %v5605_v36, %v5604_v27  ;;  %v5511_v43 = vadd.f32 %v5510_v38, %v5509_v0  ;;  %v5614_v47 = vrot.slane %v5613_v31, 2 }
 0x71a   :  { %v5618_v27 = vadd.f32 %v5486_v17, %v9539_v29  ;;  %v10382_v59 = vrot.slane %v9455_v39, 1  ;;  %v10383_v6 = vrot.slane %v9534_v23, 1  ;;  %v5581_v35 = vadd.f32 %v5580_v54, %v5579_v5 }
 0x71b   :  { %v5512_v46 = vrot.slane %v5511_v43, 1  ;;  %v5615_v24 = vadd.f32 %v5614_v47, %v5613_v31  ;;  %v5504_v9 = vadd.f32 %v5503_v62, %v5502_v34  ;;  %v5607_v2 = vrot.slane %v5606_v51, 1 }
 0x71c   :  { %v5554_v30 = vadd.f32 %v10382_v59, %v9455_v39  ;;  %v5563_v7 = vadd.f32 %v10383_v6, %v9534_v23  ;;  %v5619_v56 = vadd.f32 %v5495_v14, %v9551_v20 }
 0x71d   :  { %v5513_v10 = vadd.f32 %v5512_v46, %v5511_v43  ;;  %v5620_v58 = vadd.f32 %v5504_v9, %v5468_v53  ;;  %v5608_v52 = vadd.f32 %v5607_v2, %v5606_v51  ;;  %v5616_v13 = vrot.slane %v5615_v24, 1  ;;  %v5440_v46 = vld [vmem:[%s10117_s8] sm:$0xff] }
 0x71e   :  { %v5622_v0 = vadd.f32 %v5590_v33, %v5554_v30  ;;  %v5623_v36 = vadd.f32 %v5599_v15, %v5563_v7  ;;  %v5684_v9 = vsub.s32 4, %v7821_v37  ;;  %v5688_v2 = vsub.s32 5, %v7821_v37 }
 0x71f   :  { %v5621_v63 = vadd.f32 %v5513_v10, %v5477_v55  ;;  %v5617_v61 = vadd.f32 %v5616_v13, %v5615_v24  ;;  %v5624_v41 = vadd.f32 %v5608_v52, %v5572_v22  ;;  %v5626_v12 = vadd.f32 %v5620_v58, %v5618_v27 }
 0x720   :  { %v5692_v55 = vsub.s32 6, %v7821_v37  ;;  %v5696_v22 = vsub.s32 7, %v7821_v37 }
 0x721   :  { %v5627_v34 = vadd.f32 %v5621_v63, %v5619_v56  ;;  %v5625_v38 = vadd.f32 %v5617_v61, %v5581_v35  ;;  %v5628_v31 = vadd.f32 %v5624_v41, %v5622_v0 }
 0x723   :  { %v5630_v29 = vadd.f32 %v5627_v34, %v5626_v12  ;;  %v5629_v3 = vadd.f32 %v5625_v38, %v5623_v36 }
 0x725   :  { %5632 = vrot.lane.b32.xlu0 %v5630_v29, %s7493_s7  ;;  %v5631_v39 = vadd.f32 %v5629_v3, %v5628_v31 }
 0x727   :  { %5635 = vrot.lane.b32.xlu1 %v5631_v39, %s7493_s7 }
 0x797   :  { %v5633_v23 = vpop.permute.xlu0 %5632 }
 0x798   :  { %v5634_v5 = vadd.f32 %v5633_v23, %v5630_v29 }
 0x799   :  { %v5636_v48 = vpop.permute.xlu1 %5635 }
 0x79a   :  { %v5638_v20 = vmul.f32 0.001953125, %v5634_v5  ;;  %v5637_v16 = vadd.f32 %v5636_v48, %v5631_v39 }
 0x79c   :  { %v5639_v13 = vmul.f32 0.001953125, %v5637_v16  ;;  %v5640_v42 = vmul.f32 %v5638_v20, %v5638_v20 }
 0x79e   :  { %v5641_v62 = vsub.f32 %v5639_v13, %v5640_v42 }
 0x7a0   :  { %v5642_v51 = vmax.f32 %v5641_v62, 0.0 }
 0x7a2   :  { %v5643_v43 = vadd.f32 1e-05, %v5642_v51 }
 0x7a4   :  { %7281 = vrsqrt.f32 %v5643_v43 }
 0x7b1   :  { %v7282_v47 = vpop.eup %7281 }
 0x7b2   :  { %v5646_v53 = vcombine.low %v7282_v47, %v7282_v47 }
 0x7b4   :  { %v5653_v17 = vrot.slane %v5646_v53, %v10357_v4 }
 0x7b6   :  { %v5654_v14 = vcombine.low %v5653_v17, %v5653_v17 }
 0x7b8   :  { %v5661_v54 = vrot.slane %v5654_v14, %v10357_v4 }
 0x7ba   :  { %v5662_v24 = vcombine.low %v5661_v54, %v5661_v54 }
 0x7bc   :  { %v5664_v33 = vmul.f32 %v5662_v24, %v5440_v46 }
 0x7be   :  { %v9610_v15 = vrot.slane %v5664_v33, %v10358_v50  ;;  %v9613_v10 = vrot.slane %v5664_v33, %v10359_v49  ;;  %v9616_v58 = vrot.slane %v5664_v33, %v10360_v60  ;;  %v9619_v52 = vrot.slane %v5664_v33, %v10361_v8 }
 0x7bf   :  { %v9621_v27 = vrot.slane %v5664_v33, %v5684_v9  ;;  %v9623_v59 = vrot.slane %v5664_v33, %v5688_v2  ;;  %v9625_v30 = vrot.slane %v5664_v33, %v5692_v55  ;;  %v9627_v37 = vrot.slane %v5664_v33, %v5696_v22 }
 0x7c0   :  { %v5706_v6 = vmul.f32 %v9610_v15, %v5638_v20  ;;  %v5707_v7 = vmul.f32 %v9613_v10, %v5638_v20  ;;  %v5708_v35 = vmul.f32 %v9616_v58, %v5638_v20  ;;  %v5709_v56 = vmul.f32 %v9619_v52, %v5638_v20 }
 0x7c1   :  { %v5710_v63 = vmul.f32 %v9621_v27, %v5638_v20  ;;  %v5711_v61 = vmul.f32 %v9623_v59, %v5638_v20  ;;  %v5712_v41 = vmul.f32 %v9625_v30, %v5638_v20  ;;  %v5713_v0 = vmul.f32 %v9627_v37, %v5638_v20  ;;  %v5441_v20 = vld [vmem:[%s10118_s9] sm:$0xff] }
 0x7c2   :  { %v5722_v12 = vcombine.low %v5706_v6, %v5707_v7  ;;  %v5723_v34 = vcombine.low %v5708_v35, %v5709_v56  ;;  %v5774_v53 = vmul.f32 %v9613_v10, %v9406_v26  ;;  %v5775_v17 = vmul.f32 %v9616_v58, %v9438_v21 }
 0x7c3   :  { %v5724_v36 = vcombine.low %v5710_v63, %v5711_v61  ;;  %v5725_v38 = vcombine.low %v5712_v41, %v5713_v0  ;;  %v5778_v54 = vmul.f32 %v9623_v59, %v9484_v1  ;;  %v5779_v46 = vmul.f32 %v9625_v30, %v9545_v40 }
 0x7c4   :  { %v5732_v29 = vrot.slane %v5722_v12, %v10357_v4  ;;  %v5739_v31 = vrot.slane %v5723_v34, %v10357_v4  ;;  %v5782_v6 = vmul.f32 %v9613_v10, %v9394_v19  ;;  %v5783_v7 = vmul.f32 %v9616_v58, %v9430_v45  ;;  %v10384_v12 = vld [vmem:[#allocation46_spill] sm:$0xff] }
 0x7c5   :  { %v5746_v3 = vrot.slane %v5724_v36, %v10357_v4  ;;  %v5753_v39 = vrot.slane %v5725_v38, %v10357_v4  ;;  %v5784_v63 = vmul.f32 %v9619_v52, %v9448_v11  ;;  %v5785_v41 = vmul.f32 %v9621_v27, %v9464_v25  ;;  %v10385_v38 = vld [vmem:[#allocation52_spill] sm:$0xff] }
 0x7c6   :  { %v5754_v23 = vcombine.low %v5732_v29, %v5739_v31  ;;  %v5786_v34 = vmul.f32 %v9623_v59, %v10384_v12  ;;  %v5787_v29 = vmul.f32 %v9625_v30, %v10385_v38 }
 0x7c7   :  { %v5755_v5 = vcombine.low %v5746_v3, %v5753_v39  ;;  %v10386_v3 = vld [vmem:[#allocation16_spill] sm:$0xff] }
 0x7c8   :  { %v5762_v48 = vrot.slane %v5754_v23, %v10357_v4  ;;  %v5788_v39 = vmul.f32 %v9627_v37, %v10386_v3 }
 0x7c9   :  { %v5769_v16 = vrot.slane %v5755_v5, %v10357_v4  ;;  %v5773_v4 = vmul.f32 %v9610_v15, %v9384_v57 }
 0x7cb   :  { %v5770_v13 = vcombine.low %v5762_v48, %v5769_v16  ;;  %v10387_v48 = vld [vmem:[#allocation37_spill] sm:$0xff] }
 0x7cc   :  { %v5789_v16 = vmul.f32 %v9610_v15, %v10387_v48  ;;  %v10395_v48 = vld [vmem:[#allocation39_spill] sm:$0xff] }
 0x7cd   :  { %v5772_v42 = vsub.f32 %v5441_v20, %v5770_v13 }
 0x7cf   :  { %v9647_v62 = vrot.slane %v5772_v42, %v10358_v50  ;;  %v9650_v51 = vrot.slane %v5772_v42, %v10359_v49  ;;  %v9653_v43 = vrot.slane %v5772_v42, %v10360_v60  ;;  %v9656_v47 = vrot.slane %v5772_v42, %v10361_v8 }
 0x7d0   :  { %v9664_v50 = vrot.slane %v5772_v42, %v5684_v9  ;;  %v5776_v49 = vmul.f32 %v9619_v52, %v9444_v44  ;;  %v5777_v60 = vmul.f32 %v9621_v27, %v9482_v18  ;;  %v9670_v14 = vrot.slane %v5772_v42, %v5688_v2 }
 0x7d1   :  { %v9672_v8 = vrot.slane %v5772_v42, %v5692_v55  ;;  %v9675_v57 = vadd.f32 %v9647_v62, %v5773_v4  ;;  %v9678_v26 = vadd.f32 %v9650_v51, %v5774_v53  ;;  %v9681_v21 = vadd.f32 %v9653_v43, %v5775_v17 }
 0x7d2   :  { %v9685_v44 = vrot.slane %v5772_v42, %v5696_v22  ;;  %v9688_v18 = vadd.f32 %v9656_v47, %v5776_v49  ;;  %v9693_v24 = vadd.f32 %v9664_v50, %v5777_v60  ;;  %v5780_v9 = vmul.f32 %v9627_v37, %v9554_v28  ;;  %v10388_v42 = vld [vmem:[#allocation31_spill] sm:$0xff]  ;;  %v10389_v49 = vld [vmem:[#allocation42_spill] sm:$0xff] }
 0x7d3   :  { %v5781_v2 = vmul.f32 %v9610_v15, %v9382_v32  ;;  %v9700_v55 = vadd.f32 %v9670_v14, %v5778_v54  ;;  %v9703_v1 = vadd.f32 %v9672_v8, %v5779_v46  ;;  %v6724_v22 = vmul.f32 -1.442695, %v9675_v57 }
 0x7d4   :  { %v6725_v33 = vmul.f32 -1.442695, %v9678_v26  ;;  %v6726_v40 = vmul.f32 -1.442695, %v9681_v21  ;;  %v9711_v28 = vadd.f32 %v9685_v44, %v5780_v9  ;;  %v6727_v32 = vmul.f32 -1.442695, %v9688_v18 }
 0x7d5   :  { %v9717_v35 = vadd.f32 %v9647_v62, %v5781_v2  ;;  %7283 = vpow2.f32 %v6724_v22  ;;  %v6728_v56 = vmul.f32 -1.442695, %v9693_v24  ;;  %v9723_v61 = vadd.f32 %v9650_v51, %v5782_v6  ;;  %v10390_v9 = vld [vmem:[#allocation47_spill] sm:$0xff] }
 0x7d6   :  { %7285 = vpow2.f32 %v6725_v33  ;;  %v6729_v19 = vmul.f32 -1.442695, %v9700_v55  ;;  %v9729_v45 = vadd.f32 %v9653_v43, %v5783_v7  ;;  %v6730_v0 = vmul.f32 -1.442695, %v9703_v1 }
 0x7d7   :  { %7287 = vpow2.f32 %v6726_v40  ;;  %v9735_v11 = vadd.f32 %v9656_v47, %v5784_v63  ;;  %v6731_v36 = vmul.f32 -1.442695, %v9711_v28  ;;  %v9741_v25 = vadd.f32 %v9664_v50, %v5785_v41  ;;  %v10391_v40 = vld [vmem:[#allocation48_spill] sm:$0xff] }
 0x7d8   :  { %7289 = vpow2.f32 %v6727_v32  ;;  %v6732_v31 = vmul.f32 -1.442695, %v9717_v35  ;;  %v9747_v23 = vadd.f32 %v9670_v14, %v5786_v34  ;;  %v6733_v5 = vmul.f32 -1.442695, %v9723_v61 }
 0x7d9   :  { %7291 = vpow2.f32 %v6728_v56  ;;  %v9753_v20 = vadd.f32 %v9672_v8, %v5787_v29  ;;  %v6734_v13 = vmul.f32 -1.442695, %v9729_v45  ;;  %v5790_v4 = vmul.f32 %v9613_v10, %v10388_v42  ;;  %v10392_v56 = vld [vmem:[#allocation50_spill] sm:$0xff] }
 0x7da   :  { %7293 = vpow2.f32 %v6729_v19  ;;  %v9759_v53 = vadd.f32 %v9685_v44, %v5788_v39  ;;  %v6735_v17 = vmul.f32 -1.442695, %v9735_v11  ;;  %v5791_v60 = vmul.f32 %v9616_v58, %v10389_v49  ;;  %v10394_v29 = vld [vmem:[#allocation14_spill] sm:$0xff] }
 0x7db   :  { %7295 = vpow2.f32 %v6730_v0  ;;  %v9765_v54 = vadd.f32 %v9647_v62, %v5789_v16  ;;  %v6736_v46 = vmul.f32 -1.442695, %v9741_v25  ;;  %v5792_v2 = vmul.f32 %v9619_v52, %v10390_v9  ;;  %v10393_v0 = vld [vmem:[#allocation18_spill] sm:$0xff] }
 0x7dc   :  { %7297 = vpow2.f32 %v6731_v36  ;;  %v9771_v22 = vadd.f32 %v9650_v51, %v5790_v4  ;;  %v6737_v33 = vmul.f32 -1.442695, %v9747_v23  ;;  %v5793_v6 = vmul.f32 %v9621_v27, %v10391_v40 }
 0x7dd   :  { %7299 = vpow2.f32 %v6732_v31  ;;  %v9777_v32 = vadd.f32 %v9653_v43, %v5791_v60  ;;  %v6738_v7 = vmul.f32 -1.442695, %v9753_v20  ;;  %v5794_v63 = vmul.f32 %v9623_v59, %v10392_v56 }
 0x7de   :  { %7301 = vpow2.f32 %v6733_v5  ;;  %v9783_v19 = vadd.f32 %v9656_v47, %v5792_v2  ;;  %v6739_v41 = vmul.f32 -1.442695, %v9759_v53  ;;  %v5795_v12 = vmul.f32 %v9625_v30, %v10393_v0  ;;  %v10397_v2 = vld [vmem:[#allocation45_spill] sm:$0xff] }
 0x7df   :  { %7303 = vpow2.f32 %v6734_v13  ;;  %v9789_v34 = vadd.f32 %v9664_v50, %v5793_v6  ;;  %v6740_v36 = vmul.f32 -1.442695, %v9765_v54  ;;  %v5796_v31 = vmul.f32 %v9627_v37, %v10394_v29  ;;  %v10399_v0 = vld [vmem:[#allocation13_spill] sm:$0xff]  ;;  %v10400_v29 = vld [vmem:[#allocation51_spill] sm:$0xff] }
 0x7e0   :  { %7305 = vpow2.f32 %v6735_v17  ;;  %v9797_v3 = vadd.f32 %v9670_v14, %v5794_v63  ;;  %v6741_v39 = vmul.f32 -1.442695, %v9771_v22  ;;  %v5797_v16 = vmul.f32 %v9610_v15, %v10395_v48  ;;  %v10396_v17 = vld [vmem:[#allocation41_spill] sm:$0xff] }
 0x7e1   :  { %7307 = vpow2.f32 %v6736_v46  ;;  %v9805_v13 = vadd.f32 %v9672_v8, %v5795_v12  ;;  %v6742_v42 = vmul.f32 -1.442695, %v9777_v32  ;;  %v5798_v49 = vmul.f32 %v9613_v10, %v10396_v17  ;;  %v10401_v48 = vld [vmem:[#allocation17_spill] sm:$0xff]  ;;  %v10402_v17 = vld [vmem:[#allocation44_spill] sm:$0xff] }
 0x7e2   :  { %v9792_v38 = vpop.eup %7283  ;;  %7309 = vpow2.f32 %v6737_v33  ;;  %v9811_v60 = vadd.f32 %v9685_v44, %v5796_v31  ;;  %v6743_v46 = vmul.f32 -1.442695, %v9783_v19  ;;  %v5799_v15 = vmul.f32 %v9616_v58, %v10397_v2 }
 0x7e3   :  { %v9800_v5 = vpop.eup %7285  ;;  %7311 = vpow2.f32 %v6738_v7  ;;  %v9817_v33 = vadd.f32 %v9647_v62, %v5797_v16  ;;  %v6744_v40 = vmul.f32 -1.442695, %v9789_v34  ;;  %v10398_v7 = vld [vmem:[#allocation49_spill] sm:$0xff]  ;;  %v9823_v56 = vadd.f32 %v9650_v51, %v5798_v49 }
 0x7e4   :  { %v7288_v4 = vpop.eup %7287  ;;  %7313 = vpow2.f32 %v6739_v41  ;;  %v5800_v10 = vmul.f32 %v9619_v52, %v10398_v7  ;;  %v6745_v63 = vmul.f32 -1.442695, %v9797_v3  ;;  %v5801_v58 = vmul.f32 %v9621_v27, %v10399_v0 }
 0x7e5   :  { %v7290_v9 = vpop.eup %7289  ;;  %7315 = vpow2.f32 %v6740_v36  ;;  %v9829_v62 = vadd.f32 %v9653_v43, %v5799_v15  ;;  %v6746_v12 = vmul.f32 -1.442695, %v9805_v13  ;;  %v5802_v52 = vmul.f32 %v9623_v59, %v10400_v29 }
 0x7e6   :  { %v7292_v6 = vpop.eup %7291  ;;  %7317 = vpow2.f32 %v6741_v39  ;;  %v9835_v51 = vadd.f32 %v9656_v47, %v5800_v10  ;;  %v6747_v31 = vmul.f32 -1.442695, %v9811_v60  ;;  %v5803_v27 = vmul.f32 %v9625_v30, %v10401_v48 }
 0x7e7   :  { %v7294_v41 = vpop.eup %7293  ;;  %7319 = vpow2.f32 %v6742_v42  ;;  %v9841_v43 = vadd.f32 %v9664_v50, %v5801_v58  ;;  %v6748_v16 = vmul.f32 -1.442695, %v9817_v33  ;;  %v5804_v59 = vmul.f32 %v9627_v37, %v10402_v17 }
 0x7e8   :  { %v7296_v36 = vpop.eup %7295  ;;  %7321 = vpow2.f32 %v6743_v46  ;;  %v9847_v47 = vadd.f32 %v9670_v14, %v5802_v52  ;;  %v6749_v49 = vmul.f32 -1.442695, %v9823_v56  ;;  %v9851_v2 = vadd.f32 %v9672_v8, %v5803_v27 }
 0x7e9   :  { %v7298_v39 = vpop.eup %7297  ;;  %7323 = vpow2.f32 %v6744_v40  ;;  %v6750_v30 = vmul.f32 -1.442695, %v9829_v62  ;;  %v9855_v15 = vadd.f32 %v9685_v44, %v5804_v59  ;;  %v6751_v37 = vmul.f32 -1.442695, %v9835_v51 }
 0x7ea   :  { %v7300_v42 = vpop.eup %7299  ;;  %7325 = vpow2.f32 %v6745_v63  ;;  %v6752_v14 = vmul.f32 -1.442695, %v9841_v43  ;;  %v6753_v10 = vmul.f32 -1.442695, %v9847_v47  ;;  %v6754_v63 = vmul.f32 -1.442695, %v9851_v2 }
 0x7eb   :  { %v7302_v46 = vpop.eup %7301  ;;  %7327 = vpow2.f32 %v6746_v12  ;;  %10403 = vst [vmem:[#allocation15_spill] sm:$0xff] %v9855_v15  ;;  %v6755_v44 = vmul.f32 -1.442695, %v9855_v15  ;;  %v5974_v12 = vadd.f32 1.0, %v9792_v38  ;;  %v5975_v52 = vadd.f32 1.0, %v9800_v5 }
 0x7ec   :  { %v7304_v50 = vpop.eup %7303  ;;  %7329 = vpow2.f32 %v6747_v31  ;;  %v5976_v48 = vadd.f32 1.0, %v7288_v4  ;;  %v5978_v59 = vadd.f32 1.0, %v7292_v6  ;;  %v5981_v15 = vadd.f32 1.0, %v7298_v39 }
 0x7ed   :  { %v7306_v40 = vpop.eup %7305  ;;  %7331 = vpow2.f32 %v6748_v16  ;;  %v5977_v16 = vadd.f32 1.0, %v7290_v9  ;;  %v5982_v5 = vadd.f32 1.0, %v7300_v42  ;;  %v5983_v4 = vadd.f32 1.0, %v7302_v46 }
 0x7ee   :  { %v7308_v7 = vpop.eup %7307  ;;  %7333 = vpow2.f32 %v6749_v49  ;;  %v5984_v9 = vadd.f32 1.0, %v7304_v50 }
 0x7ef   :  { %v7310_v8 = vpop.eup %7309  ;;  %7335 = vpow2.f32 %v6750_v30  ;;  %v5979_v30 = vadd.f32 1.0, %v7294_v41  ;;  %v5985_v41 = vadd.f32 1.0, %v7306_v40 }
 0x7f0   :  { %v7312_v0 = vpop.eup %7311  ;;  %7337 = vpow2.f32 %v6751_v37 }
 0x7f1   :  { %v7314_v58 = vpop.eup %7313  ;;  %7339 = vpow2.f32 %v6752_v14  ;;  %v5980_v14 = vadd.f32 1.0, %v7296_v36  ;;  %v5986_v36 = vadd.f32 1.0, %v7308_v7  ;;  %v5988_v46 = vadd.f32 1.0, %v7312_v0 }
 0x7f2   :  { %v7316_v29 = vpop.eup %7315  ;;  %7341 = vpow2.f32 %v6753_v10  ;;  %v5989_v50 = vadd.f32 1.0, %v7314_v58 }
 0x7f3   :  { %v7318_v31 = vpop.eup %7317  ;;  %7343 = vpow2.f32 %v6754_v63  ;;  %v5990_v40 = vadd.f32 1.0, %v7316_v29  ;;  %v7411_v29 = vld [vmem:[%s10109_s0] sm:$0xff] }
 0x7f4   :  { %v7320_v27 = vpop.eup %7319  ;;  %7345 = vpow2.f32 %v6755_v44 }
 0x7f5   :  { %v7322_v17 = vpop.eup %7321  ;;  %7347 = vrcp.f32 %v5974_v12 }
 0x7f6   :  { %v7324_v49 = vpop.eup %7323  ;;  %7349 = vrcp.f32 %v5975_v52  ;;  %v5987_v52 = vadd.f32 1.0, %v7310_v8 }
 0x7f7   :  { %v7326_v37 = vpop.eup %7325  ;;  %7351 = vrcp.f32 %v5976_v48  ;;  %v5994_v58 = vadd.f32 1.0, %v7324_v49 }
 0x7f8   :  { %v7328_v38 = vpop.eup %7327  ;;  %7353 = vrcp.f32 %v5977_v16 }
 0x7f9   :  { %v7330_v10 = vpop.eup %7329  ;;  %7355 = vrcp.f32 %v5978_v59  ;;  %v5991_v59 = vadd.f32 1.0, %v7318_v31  ;;  %v5996_v49 = vadd.f32 1.0, %v7328_v38 }
 0x7fa   :  { %v7332_v63 = vpop.eup %7331  ;;  %7357 = vrcp.f32 %v5979_v30  ;;  %v5992_v30 = vadd.f32 1.0, %v7320_v27  ;;  %v5995_v27 = vadd.f32 1.0, %v7326_v37  ;;  %v5997_v37 = vadd.f32 1.0, %v7330_v10 }
 0x7fb   :  { %v9864_v44 = vpop.eup %7333  ;;  %7359 = vrcp.f32 %v5980_v14 }
 0x7fc   :  { %v9866_v6 = vpop.eup %7335  ;;  %7361 = vrcp.f32 %v5981_v15 }
 0x7fd   :  { %v9868_v12 = vpop.eup %7337  ;;  %7363 = vrcp.f32 %v5982_v5  ;;  %v5993_v5 = vadd.f32 1.0, %v7322_v17  ;;  %v7412_v17 = vld [vmem:[%s10109_s0 + $0x8] sm:$0xff] }
 0x7fe   :  { %v9870_v39 = vpop.eup %7339  ;;  %7365 = vrcp.f32 %v5983_v4 }
 0x7ff   :  { %v9872_v42 = vpop.eup %7341  ;;  %7367 = vrcp.f32 %v5984_v9 }
 0x800   :  { %v9874_v48 = vpop.eup %7343  ;;  %7369 = vrcp.f32 %v5985_v41 }
 0x801   :  { %v9876_v16 = vpop.eup %7345  ;;  %7371 = vrcp.f32 %v5986_v36 }
 0x802   :  { %v7348_v15 = vpop.eup %7347  ;;  %7373 = vrcp.f32 %v5987_v52  ;;  %v7413_v52 = vld [vmem:[%s10109_s0 + $0x10] sm:$0xff] }
 0x803   :  { %v7350_v7 = vpop.eup %7349  ;;  %7375 = vrcp.f32 %v5988_v46  ;;  %v6070_v8 = vmul.f32 %v7348_v15, %v9675_v57  ;;  %v5998_v15 = vadd.f32 1.0, %v7332_v63 }
 0x804   :  { %v7352_v14 = vpop.eup %7351  ;;  %7377 = vrcp.f32 %v5989_v50  ;;  %v6071_v0 = vmul.f32 %v7350_v7, %v9678_v26 }
 0x805   :  { %v7354_v4 = vpop.eup %7353  ;;  %7379 = vrcp.f32 %v5990_v40  ;;  %v6072_v9 = vmul.f32 %v7352_v14, %v9681_v21  ;;  %v6102_v31 = vadd.f32 %v7411_v29, %v6070_v8 }
 0x806   :  { %v7356_v41 = vpop.eup %7355  ;;  %7381 = vrcp.f32 %v5991_v59  ;;  %v6073_v57 = vmul.f32 %v7354_v4, %v9688_v18  ;;  %v6103_v26 = vadd.f32 %v7412_v17, %v6071_v0 }
 0x807   :  { %v7358_v36 = vpop.eup %7357  ;;  %7383 = vrcp.f32 %v5992_v30  ;;  %v6074_v21 = vmul.f32 %v7356_v41, %v9693_v24  ;;  %v6104_v46 = vadd.f32 %v7413_v52, %v6072_v9  ;;  %6134 = vst [vmem:[%s10119_s10] sm:$0xff] %v6102_v31  ;;  %v5999_v30 = vadd.f32 1.0, %v9864_v44 }
 0x808   :  { %v7360_v18 = vpop.eup %7359  ;;  %7385 = vrcp.f32 %v5993_v5  ;;  %v6075_v50 = vmul.f32 %v7358_v36, %v9700_v55  ;;  %v6000_v5 = vadd.f32 1.0, %v9866_v6  ;;  %v6002_v31 = vadd.f32 1.0, %v9870_v39 }
 0x809   :  { %v7362_v24 = vpop.eup %7361  ;;  %7387 = vrcp.f32 %v5994_v58  ;;  %v6076_v59 = vmul.f32 %v7360_v18, %v9703_v1  ;;  %v6001_v58 = vadd.f32 1.0, %v9868_v12  ;;  %v6004_v36 = vadd.f32 1.0, %v9874_v48 }
 0x80a   :  { %v7364_v55 = vpop.eup %7363  ;;  %7389 = vrcp.f32 %v5995_v27  ;;  %v6077_v8 = vmul.f32 %v7362_v24, %v9711_v28  ;;  %v6005_v52 = vadd.f32 1.0, %v9876_v16 }
 0x80b   :  { %v7366_v14 = vpop.eup %7365  ;;  %7391 = vrcp.f32 %v5996_v49  ;;  %v6078_v0 = vmul.f32 %v7364_v55, %v9717_v35 }
 0x80c   :  { %v7368_v4 = vpop.eup %7367  ;;  %7393 = vrcp.f32 %v5997_v37  ;;  %v6079_v9 = vmul.f32 %v7366_v14, %v9723_v61 }
 0x80d   :  { %v7370_v29 = vpop.eup %7369  ;;  %7395 = vrcp.f32 %v5998_v15  ;;  %v6080_v41 = vmul.f32 %v7368_v4, %v9729_v45 }
 0x80e   :  { %v7414_v38 = vld [vmem:[%s10109_s0 + $0x18] sm:$0xff]  ;;  %v7372_v27 = vpop.eup %7371  ;;  %7397 = vrcp.f32 %v5999_v30  ;;  %v6081_v17 = vmul.f32 %v7370_v29, %v9735_v11 }
 0x80f   :  { %v6105_v40 = vadd.f32 %v7414_v38, %v6073_v57  ;;  %6135 = vst [vmem:[%s10119_s10 + $0x8] sm:$0xff] %v6103_v26  ;;  %v6003_v57 = vadd.f32 1.0, %v9872_v42  ;;  %v7374_v26 = vpop.eup %7373  ;;  %7399 = vrcp.f32 %v6000_v5  ;;  %v6082_v49 = vmul.f32 %v7372_v27, %v9741_v25 }
 0x810   :  { %7401 = vrcp.f32 %v6001_v58 }
 0x811   :  { %7403 = vrcp.f32 %v6002_v31 }
 0x812   :  { %7405 = vrcp.f32 %v6003_v57 }
 0x816   :  { %v7415_v10 = vld [vmem:[%s10109_s0 + $0x20] sm:$0xff] }
 0x817   :  { %v6106_v7 = vadd.f32 %v7415_v10, %v6074_v21  ;;  %6136 = vst [vmem:[%s10119_s10 + $0x10] sm:$0xff] %v6104_v46  ;;  %v7376_v21 = vpop.eup %7375  ;;  %v6083_v46 = vmul.f32 %v7374_v26, %v9747_v23  ;;  %7407 = vrcp.f32 %v6004_v36 }
 0x818   :  { %v7378_v18 = vpop.eup %7377  ;;  %v6084_v37 = vmul.f32 %v7376_v21, %v9753_v20  ;;  %7409 = vrcp.f32 %v6005_v52 }
 0x819   :  { %v7380_v23 = vpop.eup %7379  ;;  %v6085_v38 = vmul.f32 %v7378_v18, %v9759_v53 }
 0x81a   :  { %v7382_v20 = vpop.eup %7381  ;;  %v6086_v15 = vmul.f32 %v7380_v23, %v9765_v54 }
 0x81b   :  { %v7384_v53 = vpop.eup %7383 }
 0x81c   :  { %v7386_v54 = vpop.eup %7385 }
 0x81d   :  { %v6089_v14 = vmul.f32 %v7386_v54, %v9783_v19 }
 0x81e   :  { %v7416_v63 = vld [vmem:[%s10109_s0 + $0x28] sm:$0xff] }
 0x81f   :  { %v6107_v1 = vadd.f32 %v7416_v63, %v6075_v50  ;;  %6137 = vst [vmem:[%s10119_s10 + $0x18] sm:$0xff] %v6105_v40 }
 0x826   :  { %v7417_v44 = vld [vmem:[%s10109_s0 + $0x30] sm:$0xff] }
 0x827   :  { %v6108_v28 = vadd.f32 %v7417_v44, %v6076_v59  ;;  %6138 = vst [vmem:[%s10119_s10 + $0x20] sm:$0xff] %v6106_v7  ;;  %v6087_v7 = vmul.f32 %v7382_v20, %v9771_v22  ;;  %v7388_v22 = vpop.eup %7387 }
 0x828   :  { %v6090_v44 = vmul.f32 %v7388_v22, %v9789_v34 }
 0x82e   :  { %v7418_v6 = vld [vmem:[%s10109_s0 + $0x38] sm:$0xff] }
 0x82f   :  { %v6109_v35 = vadd.f32 %v7418_v6, %v6077_v8  ;;  %6139 = vst [vmem:[%s10119_s10 + $0x28] sm:$0xff] %v6107_v1  ;;  %v6088_v8 = vmul.f32 %v7384_v53, %v9777_v32  ;;  %v7390_v32 = vpop.eup %7389 }
 0x830   :  { %v7392_v19 = vpop.eup %7391  ;;  %v6091_v58 = vmul.f32 %v7390_v32, %v9797_v3 }
 0x831   :  { %v7394_v34 = vpop.eup %7393 }
 0x832   :  { %v7396_v3 = vpop.eup %7395 }
 0x833   :  { %v6094_v27 = vmul.f32 %v7396_v3, %v9817_v33 }
 0x836   :  { %v7419_v12 = vld [vmem:[%s10109_s0 + $0x40] sm:$0xff] }
 0x837   :  { %v6110_v61 = vadd.f32 %v7419_v12, %v6078_v0  ;;  %6140 = vst [vmem:[%s10119_s10 + $0x30] sm:$0xff] %v6108_v28 }
 0x83e   :  { %v7420_v39 = vld [vmem:[%s10109_s0 + $0x48] sm:$0xff] }
 0x83f   :  { %v6111_v45 = vadd.f32 %v7420_v39, %v6079_v9  ;;  %6141 = vst [vmem:[%s10119_s10 + $0x38] sm:$0xff] %v6109_v35  ;;  %v6092_v35 = vmul.f32 %v7392_v19, %v9805_v13  ;;  %v7398_v13 = vpop.eup %7397 }
 0x840   :  { %v6095_v39 = vmul.f32 %v7398_v13, %v9823_v56 }
 0x846   :  { %v7421_v42 = vld [vmem:[%s10109_s0 + $0x50] sm:$0xff] }
 0x847   :  { %v6112_v11 = vadd.f32 %v7421_v42, %v6080_v41  ;;  %6142 = vst [vmem:[%s10119_s10 + $0x40] sm:$0xff] %v6110_v61  ;;  %v6093_v41 = vmul.f32 %v7394_v34, %v9811_v60  ;;  %v7400_v60 = vpop.eup %7399 }
 0x848   :  { %v7402_v33 = vpop.eup %7401  ;;  %v6096_v36 = vmul.f32 %v7400_v60, %v9829_v62 }
 0x849   :  { %v7404_v56 = vpop.eup %7403 }
 0x84a   :  { %v7406_v62 = vpop.eup %7405 }
 0x84b   :  { %v6099_v18 = vmul.f32 %v7406_v62, %v9847_v47  ;;  %v10404_v47 = vld [vmem:[#allocation15_spill] sm:$0xff] }
 0x84e   :  { %v7422_v48 = vld [vmem:[%s10109_s0 + $0x58] sm:$0xff] }
 0x84f   :  { %v6113_v25 = vadd.f32 %v7422_v48, %v6081_v17  ;;  %6143 = vst [vmem:[%s10119_s10 + $0x48] sm:$0xff] %v6111_v45 }
 0x856   :  { %v7423_v16 = vld [vmem:[%s10109_s0 + $0x60] sm:$0xff] }
 0x857   :  { %v6114_v50 = vadd.f32 %v7423_v16, %v6082_v49  ;;  %6144 = vst [vmem:[%s10119_s10 + $0x50] sm:$0xff] %v6112_v11  ;;  %v6097_v11 = vmul.f32 %v7402_v33, %v9835_v51  ;;  %v7408_v51 = vpop.eup %7407 }
 0x85e   :  { %v7424_v40 = vld [vmem:[%s10109_s0 + $0x68] sm:$0xff] }
 0x85f   :  { %v6115_v24 = vadd.f32 %v7424_v40, %v6083_v46  ;;  %6145 = vst [vmem:[%s10119_s10 + $0x58] sm:$0xff] %v6113_v25  ;;  %v6098_v46 = vmul.f32 %v7404_v56, %v9841_v43  ;;  %v7410_v43 = vpop.eup %7409 }
 0x860   :  { %v6101_v40 = vmul.f32 %v7410_v43, %v10404_v47 }
 0x866   :  { %v7425_v59 = vld [vmem:[%s10109_s0 + $0x70] sm:$0xff] }
 0x867   :  { %v6116_v10 = vadd.f32 %v7425_v59, %v6084_v37  ;;  %6146 = vst [vmem:[%s10119_s10 + $0x60] sm:$0xff] %v6114_v50  ;;  %v6100_v50 = vmul.f32 %v7408_v51, %v9851_v2 }
 0x86e   :  { %v7426_v55 = vld [vmem:[%s10109_s0 + $0x78] sm:$0xff] }
 0x86f   :  { %v6117_v30 = vadd.f32 %v7426_v55, %v6085_v38  ;;  %6147 = vst [vmem:[%s10119_s10 + $0x68] sm:$0xff] %v6115_v24 }
 0x876   :  { %v7427_v63 = vld [vmem:[%s10109_s0 + $0x80] sm:$0xff] }
 0x877   :  { %v6118_v1 = vadd.f32 %v7427_v63, %v6086_v15  ;;  %6148 = vst [vmem:[%s10119_s10 + $0x70] sm:$0xff] %v6116_v10 }
 0x87e   :  { %v7428_v5 = vld [vmem:[%s10109_s0 + $0x88] sm:$0xff] }
 0x87f   :  { %v6119_v0 = vadd.f32 %v7428_v5, %v6087_v7  ;;  %6149 = vst [vmem:[%s10119_s10 + $0x78] sm:$0xff] %v6117_v30 }
 0x886   :  { %v7429_v28 = vld [vmem:[%s10109_s0 + $0x90] sm:$0xff] }
 0x887   :  { %v6120_v4 = vadd.f32 %v7429_v28, %v6088_v8  ;;  %6150 = vst [vmem:[%s10119_s10 + $0x80] sm:$0xff] %v6118_v1 }
 0x88e   :  { %v7430_v9 = vld [vmem:[%s10109_s0 + $0x98] sm:$0xff] }
 0x88f   :  { %v6121_v6 = vadd.f32 %v7430_v9, %v6089_v14  ;;  %6151 = vst [vmem:[%s10119_s10 + $0x88] sm:$0xff] %v6119_v0 }
 0x896   :  { %v7431_v29 = vld [vmem:[%s10109_s0 + $0xa0] sm:$0xff] }
 0x897   :  { %v6122_v31 = vadd.f32 %v7431_v29, %v6090_v44  ;;  %6152 = vst [vmem:[%s10119_s10 + $0x90] sm:$0xff] %v6120_v4 }
 0x89e   :  { %v7432_v12 = vld [vmem:[%s10109_s0 + $0xa8] sm:$0xff] }
 0x89f   :  { %v6123_v61 = vadd.f32 %v7432_v12, %v6091_v58  ;;  %6153 = vst [vmem:[%s10119_s10 + $0x98] sm:$0xff] %v6121_v6 }
 0x8a6   :  { %v7433_v57 = vld [vmem:[%s10109_s0 + $0xb0] sm:$0xff] }
 0x8a7   :  { %v6124_v17 = vadd.f32 %v7433_v57, %v6092_v35  ;;  %6154 = vst [vmem:[%s10119_s10 + $0xa0] sm:$0xff] %v6122_v31 }
 0x8ae   :  { %v7434_v45 = vld [vmem:[%s10109_s0 + $0xb8] sm:$0xff] }
 0x8af   :  { %v6125_v26 = vadd.f32 %v7434_v45, %v6093_v41  ;;  %6155 = vst [vmem:[%s10119_s10 + $0xa8] sm:$0xff] %v6123_v61 }
 0x8b6   :  { %v7435_v49 = vld [vmem:[%s10109_s0 + $0xc0] sm:$0xff] }
 0x8b7   :  { %v6126_v42 = vadd.f32 %v7435_v49, %v6094_v27  ;;  %6156 = vst [vmem:[%s10119_s10 + $0xb0] sm:$0xff] %v6124_v17 }
 0x8be   :  { %v7436_v21 = vld [vmem:[%s10109_s0 + $0xc8] sm:$0xff] }
 0x8bf   :  { %v6127_v52 = vadd.f32 %v7436_v21, %v6095_v39  ;;  %6157 = vst [vmem:[%s10119_s10 + $0xb8] sm:$0xff] %v6125_v26 }
 0x8c6   :  { %v7437_v48 = vld [vmem:[%s10109_s0 + $0xd0] sm:$0xff] }
 0x8c7   :  { %v6128_v25 = vadd.f32 %v7437_v48, %v6096_v36  ;;  %6158 = vst [vmem:[%s10119_s10 + $0xc0] sm:$0xff] %v6126_v42 }
 0x8ce   :  { %v7438_v37 = vld [vmem:[%s10109_s0 + $0xd8] sm:$0xff] }
 0x8cf   :  { %v6129_v16 = vadd.f32 %v7438_v37, %v6097_v11  ;;  %6159 = vst [vmem:[%s10119_s10 + $0xc8] sm:$0xff] %v6127_v52 }
 0x8d6   :  { %v7439_v23 = vld [vmem:[%s10109_s0 + $0xe0] sm:$0xff] }
 0x8d7   :  { %v6130_v38 = vadd.f32 %v7439_v23, %v6098_v46  ;;  %6160 = vst [vmem:[%s10119_s10 + $0xd0] sm:$0xff] %v6128_v25 }
 0x8de   :  { %v7440_v24 = vld [vmem:[%s10109_s0 + $0xe8] sm:$0xff] }
 0x8df   :  { %v6131_v20 = vadd.f32 %v7440_v24, %v6099_v18  ;;  %6161 = vst [vmem:[%s10119_s10 + $0xd8] sm:$0xff] %v6129_v16 }
 0x8e6   :  { %v7441_v2 = vld [vmem:[%s10109_s0 + $0xf0] sm:$0xff] }
 0x8e7   :  { %v6132_v15 = vadd.f32 %v7441_v2, %v6100_v50  ;;  %6162 = vst [vmem:[%s10119_s10 + $0xe0] sm:$0xff] %v6130_v38 }
 0x8ee   :  { %v7442_v59 = vld [vmem:[%s10109_s0 + $0xf8] sm:$0xff] }
 0x8ef   :  { %v6133_v10 = vadd.f32 %v7442_v59, %v6101_v40  ;;  %6163 = vst [vmem:[%s10119_s10 + $0xe8] sm:$0xff] %v6131_v20  ;;  %6164 = vst [vmem:[%s10119_s10 + $0xf0] sm:$0xff] %v6132_v15 }
 0x8f1   :  { %6165 = vst [vmem:[%s10119_s10 + $0xf8] sm:$0xff] %v6133_v10 }
 0x8f2   :  { %6170 = vsyncpa [#allocation3], 1 }
 0x8f3   :  { %6171 = vsyncpa [#allocation5], 1 }

</bundles_post_ra>
